<compile_context>
chip_gen: v7x
topology: tpu7x:2x2x1
jax: 0.10.0
libtpu: 0.0.40
codegen_flags: <defaults>
</compile_context>

<pallas_src>
import jax
import jax.numpy as jnp
import numpy as np
from jax.experimental import pallas as pl
from jax.experimental.pallas import tpu as pltpu


# ---------------- config (mirrors ProCNN.__init__ hyperparameters) -------------
CONFIG = dict(
    seq_length=64,
    conv1_knum=32, conv1_ksize=5, pool1=4,
    conv2_knum=16, conv2_ksize=3, pool2=2,
    xt_hidden=32,
    conv_activation="relu", fc_activation="relu",
    conv_dropout=0.1, fc_dropout=0.25,
)
VOCAB = list("ACDEFGHIKLMNPQRSTVWY")   # len(input_symbol_vocab) = 20
TF_FEATURES = 325                      # fc_t = Linear(325, xt_hidden)
BN_EPS = 1e-5


# ------------------------------- fused Pallas kernel ---------------------------
def procnn_kernel(xcol1_ref, xt_ref,
                  w1c_ref, w2c_ref, g_ref, w1s_ref,
                  wt_ref, w1t_ref, w2_ref, w3_ref, wo_ref,
                  v32_ref, v16_ref, v512_ref, v256_ref, v64_ref,
                  out_ref):
    """Whole ProCNN forward (inference) on resident VMEM tiles.

    xcol1_ref: (p1, B*L1, K1*Cin)  conv1 im2col, pool-offset-major
    xt_ref:    (B, 325)
    w1c_ref:   (K1*Cin, C1)        conv1 weight, im2col layout
    w2c_ref:   (K2, C1, C2)        conv2 weight per tap
    g_ref:     (p2*K2, L2*B, B*L1) 0/1 gather matrices: conv2 shift + zero-pad
                                   + pool2 parity + (l2-major, b-minor) output order
    w1s_ref:   (L2, C2, 512)       fc1 sequence-feature weight, re-blocked so the
                                   PyTorch channel-major flatten needs no transpose
    wt/w1t/w2/w3/wo: dense weights; v*_ref: packed bias / BN-scale / BN-shift rows
    out_ref:   (B, 1)
    """
    f32 = jnp.float32
    relu = lambda v: jnp.maximum(v, 0.0)
    dot = lambda a, b: jnp.dot(a, b, preferred_element_type=f32)

    # ---- conv1 (im2col matmul) + MaxPool1d(p1) + ReLU + BatchNorm --------------
    p1 = xcol1_ref.shape[0]
    w1c = w1c_ref[...]
    acc = dot(xcol1_ref[0], w1c)                        # (B*L1, C1)
    for j in range(1, p1):                              # static unrolled pool max
        acc = jnp.maximum(acc, dot(xcol1_ref[j], w1c))
    h1 = relu(acc + v32_ref[0:1, :]) * v32_ref[1:2, :] + v32_ref[2:3, :]

    # ---- conv2 + MaxPool1d(p2) + ReLU + BatchNorm (all via gather matmuls) -----
    k2 = w2c_ref.shape[0]
    p2 = g_ref.shape[0] // k2
    taps = [dot(h1, w2c_ref[k]) for k in range(k2)]     # each (B*L1, C2)
    ys = []
    for q in range(p2):                                 # pool parity
        acc_q = dot(g_ref[q * k2], taps[0])
        for k in range(1, k2):
            acc_q = acc_q + dot(g_ref[q * k2 + k], taps[k])
        ys.append(acc_q)                                # (L2*B, C2)
    h2 = ys[0]
    for q in range(1, p2):
        h2 = jnp.maximum(h2, ys[q])
    h2 = relu(h2 + v16_ref[0:1, :]) * v16_ref[1:2, :] + v16_ref[2:3, :]

    # ---- fc_t -> ReLU ----------------------------------------------------------
    xt = relu(dot(xt_ref[...], wt_ref[...]) + v32_ref[3:4, :])     # (B, xt_hidden)

    # ---- fc1(concat([xs_flat, xt])) as split matmuls (flatten baked into w1s) --
    num_l2 = w1s_ref.shape[0]
    batch = xt_ref.shape[0]
    acc1 = dot(xt, w1t_ref[...]) + v512_ref[0:1, :]                 # (B, 512)
    for l2 in range(num_l2):
        acc1 = acc1 + dot(h2[l2 * batch:(l2 + 1) * batch, :], w1s_ref[l2])
    h = relu(acc1) * v512_ref[1:2, :] + v512_ref[2:3, :]            # bn1

    # ---- fc2/bn2, fc3/bn3, fc_out ---------------------------------------------
    h = relu(dot(h, w2_ref[...]) + v256_ref[0:1, :]) * v256_ref[1:2, :] + v256_ref[2:3, :]
    h = relu(dot(h, w3_ref[...]) + v64_ref[0:1, :]) * v64_ref[1:2, :] + v64_ref[2:3, :]
    out_ref[...] = dot(h, wo_ref[...]) + v64_ref[3:4, 0:1]


# --------------------- static gather matrices for conv2+pool2 ------------------
def build_conv2_pool_gather(batch):
    """G[q*K2+k, l2*B+b, b*L1+l1] = 1 iff l1 == p2*l2 + q + k - K2//2 is in range."""
    cfg = CONFIG
    L1 = cfg["seq_length"] // cfg["pool1"]
    L2 = L1 // cfg["pool2"]
    K2 = cfg["conv2_ksize"]
    p2 = cfg["pool2"]
    G = np.zeros((p2, K2, L2 * batch, batch * L1), np.float32)
    for q in range(p2):
        for k in range(K2):
            for l2 in range(L2):
                l1 = p2 * l2 + q + k - K2 // 2
                if 0 <= l1 < L1:
                    for b in range(batch):
                        G[q, k, l2 * batch + b, b * L1 + l1] = 1.0
    return jnp.asarray(G.reshape(p2 * K2, L2 * batch, batch * L1))


# ----------------------------- parameters (synthetic) --------------------------
def init_params(key):
    cfg = CONFIG
    Cin = len(VOCAB)
    C1, K1 = cfg["conv1_knum"], cfg["conv1_ksize"]
    C2, K2 = cfg["conv2_knum"], cfg["conv2_ksize"]
    L2 = cfg["seq_length"] // (cfg["pool1"] * cfg["pool2"])        # xs_hidden
    xt_hidden = cfg["xt_hidden"]
    Ds = C2 * L2

    def uniform(k, shape, fan_in):
        bound = 1.0 / np.sqrt(fan_in)
        return jax.random.uniform(k, shape, jnp.float32, -bound, bound)

    keys = jax.random.split(key, 34)
    p = {}
    # Conv weights stored as (K, Cin, Cout)  (PyTorch: (Cout, Cin, K))
    p["w_conv1"] = uniform(keys[0], (K1, Cin, C1), Cin * K1)
    p["b_conv1"] = uniform(keys[1], (1, C1), Cin * K1)
    p["w_conv2"] = uniform(keys[2], (K2, C1, C2), C1 * K2)
    p["b_conv2"] = uniform(keys[3], (1, C2), C1 * K2)
    p["w_t"] = uniform(keys[4], (TF_FEATURES, xt_hidden), TF_FEATURES)
    p["b_t"] = uniform(keys[5], (1, xt_hidden), TF_FEATURES)
    w1 = uniform(keys[6], (Ds + xt_hidden, 512), Ds + xt_hidden)
    p["w1_s"], p["w1_t"] = w1[:Ds], w1[Ds:]     # rows of w1_s in torch order c*L2+l2
    p["b1"] = uniform(keys[7], (1, 512), Ds + xt_hidden)
    p["w2"] = uniform(keys[8], (512, 256), 512)
    p["b2"] = uniform(keys[9], (1, 256), 512)
    p["w3"] = uniform(keys[10], (256, 64), 256)
    p["b3"] = uniform(keys[11], (1, 64), 256)
    p["w_out"] = uniform(keys[12], (64, 1), 64)
    p["b_out"] = uniform(keys[13], (1, 1), 64)
    # eval-mode BatchNorm folded to per-channel scale/shift from synthetic
    # (gamma, beta, running_mean, running_var).
    ki = 14
    for name, dim in [("bn_c1", C1), ("bn_c2", C2),
                      ("bn1", 512), ("bn2", 256), ("bn3", 64)]:
        gamma = jax.random.uniform(keys[ki], (1, dim), jnp.float32, 0.5, 1.5)
        beta = jax.random.uniform(keys[ki + 1], (1, dim), jnp.float32, -0.5, 0.5)
        mean = jax.random.normal(keys[ki + 2], (1, dim), jnp.float32) * 0.1
        var = jax.random.uniform(keys[ki + 3], (1, dim), jnp.float32, 0.5, 1.5)
        ki += 4
        scale = gamma / jnp.sqrt(var + BN_EPS)
        p[f"{name}_scale"] = scale
        p[f"{name}_shift"] = beta - mean * scale
    return p


def pack_params(p):
    """Re-layout parameters for the fused kernel (done once, off the hot path)."""
    cfg = CONFIG
    C2 = cfg["conv2_knum"]
    L2 = cfg["seq_length"] // (cfg["pool1"] * cfg["pool2"])
    K1, Cin, C1 = p["w_conv1"].shape
    kp = {}
    kp["w1c"] = p["w_conv1"].reshape(K1 * Cin, C1)                  # im2col layout
    kp["w2c"] = p["w_conv2"]                                        # (K2, C1, C2)
    # fc1 sequence rows re-blocked: w1s_blocks[l2, c, :] = w1_s[c*L2 + l2, :]
    kp["w1s_blocks"] = jnp.transpose(p["w1_s"].reshape(C2, L2, 512), (1, 0, 2))
    kp["w1_t"] = p["w1_t"]
    kp["w_t"] = p["w_t"]
    kp["w2"] = p["w2"]
    kp["w3"] = p["w3"]
    kp["w_out"] = p["w_out"]
    # Packed bias / BN vectors grouped by width (fewer per-call DMAs).
    kp["vec32"] = jnp.concatenate(
        [p["b_conv1"], p["bn_c1_scale"], p["bn_c1_shift"], p["b_t"]], axis=0)
    kp["vec16"] = jnp.concatenate(
        [p["b_conv2"], p["bn_c2_scale"], p["bn_c2_shift"]], axis=0)
    kp["vec512"] = jnp.concatenate([p["b1"], p["bn1_scale"], p["bn1_shift"]], axis=0)
    kp["vec256"] = jnp.concatenate([p["b2"], p["bn2_scale"], p["bn2_shift"]], axis=0)
    b_out_pad = jnp.zeros((1, 64), jnp.float32).at[0, 0].set(p["b_out"][0, 0])
    kp["vec64"] = jnp.concatenate(
        [p["b3"], p["bn3_scale"], p["bn3_shift"], b_out_pad], axis=0)
    return kp


# ------------------------------ forward (Pallas) -------------------------------
def procnn_forward(kparams, x_s, x_t):
    """x_s: (B, |vocab|, seq_len) NCL (PyTorch layout); x_t: (B, 325)."""
    cfg = CONFIG
    B = x_s.shape[0]
    L = cfg["seq_length"]
    Cin = x_s.shape[1]
    K1 = cfg["conv1_ksize"]
    p1 = cfg["pool1"]
    L1 = L // p1

    # Host-side conv1 im2col (one tiny fused XLA prolog), pool-offset-major:
    # xcol1[j, b*L1 + l1, k*Cin + c] = x_pad[b, p1*l1 + j + k, c]
    xs = jnp.transpose(x_s, (0, 2, 1)).astype(jnp.float32)          # (B, L, Cin)
    xp = jnp.pad(xs, ((0, 0), (K1 // 2, K1 // 2), (0, 0)))          # (B, L+K1-1, Cin)
    cols = jnp.concatenate([xp[:, k:k + L, :] for k in range(K1)], axis=-1)
    xcol1 = jnp.transpose(cols.reshape(B, L1, p1, K1 * Cin),
                          (2, 0, 1, 3)).reshape(p1, B * L1, K1 * Cin)

    G = build_conv2_pool_gather(B)                                  # static constant

    vmem = pl.BlockSpec(memory_space=pltpu.MemorySpace.VMEM)
    return pl.pallas_call(
        procnn_kernel,
        out_shape=jax.ShapeDtypeStruct((B, 1), jnp.float32),
        in_specs=[vmem] * 16,
        out_specs=vmem,
    )(xcol1, x_t.astype(jnp.float32),
      kparams["w1c"], kparams["w2c"], G, kparams["w1s_blocks"],
      kparams["w_t"], kparams["w1_t"], kparams["w2"], kparams["w3"],
      kparams["w_out"],
      kparams["vec32"], kparams["vec16"], kparams["vec512"],
      kparams["vec256"], kparams["vec64"])


# ---------------------------- pure-JAX reference -------------------------------
def procnn_reference(params, x_s, x_t):
    cfg = CONFIG
    relu = lambda v: jnp.maximum(v, 0.0)

    def conv1d(x, w, b):                       # x: (B, L, Cin), w: (K, Cin, Cout)
        K = w.shape[0]
        L = x.shape[1]
        xp = jnp.pad(x, ((0, 0), (K // 2, K // 2), (0, 0)))
        acc = sum(jnp.einsum("blc,co->blo", xp[:, k:k + L, :], w[k])
                  for k in range(K))
        return acc + b

    def pool_bn(x, p, scale, shift):
        B, L, C = x.shape
        y = x.reshape(B, L // p, p, C).max(axis=2)
        return relu(y) * scale + shift

    xs = jnp.transpose(x_s, (0, 2, 1)).astype(jnp.float32)
    xs = conv1d(xs, params["w_conv1"], params["b_conv1"])
    xs = pool_bn(xs, cfg["pool1"], params["bn_c1_scale"], params["bn_c1_shift"])
    xs = conv1d(xs, params["w_conv2"], params["b_conv2"])
    xs = pool_bn(xs, cfg["pool2"], params["bn_c2_scale"], params["bn_c2_shift"])
    B = xs.shape[0]
    xs_flat = jnp.transpose(xs, (0, 2, 1)).reshape(B, -1)   # channel-major flatten
    xt = relu(x_t @ params["w_t"] + params["b_t"])
    h = jnp.concatenate([xs_flat, xt], axis=1)
    w1 = jnp.concatenate([params["w1_s"], params["w1_t"]], axis=0)
    h = relu(h @ w1 + params["b1"]) * params["bn1_scale"] + params["bn1_shift"]
    h = relu(h @ params["w2"] + params["b2"]) * params["bn2_scale"] + params["bn2_shift"]
    h = relu(h @ params["w3"] + params["b3"]) * params["bn3_scale"] + params["bn3_shift"]
    return h @ params["w_out"] + params["b_out"]


# ------------------------------------ main --------------------------------------
if __name__ == "__main__":
    key = jax.random.PRNGKey(0)
    kparam_key, kx, kt = jax.random.split(key, 3)
    params = init_params(kparam_key)
    kparams = pack_params(params)

    B = 8
    # x_s: one-hot protein sequence in PyTorch NCL layout (B, |vocab|, seq_len)
    tokens = jax.random.randint(kx, (B, CONFIG["seq_length"]), 0, len(VOCAB))
    x_s = jnp.transpose(jax.nn.one_hot(tokens, len(VOCAB), dtype=jnp.float32),
                        (0, 2, 1))
    x_t = jax.random.normal(kt, (B, TF_FEATURES), jnp.float32)

    fwd = jax.jit(procnn_forward)
    out = jax.block_until_ready(fwd(kparams, x_s, x_t))
    ref = jax.block_until_ready(procnn_reference(params, x_s, x_t))

    assert out.shape == (B, 1) and out.dtype == jnp.float32
    np.testing.assert_allclose(np.asarray(out), np.asarray(ref),
                               rtol=1e-4, atol=1e-4)
    print("KERNEL_OK")
</pallas_src>

<mosaic_0001>
module attributes {stable_mosaic.version = 11 : i64} {
  func.func @procnn_kernel(%arg0: memref<4x128x100xf32, #tpu.memory_space<vmem>>, %arg1: memref<8x325xf32, #tpu.memory_space<vmem>>, %arg2: memref<100x32xf32, #tpu.memory_space<vmem>>, %arg3: memref<3x32x16xf32, #tpu.memory_space<vmem>>, %arg4: memref<6x64x128xf32, #tpu.memory_space<vmem>>, %arg5: memref<8x16x512xf32, #tpu.memory_space<vmem>>, %arg6: memref<325x32xf32, #tpu.memory_space<vmem>>, %arg7: memref<32x512xf32, #tpu.memory_space<vmem>>, %arg8: memref<512x256xf32, #tpu.memory_space<vmem>>, %arg9: memref<256x64xf32, #tpu.memory_space<vmem>>, %arg10: memref<64x1xf32, #tpu.memory_space<vmem>>, %arg11: memref<4x32xf32, #tpu.memory_space<vmem>>, %arg12: memref<3x16xf32, #tpu.memory_space<vmem>>, %arg13: memref<3x512xf32, #tpu.memory_space<vmem>>, %arg14: memref<3x256xf32, #tpu.memory_space<vmem>>, %arg15: memref<4x64xf32, #tpu.memory_space<vmem>>, %arg16: memref<8x1xf32, #tpu.memory_space<vmem>>) attributes {dimension_semantics = [], scalar_prefetch = 0 : i64, scratch_operands = 0 : i64, tpu.core_type = #tpu.core_type<tc>} {
    %c0 = arith.constant 0 : index
    %c0_0 = arith.constant 0 : index
    %0 = vector.load %arg2[%c0, %c0_0] : memref<100x32xf32, #tpu.memory_space<vmem>>, vector<100x32xf32>
    %c0_1 = arith.constant 0 : index
    %c0_2 = arith.constant 0 : index
    %c0_3 = arith.constant 0 : index
    %1 = vector.load %arg0[%c0_1, %c0_2, %c0_3] : memref<4x128x100xf32, #tpu.memory_space<vmem>>, vector<1x128x100xf32>
    %2 = vector.shape_cast %1 : vector<1x128x100xf32> to vector<128x100xf32>
    %cst = arith.constant dense<0.000000e+00> : vector<128x32xf32>
    %3 = tpu.matmul %2, %0, %cst {dimension_numbers = #tpu.dot_dimension_numbers<[1], [0], [0], [1], [0, 0, 1, 1], [], []>} : vector<128x100xf32>, vector<100x32xf32>, vector<128x32xf32> -> vector<128x32xf32>
    %c1 = arith.constant 1 : index
    %c0_4 = arith.constant 0 : index
    %c0_5 = arith.constant 0 : index
    %4 = vector.load %arg0[%c1, %c0_4, %c0_5] : memref<4x128x100xf32, #tpu.memory_space<vmem>>, vector<1x128x100xf32>
    %5 = vector.shape_cast %4 : vector<1x128x100xf32> to vector<128x100xf32>
    %cst_6 = arith.constant dense<0.000000e+00> : vector<128x32xf32>
    %6 = tpu.matmul %5, %0, %cst_6 {dimension_numbers = #tpu.dot_dimension_numbers<[1], [0], [0], [1], [0, 0, 1, 1], [], []>} : vector<128x100xf32>, vector<100x32xf32>, vector<128x32xf32> -> vector<128x32xf32>
    %7 = arith.maximumf %3, %6 : vector<128x32xf32>
    %c2 = arith.constant 2 : index
    %c0_7 = arith.constant 0 : index
    %c0_8 = arith.constant 0 : index
    %8 = vector.load %arg0[%c2, %c0_7, %c0_8] : memref<4x128x100xf32, #tpu.memory_space<vmem>>, vector<1x128x100xf32>
    %9 = vector.shape_cast %8 : vector<1x128x100xf32> to vector<128x100xf32>
    %cst_9 = arith.constant dense<0.000000e+00> : vector<128x32xf32>
    %10 = tpu.matmul %9, %0, %cst_9 {dimension_numbers = #tpu.dot_dimension_numbers<[1], [0], [0], [1], [0, 0, 1, 1], [], []>} : vector<128x100xf32>, vector<100x32xf32>, vector<128x32xf32> -> vector<128x32xf32>
    %11 = arith.maximumf %7, %10 : vector<128x32xf32>
    %c3 = arith.constant 3 : index
    %c0_10 = arith.constant 0 : index
    %c0_11 = arith.constant 0 : index
    %12 = vector.load %arg0[%c3, %c0_10, %c0_11] : memref<4x128x100xf32, #tpu.memory_space<vmem>>, vector<1x128x100xf32>
    %13 = vector.shape_cast %12 : vector<1x128x100xf32> to vector<128x100xf32>
    %cst_12 = arith.constant dense<0.000000e+00> : vector<128x32xf32>
    %14 = tpu.matmul %13, %0, %cst_12 {dimension_numbers = #tpu.dot_dimension_numbers<[1], [0], [0], [1], [0, 0, 1, 1], [], []>} : vector<128x100xf32>, vector<100x32xf32>, vector<128x32xf32> -> vector<128x32xf32>
    %15 = arith.maximumf %11, %14 : vector<128x32xf32>
    %c0_13 = arith.constant 0 : index
    %c0_14 = arith.constant 0 : index
    %16 = vector.load %arg11[%c0_13, %c0_14] : memref<4x32xf32, #tpu.memory_space<vmem>>, vector<1x32xf32>
    %17 = vector.broadcast %16 : vector<1x32xf32> to vector<128x32xf32>
    %18 = arith.addf %15, %17 : vector<128x32xf32>
    %cst_15 = arith.constant 0.000000e+00 : f32
    %19 = vector.broadcast %cst_15 : f32 to vector<128x32xf32>
    %20 = arith.maximumf %18, %19 : vector<128x32xf32>
    %c1_16 = arith.constant 1 : index
    %c0_17 = arith.constant 0 : index
    %21 = vector.load %arg11[%c1_16, %c0_17] : memref<4x32xf32, #tpu.memory_space<vmem>>, vector<1x32xf32>
    %22 = vector.broadcast %21 : vector<1x32xf32> to vector<128x32xf32>
    %23 = arith.mulf %20, %22 : vector<128x32xf32>
    %c2_18 = arith.constant 2 : index
    %c0_19 = arith.constant 0 : index
    %24 = vector.load %arg11[%c2_18, %c0_19] : memref<4x32xf32, #tpu.memory_space<vmem>>, vector<1x32xf32>
    %25 = vector.broadcast %24 : vector<1x32xf32> to vector<128x32xf32>
    %26 = arith.addf %23, %25 : vector<128x32xf32>
    %c0_20 = arith.constant 0 : index
    %c0_21 = arith.constant 0 : index
    %c0_22 = arith.constant 0 : index
    %27 = vector.load %arg3[%c0_20, %c0_21, %c0_22] : memref<3x32x16xf32, #tpu.memory_space<vmem>>, vector<1x32x16xf32>
    %28 = vector.shape_cast %27 : vector<1x32x16xf32> to vector<32x16xf32>
    %cst_23 = arith.constant dense<0.000000e+00> : vector<128x16xf32>
    %29 = tpu.matmul %26, %28, %cst_23 {dimension_numbers = #tpu.dot_dimension_numbers<[1], [0], [0], [1], [0, 0, 1, 1], [], []>} : vector<128x32xf32>, vector<32x16xf32>, vector<128x16xf32> -> vector<128x16xf32>
    %c1_24 = arith.constant 1 : index
    %c0_25 = arith.constant 0 : index
    %c0_26 = arith.constant 0 : index
    %30 = vector.load %arg3[%c1_24, %c0_25, %c0_26] : memref<3x32x16xf32, #tpu.memory_space<vmem>>, vector<1x32x16xf32>
    %31 = vector.shape_cast %30 : vector<1x32x16xf32> to vector<32x16xf32>
    %cst_27 = arith.constant dense<0.000000e+00> : vector<128x16xf32>
    %32 = tpu.matmul %26, %31, %cst_27 {dimension_numbers = #tpu.dot_dimension_numbers<[1], [0], [0], [1], [0, 0, 1, 1], [], []>} : vector<128x32xf32>, vector<32x16xf32>, vector<128x16xf32> -> vector<128x16xf32>
    %c2_28 = arith.constant 2 : index
    %c0_29 = arith.constant 0 : index
    %c0_30 = arith.constant 0 : index
    %33 = vector.load %arg3[%c2_28, %c0_29, %c0_30] : memref<3x32x16xf32, #tpu.memory_space<vmem>>, vector<1x32x16xf32>
    %34 = vector.shape_cast %33 : vector<1x32x16xf32> to vector<32x16xf32>
    %cst_31 = arith.constant dense<0.000000e+00> : vector<128x16xf32>
    %35 = tpu.matmul %26, %34, %cst_31 {dimension_numbers = #tpu.dot_dimension_numbers<[1], [0], [0], [1], [0, 0, 1, 1], [], []>} : vector<128x32xf32>, vector<32x16xf32>, vector<128x16xf32> -> vector<128x16xf32>
    %c0_32 = arith.constant 0 : index
    %c0_33 = arith.constant 0 : index
    %c0_34 = arith.constant 0 : index
    %36 = vector.load %arg4[%c0_32, %c0_33, %c0_34] : memref<6x64x128xf32, #tpu.memory_space<vmem>>, vector<1x64x128xf32>
    %37 = vector.shape_cast %36 : vector<1x64x128xf32> to vector<64x128xf32>
    %cst_35 = arith.constant dense<0.000000e+00> : vector<64x16xf32>
    %38 = tpu.matmul %37, %29, %cst_35 {dimension_numbers = #tpu.dot_dimension_numbers<[1], [0], [0], [1], [0, 0, 1, 1], [], []>} : vector<64x128xf32>, vector<128x16xf32>, vector<64x16xf32> -> vector<64x16xf32>
    %c1_36 = arith.constant 1 : index
    %c0_37 = arith.constant 0 : index
    %c0_38 = arith.constant 0 : index
    %39 = vector.load %arg4[%c1_36, %c0_37, %c0_38] : memref<6x64x128xf32, #tpu.memory_space<vmem>>, vector<1x64x128xf32>
    %40 = vector.shape_cast %39 : vector<1x64x128xf32> to vector<64x128xf32>
    %cst_39 = arith.constant dense<0.000000e+00> : vector<64x16xf32>
    %41 = tpu.matmul %40, %32, %cst_39 {dimension_numbers = #tpu.dot_dimension_numbers<[1], [0], [0], [1], [0, 0, 1, 1], [], []>} : vector<64x128xf32>, vector<128x16xf32>, vector<64x16xf32> -> vector<64x16xf32>
    %42 = arith.addf %38, %41 : vector<64x16xf32>
    %c2_40 = arith.constant 2 : index
    %c0_41 = arith.constant 0 : index
    %c0_42 = arith.constant 0 : index
    %43 = vector.load %arg4[%c2_40, %c0_41, %c0_42] : memref<6x64x128xf32, #tpu.memory_space<vmem>>, vector<1x64x128xf32>
    %44 = vector.shape_cast %43 : vector<1x64x128xf32> to vector<64x128xf32>
    %cst_43 = arith.constant dense<0.000000e+00> : vector<64x16xf32>
    %45 = tpu.matmul %44, %35, %cst_43 {dimension_numbers = #tpu.dot_dimension_numbers<[1], [0], [0], [1], [0, 0, 1, 1], [], []>} : vector<64x128xf32>, vector<128x16xf32>, vector<64x16xf32> -> vector<64x16xf32>
    %46 = arith.addf %42, %45 : vector<64x16xf32>
    %c3_44 = arith.constant 3 : index
    %c0_45 = arith.constant 0 : index
    %c0_46 = arith.constant 0 : index
    %47 = vector.load %arg4[%c3_44, %c0_45, %c0_46] : memref<6x64x128xf32, #tpu.memory_space<vmem>>, vector<1x64x128xf32>
    %48 = vector.shape_cast %47 : vector<1x64x128xf32> to vector<64x128xf32>
    %cst_47 = arith.constant dense<0.000000e+00> : vector<64x16xf32>
    %49 = tpu.matmul %48, %29, %cst_47 {dimension_numbers = #tpu.dot_dimension_numbers<[1], [0], [0], [1], [0, 0, 1, 1], [], []>} : vector<64x128xf32>, vector<128x16xf32>, vector<64x16xf32> -> vector<64x16xf32>
    %c4 = arith.constant 4 : index
    %c0_48 = arith.constant 0 : index
    %c0_49 = arith.constant 0 : index
    %50 = vector.load %arg4[%c4, %c0_48, %c0_49] : memref<6x64x128xf32, #tpu.memory_space<vmem>>, vector<1x64x128xf32>
    %51 = vector.shape_cast %50 : vector<1x64x128xf32> to vector<64x128xf32>
    %cst_50 = arith.constant dense<0.000000e+00> : vector<64x16xf32>
    %52 = tpu.matmul %51, %32, %cst_50 {dimension_numbers = #tpu.dot_dimension_numbers<[1], [0], [0], [1], [0, 0, 1, 1], [], []>} : vector<64x128xf32>, vector<128x16xf32>, vector<64x16xf32> -> vector<64x16xf32>
    %53 = arith.addf %49, %52 : vector<64x16xf32>
    %c5 = arith.constant 5 : index
    %c0_51 = arith.constant 0 : index
    %c0_52 = arith.constant 0 : index
    %54 = vector.load %arg4[%c5, %c0_51, %c0_52] : memref<6x64x128xf32, #tpu.memory_space<vmem>>, vector<1x64x128xf32>
    %55 = vector.shape_cast %54 : vector<1x64x128xf32> to vector<64x128xf32>
    %cst_53 = arith.constant dense<0.000000e+00> : vector<64x16xf32>
    %56 = tpu.matmul %55, %35, %cst_53 {dimension_numbers = #tpu.dot_dimension_numbers<[1], [0], [0], [1], [0, 0, 1, 1], [], []>} : vector<64x128xf32>, vector<128x16xf32>, vector<64x16xf32> -> vector<64x16xf32>
    %57 = arith.addf %53, %56 : vector<64x16xf32>
    %58 = arith.maximumf %46, %57 : vector<64x16xf32>
    %c0_54 = arith.constant 0 : index
    %c0_55 = arith.constant 0 : index
    %59 = vector.load %arg12[%c0_54, %c0_55] : memref<3x16xf32, #tpu.memory_space<vmem>>, vector<1x16xf32>
    %60 = vector.broadcast %59 : vector<1x16xf32> to vector<64x16xf32>
    %61 = arith.addf %58, %60 : vector<64x16xf32>
    %cst_56 = arith.constant 0.000000e+00 : f32
    %62 = vector.broadcast %cst_56 : f32 to vector<64x16xf32>
    %63 = arith.maximumf %61, %62 : vector<64x16xf32>
    %c1_57 = arith.constant 1 : index
    %c0_58 = arith.constant 0 : index
    %64 = vector.load %arg12[%c1_57, %c0_58] : memref<3x16xf32, #tpu.memory_space<vmem>>, vector<1x16xf32>
    %65 = vector.broadcast %64 : vector<1x16xf32> to vector<64x16xf32>
    %66 = arith.mulf %63, %65 : vector<64x16xf32>
    %c2_59 = arith.constant 2 : index
    %c0_60 = arith.constant 0 : index
    %67 = vector.load %arg12[%c2_59, %c0_60] : memref<3x16xf32, #tpu.memory_space<vmem>>, vector<1x16xf32>
    %68 = vector.broadcast %67 : vector<1x16xf32> to vector<64x16xf32>
    %69 = arith.addf %66, %68 : vector<64x16xf32>
    %c0_61 = arith.constant 0 : index
    %c0_62 = arith.constant 0 : index
    %70 = vector.load %arg1[%c0_61, %c0_62] : memref<8x325xf32, #tpu.memory_space<vmem>>, vector<8x325xf32>
    %c0_63 = arith.constant 0 : index
    %c0_64 = arith.constant 0 : index
    %71 = vector.load %arg6[%c0_63, %c0_64] : memref<325x32xf32, #tpu.memory_space<vmem>>, vector<325x32xf32>
    %cst_65 = arith.constant dense<0.000000e+00> : vector<8x32xf32>
    %72 = tpu.matmul %70, %71, %cst_65 {dimension_numbers = #tpu.dot_dimension_numbers<[1], [0], [0], [1], [0, 0, 1, 1], [], []>} : vector<8x325xf32>, vector<325x32xf32>, vector<8x32xf32> -> vector<8x32xf32>
    %c3_66 = arith.constant 3 : index
    %c0_67 = arith.constant 0 : index
    %73 = vector.load %arg11[%c3_66, %c0_67] : memref<4x32xf32, #tpu.memory_space<vmem>>, vector<1x32xf32>
    %74 = vector.broadcast %73 : vector<1x32xf32> to vector<8x32xf32>
    %75 = arith.addf %72, %74 : vector<8x32xf32>
    %cst_68 = arith.constant 0.000000e+00 : f32
    %76 = vector.broadcast %cst_68 : f32 to vector<8x32xf32>
    %77 = arith.maximumf %75, %76 : vector<8x32xf32>
    %c0_69 = arith.constant 0 : index
    %c0_70 = arith.constant 0 : index
    %78 = vector.load %arg7[%c0_69, %c0_70] : memref<32x512xf32, #tpu.memory_space<vmem>>, vector<32x512xf32>
    %cst_71 = arith.constant dense<0.000000e+00> : vector<8x512xf32>
    %79 = tpu.matmul %77, %78, %cst_71 {dimension_numbers = #tpu.dot_dimension_numbers<[1], [0], [0], [1], [0, 0, 1, 1], [], []>} : vector<8x32xf32>, vector<32x512xf32>, vector<8x512xf32> -> vector<8x512xf32>
    %c0_72 = arith.constant 0 : index
    %c0_73 = arith.constant 0 : index
    %80 = vector.load %arg13[%c0_72, %c0_73] : memref<3x512xf32, #tpu.memory_space<vmem>>, vector<1x512xf32>
    %81 = vector.broadcast %80 : vector<1x512xf32> to vector<8x512xf32>
    %82 = arith.addf %79, %81 : vector<8x512xf32>
    %83 = vector.extract_strided_slice %69 {offsets = [0, 0], sizes = [8, 16], strides = [1, 1]} : vector<64x16xf32> to vector<8x16xf32>
    %c0_74 = arith.constant 0 : index
    %c0_75 = arith.constant 0 : index
    %c0_76 = arith.constant 0 : index
    %84 = vector.load %arg5[%c0_74, %c0_75, %c0_76] : memref<8x16x512xf32, #tpu.memory_space<vmem>>, vector<1x16x512xf32>
    %85 = vector.shape_cast %84 : vector<1x16x512xf32> to vector<16x512xf32>
    %cst_77 = arith.constant dense<0.000000e+00> : vector<8x512xf32>
    %86 = tpu.matmul %83, %85, %cst_77 {dimension_numbers = #tpu.dot_dimension_numbers<[1], [0], [0], [1], [0, 0, 1, 1], [], []>} : vector<8x16xf32>, vector<16x512xf32>, vector<8x512xf32> -> vector<8x512xf32>
    %87 = arith.addf %82, %86 : vector<8x512xf32>
    %88 = vector.extract_strided_slice %69 {offsets = [8, 0], sizes = [8, 16], strides = [1, 1]} : vector<64x16xf32> to vector<8x16xf32>
    %c1_78 = arith.constant 1 : index
    %c0_79 = arith.constant 0 : index
    %c0_80 = arith.constant 0 : index
    %89 = vector.load %arg5[%c1_78, %c0_79, %c0_80] : memref<8x16x512xf32, #tpu.memory_space<vmem>>, vector<1x16x512xf32>
    %90 = vector.shape_cast %89 : vector<1x16x512xf32> to vector<16x512xf32>
    %cst_81 = arith.constant dense<0.000000e+00> : vector<8x512xf32>
    %91 = tpu.matmul %88, %90, %cst_81 {dimension_numbers = #tpu.dot_dimension_numbers<[1], [0], [0], [1], [0, 0, 1, 1], [], []>} : vector<8x16xf32>, vector<16x512xf32>, vector<8x512xf32> -> vector<8x512xf32>
    %92 = arith.addf %87, %91 : vector<8x512xf32>
    %93 = vector.extract_strided_slice %69 {offsets = [16, 0], sizes = [8, 16], strides = [1, 1]} : vector<64x16xf32> to vector<8x16xf32>
    %c2_82 = arith.constant 2 : index
    %c0_83 = arith.constant 0 : index
    %c0_84 = arith.constant 0 : index
    %94 = vector.load %arg5[%c2_82, %c0_83, %c0_84] : memref<8x16x512xf32, #tpu.memory_space<vmem>>, vector<1x16x512xf32>
    %95 = vector.shape_cast %94 : vector<1x16x512xf32> to vector<16x512xf32>
    %cst_85 = arith.constant dense<0.000000e+00> : vector<8x512xf32>
    %96 = tpu.matmul %93, %95, %cst_85 {dimension_numbers = #tpu.dot_dimension_numbers<[1], [0], [0], [1], [0, 0, 1, 1], [], []>} : vector<8x16xf32>, vector<16x512xf32>, vector<8x512xf32> -> vector<8x512xf32>
    %97 = arith.addf %92, %96 : vector<8x512xf32>
    %98 = vector.extract_strided_slice %69 {offsets = [24, 0], sizes = [8, 16], strides = [1, 1]} : vector<64x16xf32> to vector<8x16xf32>
    %c3_86 = arith.constant 3 : index
    %c0_87 = arith.constant 0 : index
    %c0_88 = arith.constant 0 : index
    %99 = vector.load %arg5[%c3_86, %c0_87, %c0_88] : memref<8x16x512xf32, #tpu.memory_space<vmem>>, vector<1x16x512xf32>
    %100 = vector.shape_cast %99 : vector<1x16x512xf32> to vector<16x512xf32>
    %cst_89 = arith.constant dense<0.000000e+00> : vector<8x512xf32>
    %101 = tpu.matmul %98, %100, %cst_89 {dimension_numbers = #tpu.dot_dimension_numbers<[1], [0], [0], [1], [0, 0, 1, 1], [], []>} : vector<8x16xf32>, vector<16x512xf32>, vector<8x512xf32> -> vector<8x512xf32>
    %102 = arith.addf %97, %101 : vector<8x512xf32>
    %103 = vector.extract_strided_slice %69 {offsets = [32, 0], sizes = [8, 16], strides = [1, 1]} : vector<64x16xf32> to vector<8x16xf32>
    %c4_90 = arith.constant 4 : index
    %c0_91 = arith.constant 0 : index
    %c0_92 = arith.constant 0 : index
    %104 = vector.load %arg5[%c4_90, %c0_91, %c0_92] : memref<8x16x512xf32, #tpu.memory_space<vmem>>, vector<1x16x512xf32>
    %105 = vector.shape_cast %104 : vector<1x16x512xf32> to vector<16x512xf32>
    %cst_93 = arith.constant dense<0.000000e+00> : vector<8x512xf32>
    %106 = tpu.matmul %103, %105, %cst_93 {dimension_numbers = #tpu.dot_dimension_numbers<[1], [0], [0], [1], [0, 0, 1, 1], [], []>} : vector<8x16xf32>, vector<16x512xf32>, vector<8x512xf32> -> vector<8x512xf32>
    %107 = arith.addf %102, %106 : vector<8x512xf32>
    %108 = vector.extract_strided_slice %69 {offsets = [40, 0], sizes = [8, 16], strides = [1, 1]} : vector<64x16xf32> to vector<8x16xf32>
    %c5_94 = arith.constant 5 : index
    %c0_95 = arith.constant 0 : index
    %c0_96 = arith.constant 0 : index
    %109 = vector.load %arg5[%c5_94, %c0_95, %c0_96] : memref<8x16x512xf32, #tpu.memory_space<vmem>>, vector<1x16x512xf32>
    %110 = vector.shape_cast %109 : vector<1x16x512xf32> to vector<16x512xf32>
    %cst_97 = arith.constant dense<0.000000e+00> : vector<8x512xf32>
    %111 = tpu.matmul %108, %110, %cst_97 {dimension_numbers = #tpu.dot_dimension_numbers<[1], [0], [0], [1], [0, 0, 1, 1], [], []>} : vector<8x16xf32>, vector<16x512xf32>, vector<8x512xf32> -> vector<8x512xf32>
    %112 = arith.addf %107, %111 : vector<8x512xf32>
    %113 = vector.extract_strided_slice %69 {offsets = [48, 0], sizes = [8, 16], strides = [1, 1]} : vector<64x16xf32> to vector<8x16xf32>
    %c6 = arith.constant 6 : index
    %c0_98 = arith.constant 0 : index
    %c0_99 = arith.constant 0 : index
    %114 = vector.load %arg5[%c6, %c0_98, %c0_99] : memref<8x16x512xf32, #tpu.memory_space<vmem>>, vector<1x16x512xf32>
    %115 = vector.shape_cast %114 : vector<1x16x512xf32> to vector<16x512xf32>
    %cst_100 = arith.constant dense<0.000000e+00> : vector<8x512xf32>
    %116 = tpu.matmul %113, %115, %cst_100 {dimension_numbers = #tpu.dot_dimension_numbers<[1], [0], [0], [1], [0, 0, 1, 1], [], []>} : vector<8x16xf32>, vector<16x512xf32>, vector<8x512xf32> -> vector<8x512xf32>
    %117 = arith.addf %112, %116 : vector<8x512xf32>
    %118 = vector.extract_strided_slice %69 {offsets = [56, 0], sizes = [8, 16], strides = [1, 1]} : vector<64x16xf32> to vector<8x16xf32>
    %c7 = arith.constant 7 : index
    %c0_101 = arith.constant 0 : index
    %c0_102 = arith.constant 0 : index
    %119 = vector.load %arg5[%c7, %c0_101, %c0_102] : memref<8x16x512xf32, #tpu.memory_space<vmem>>, vector<1x16x512xf32>
    %120 = vector.shape_cast %119 : vector<1x16x512xf32> to vector<16x512xf32>
    %cst_103 = arith.constant dense<0.000000e+00> : vector<8x512xf32>
    %121 = tpu.matmul %118, %120, %cst_103 {dimension_numbers = #tpu.dot_dimension_numbers<[1], [0], [0], [1], [0, 0, 1, 1], [], []>} : vector<8x16xf32>, vector<16x512xf32>, vector<8x512xf32> -> vector<8x512xf32>
    %122 = arith.addf %117, %121 : vector<8x512xf32>
    %cst_104 = arith.constant 0.000000e+00 : f32
    %123 = vector.broadcast %cst_104 : f32 to vector<8x512xf32>
    %124 = arith.maximumf %122, %123 : vector<8x512xf32>
    %c1_105 = arith.constant 1 : index
    %c0_106 = arith.constant 0 : index
    %125 = vector.load %arg13[%c1_105, %c0_106] : memref<3x512xf32, #tpu.memory_space<vmem>>, vector<1x512xf32>
    %126 = vector.broadcast %125 : vector<1x512xf32> to vector<8x512xf32>
    %127 = arith.mulf %124, %126 : vector<8x512xf32>
    %c2_107 = arith.constant 2 : index
    %c0_108 = arith.constant 0 : index
    %128 = vector.load %arg13[%c2_107, %c0_108] : memref<3x512xf32, #tpu.memory_space<vmem>>, vector<1x512xf32>
    %129 = vector.broadcast %128 : vector<1x512xf32> to vector<8x512xf32>
    %130 = arith.addf %127, %129 : vector<8x512xf32>
    %c0_109 = arith.constant 0 : index
    %c0_110 = arith.constant 0 : index
    %131 = vector.load %arg8[%c0_109, %c0_110] : memref<512x256xf32, #tpu.memory_space<vmem>>, vector<512x256xf32>
    %cst_111 = arith.constant dense<0.000000e+00> : vector<8x256xf32>
    %132 = tpu.matmul %130, %131, %cst_111 {dimension_numbers = #tpu.dot_dimension_numbers<[1], [0], [0], [1], [0, 0, 1, 1], [], []>} : vector<8x512xf32>, vector<512x256xf32>, vector<8x256xf32> -> vector<8x256xf32>
    %c0_112 = arith.constant 0 : index
    %c0_113 = arith.constant 0 : index
    %133 = vector.load %arg14[%c0_112, %c0_113] : memref<3x256xf32, #tpu.memory_space<vmem>>, vector<1x256xf32>
    %134 = vector.broadcast %133 : vector<1x256xf32> to vector<8x256xf32>
    %135 = arith.addf %132, %134 : vector<8x256xf32>
    %cst_114 = arith.constant 0.000000e+00 : f32
    %136 = vector.broadcast %cst_114 : f32 to vector<8x256xf32>
    %137 = arith.maximumf %135, %136 : vector<8x256xf32>
    %c1_115 = arith.constant 1 : index
    %c0_116 = arith.constant 0 : index
    %138 = vector.load %arg14[%c1_115, %c0_116] : memref<3x256xf32, #tpu.memory_space<vmem>>, vector<1x256xf32>
    %139 = vector.broadcast %138 : vector<1x256xf32> to vector<8x256xf32>
    %140 = arith.mulf %137, %139 : vector<8x256xf32>
    %c2_117 = arith.constant 2 : index
    %c0_118 = arith.constant 0 : index
    %141 = vector.load %arg14[%c2_117, %c0_118] : memref<3x256xf32, #tpu.memory_space<vmem>>, vector<1x256xf32>
    %142 = vector.broadcast %141 : vector<1x256xf32> to vector<8x256xf32>
    %143 = arith.addf %140, %142 : vector<8x256xf32>
    %c0_119 = arith.constant 0 : index
    %c0_120 = arith.constant 0 : index
    %144 = vector.load %arg9[%c0_119, %c0_120] : memref<256x64xf32, #tpu.memory_space<vmem>>, vector<256x64xf32>
    %cst_121 = arith.constant dense<0.000000e+00> : vector<8x64xf32>
    %145 = tpu.matmul %143, %144, %cst_121 {dimension_numbers = #tpu.dot_dimension_numbers<[1], [0], [0], [1], [0, 0, 1, 1], [], []>} : vector<8x256xf32>, vector<256x64xf32>, vector<8x64xf32> -> vector<8x64xf32>
    %c0_122 = arith.constant 0 : index
    %c0_123 = arith.constant 0 : index
    %146 = vector.load %arg15[%c0_122, %c0_123] : memref<4x64xf32, #tpu.memory_space<vmem>>, vector<1x64xf32>
    %147 = vector.broadcast %146 : vector<1x64xf32> to vector<8x64xf32>
    %148 = arith.addf %145, %147 : vector<8x64xf32>
    %cst_124 = arith.constant 0.000000e+00 : f32
    %149 = vector.broadcast %cst_124 : f32 to vector<8x64xf32>
    %150 = arith.maximumf %148, %149 : vector<8x64xf32>
    %c1_125 = arith.constant 1 : index
    %c0_126 = arith.constant 0 : index
    %151 = vector.load %arg15[%c1_125, %c0_126] : memref<4x64xf32, #tpu.memory_space<vmem>>, vector<1x64xf32>
    %152 = vector.broadcast %151 : vector<1x64xf32> to vector<8x64xf32>
    %153 = arith.mulf %150, %152 : vector<8x64xf32>
    %c2_127 = arith.constant 2 : index
    %c0_128 = arith.constant 0 : index
    %154 = vector.load %arg15[%c2_127, %c0_128] : memref<4x64xf32, #tpu.memory_space<vmem>>, vector<1x64xf32>
    %155 = vector.broadcast %154 : vector<1x64xf32> to vector<8x64xf32>
    %156 = arith.addf %153, %155 : vector<8x64xf32>
    %c0_129 = arith.constant 0 : index
    %c0_130 = arith.constant 0 : index
    %157 = vector.load %arg10[%c0_129, %c0_130] : memref<64x1xf32, #tpu.memory_space<vmem>>, vector<64x1xf32>
    %cst_131 = arith.constant dense<0.000000e+00> : vector<8x1xf32>
    %158 = tpu.matmul %156, %157, %cst_131 {dimension_numbers = #tpu.dot_dimension_numbers<[1], [0], [0], [1], [0, 0, 1, 1], [], []>} : vector<8x64xf32>, vector<64x1xf32>, vector<8x1xf32> -> vector<8x1xf32>
    %c3_132 = arith.constant 3 : index
    %c0_133 = arith.constant 0 : index
    %159 = vector.load %arg15[%c3_132, %c0_133] : memref<4x64xf32, #tpu.memory_space<vmem>>, vector<1x1xf32>
    %160 = vector.broadcast %159 : vector<1x1xf32> to vector<8x1xf32>
    %161 = arith.addf %158, %160 : vector<8x1xf32>
    %c0_134 = arith.constant 0 : index
    %c0_135 = arith.constant 0 : index
    %162 = vector.load %arg16[%c0_134, %c0_135] : memref<8x1xf32, #tpu.memory_space<vmem>>, vector<8x1xf32>
    tpu.vector_store %arg16[%c0_134, %c0_135], %161 {strides = array<i32>} : memref<8x1xf32, #tpu.memory_space<vmem>>, vector<8x1xf32>,
    return
  }
}

</mosaic_0001>

<bundles_post_ra>
// kernel: procnn_forward.1
= control target key start
LH: loop header
LB: loop body
LE: loop exit
PB: predicated region body
PF: predicated region fallthrough
CT: control target
= control target key end

     0   :  { %vm82_vm0 = vcmask 818176   ;;  %vm131_vm1 = vcmask 1043456   ;;  %vm1041_vm2 = vcmask 261120   ;;  %vm6520_vm3 = vmmov 0   ;;  %s8621_s2 = inlined_call_operand.vmem [shape: f32[100,32], index: 2, kind: input, shape index: {}]   ;;  %s8622_s0 = inlined_call_operand.vmem [shape: f32[4,128,100], index: 0, kind: input, shape index: {}]   ;;  %s8623_s3 = inlined_call_operand.vmem [shape: f32[3,32,16], index: 3, kind: input, shape index: {}]   ;;  %s8624_s11 = inlined_call_operand.vmem [shape: f32[4,32], index: 11, kind: input, shape index: {}]   ;;  %s8625_s4 = inlined_call_operand.vmem [shape: f32[6,64,128], index: 4, kind: input, shape index: {}]   ;;  %s8626_s6 = inlined_call_operand.vmem [shape: f32[325,32], index: 6, kind: input, shape index: {}]   ;;  %s8627_s1 = inlined_call_operand.vmem [shape: f32[8,325], index: 1, kind: input, shape index: {}]   ;;  %s8628_s7 = inlined_call_operand.vmem [shape: f32[32,512], index: 7, kind: input, shape index: {}]   ;;  %s8629_s8 = inlined_call_operand.vmem [shape: f32[512,256], index: 8, kind: input, shape index: {}]   ;;  %s8630_s12 = inlined_call_operand.vmem [shape: f32[3,16], index: 12, kind: input, shape index: {}]   ;;  %s8631_s5 = inlined_call_operand.vmem [shape: f32[8,16,512], index: 5, kind: input, shape index: {}]   ;;  %s8632_s9 = inlined_call_operand.vmem [shape: f32[256,64], index: 9, kind: input, shape index: {}]   ;;  %s8633_s13 = inlined_call_operand.vmem [shape: f32[3,512], index: 13, kind: input, shape index: {}]   ;;  %s8634_s14 = inlined_call_operand.vmem [shape: f32[3,256], index: 14, kind: input, shape index: {}]   ;;  %s8635_s10 = inlined_call_operand.vmem [shape: f32[64,1], index: 10, kind: input, shape index: {}]   ;;  %s8636_s15 = inlined_call_operand.vmem [shape: f32[4,64], index: 15, kind: input, shape index: {}]   ;;  %s8637_s16 = inlined_call_operand.vmem [shape: f32[8,1], index: 16, kind: output, shape index: {}]  }
   0x1   :  { %8639 = sst [smem:[#allocation2_spill]] %s8621_s2  ;;  %v66_v8 = vld [vmem:[%s8622_s0] sm:$0xff]  ;;  %v67_v21 = vld [vmem:[%s8622_s0 + $0x8] sm:$0xff]  ;;  %v68_v23 = vld [vmem:[%s8622_s0 + $0x10] sm:$0xff]  ;;  %vm2342_vm4 = vcmask 1044480   ;;  %vm2338_vm5 = vcmask 564224  }
   0x2   :  { %s8640_s23 = sld [smem:[#allocation2_spill]]  ;;  %v4536_v9 = vld [vmem:[%s8622_s0 + $0x80] sm:$0xff]  ;;  %5258 = vmatprep.mubr.msk.f32.mxu0 %vm82_vm0, %v66_v8  ;;  %v4537_v22 = vld [vmem:[%s8622_s0 + $0x88] sm:$0xff]  ;;  %v4538_v24 = vld [vmem:[%s8622_s0 + $0x90] sm:$0xff]  ;;  %vm2678_vm6 = vcmask 130048   ;;  %vm4439_vm7 = vcmask 523264  }
   0x3   :  { %5308 = vmatprep.mubr.msk.f32.mxu1 %vm82_vm0, %v4536_v9  ;;  %v69_v25 = vld [vmem:[%s8622_s0 + $0x18] sm:$0xff]  ;;  %v70_v27 = vld [vmem:[%s8622_s0 + $0x20] sm:$0xff]  ;;  %v71_v29 = vld [vmem:[%s8622_s0 + $0x28] sm:$0xff]  ;;  %vm4513_vm8 = vcmask 7168  }
   0x4   :  { %v4539_v26 = vld [vmem:[%s8622_s0 + $0x98] sm:$0xff]  ;;  %v4540_v28 = vld [vmem:[%s8622_s0 + $0xa0] sm:$0xff]  ;;  %v4541_v30 = vld [vmem:[%s8622_s0 + $0xa8] sm:$0xff] }
   0x5   :  { %v72_v31 = vld [vmem:[%s8622_s0 + $0x30] sm:$0xff]  ;;  %v73_v33 = vld [vmem:[%s8622_s0 + $0x38] sm:$0xff]  ;;  %v74_v35 = vld [vmem:[%s8622_s0 + $0x40] sm:$0xff] }
   0x6   :  { %v4542_v32 = vld [vmem:[%s8622_s0 + $0xb0] sm:$0xff]  ;;  %v4543_v34 = vld [vmem:[%s8622_s0 + $0xb8] sm:$0xff]  ;;  %v4544_v36 = vld [vmem:[%s8622_s0 + $0xc0] sm:$0xff] }
   0x7   :  { %v75_v37 = vld [vmem:[%s8622_s0 + $0x48] sm:$0xff]  ;;  %v76_v39 = vld [vmem:[%s8622_s0 + $0x50] sm:$0xff]  ;;  %v77_v41 = vld [vmem:[%s8622_s0 + $0x58] sm:$0xff] }
   0x8   :  { %v53_v0 = vld [vmem:[%s8640_s23] sm:$0xff]  ;;  %v54_v1 = vld [vmem:[%s8640_s23 + $0x8] sm:$0xff]  ;;  %v55_v2 = vld [vmem:[%s8640_s23 + $0x10] sm:$0xff] }
   0x9   :  { %v6616_v3 = vpack.c.bf16 %v54_v1, %v53_v0  ;;  %v56_v4 = vld [vmem:[%s8640_s23 + $0x18] sm:$0xff]  ;;  %v57_v6 = vld [vmem:[%s8640_s23 + $0x20] sm:$0xff]  ;;  %v58_v7 = vld [vmem:[%s8640_s23 + $0x28] sm:$0xff] }
   0xa   :  { %v6621_v5 = vpack.c.bf16 %v56_v4, %v55_v2  ;;  %v6641_v10 = vpack.c.bf16 %v58_v7, %v57_v6  ;;  %v59_v11 = vld [vmem:[%s8640_s23 + $0x30] sm:$0xff]  ;;  %v60_v12 = vld [vmem:[%s8640_s23 + $0x38] sm:$0xff]  ;;  %v61_v14 = vld [vmem:[%s8640_s23 + $0x40] sm:$0xff] }
   0xb   :  { %5833 = vmatprep.subr.bf16.mxu0 %v6616_v3  ;;  %5857 = vmatprep.subr.bf16.mxu1 %v6616_v3  ;;  %v6655_v13 = vpack.c.bf16 %v60_v12, %v59_v11  ;;  %v62_v15 = vld [vmem:[%s8640_s23 + $0x48] sm:$0xff]  ;;  %v63_v17 = vld [vmem:[%s8640_s23 + $0x50] sm:$0xff]  ;;  %v64_v18 = vld [vmem:[%s8640_s23 + $0x58] sm:$0xff] }
   0xc   :  { %5835 = vmatpush3.bf16.msra.mxu0 %v6616_v3  ;;  %5859 = vmatpush3.bf16.msra.mxu1 %v6616_v3  ;;  %v6667_v16 = vpack.c.bf16 %v62_v15, %v61_v14  ;;  %v6679_v19 = vpack.c.bf16 %v64_v18, %v63_v17  ;;  %v6688_v20 = vld [vmem:[%s8640_s23 + $0x60] sm:$0xf]  ;;  %v4545_v38 = vld [vmem:[%s8622_s0 + $0xc8] sm:$0xff]  ;;  %v4546_v40 = vld [vmem:[%s8622_s0 + $0xd0] sm:$0xff] }
   0xd   :  { %5837 = vmatprep.subr.bf16.mxu0 %v6621_v5  ;;  %5861 = vmatprep.subr.bf16.mxu1 %v6621_v5  ;;  %v4547_v42 = vld [vmem:[%s8622_s0 + $0xd8] sm:$0xff]  ;;  %v78_v43 = vld [vmem:[%s8622_s0 + $0x60] sm:$0xff]  ;;  %v79_v45 = vld [vmem:[%s8622_s0 + $0x68] sm:$0xff] }
   0xe   :  { %v4548_v44 = vld [vmem:[%s8622_s0 + $0xe0] sm:$0xff]  ;;  %v4549_v46 = vld [vmem:[%s8622_s0 + $0xe8] sm:$0xff]  ;;  %v80_v47 = vld [vmem:[%s8622_s0 + $0x70] sm:$0xff] }
   0xf   :  { %v4550_v48 = vld [vmem:[%s8622_s0 + $0xf0] sm:$0xff]  ;;  %v81_v49 = vld [vmem:[%s8622_s0 + $0x78] sm:$0xff]  ;;  %v4569_v51 = vld [vmem:[%s8622_s0 + $0x100] sm:$0xff] }
  0x10   :  { %5839 = vmatpush3.bf16.msra.mxu0 %v6621_v5  ;;  %5863 = vmatpush3.bf16.msra.mxu1 %v6621_v5  ;;  %v4551_v50 = vld [vmem:[%s8622_s0 + $0xf8] sm:$0xff]  ;;  %v4602_v52 = vld [vmem:[%s8622_s0 + $0x180] sm:$0xff]  ;;  %v4570_v53 = vld [vmem:[%s8622_s0 + $0x108] sm:$0xff] }
  0x11   :  { %5841 = vmatprep.subr.bf16.mxu0 %v6641_v10  ;;  %5865 = vmatprep.subr.bf16.mxu1 %v6641_v10  ;;  %v4603_v54 = vld [vmem:[%s8622_s0 + $0x188] sm:$0xff]  ;;  %v4571_v55 = vld [vmem:[%s8622_s0 + $0x110] sm:$0xff]  ;;  %v4572_v57 = vld [vmem:[%s8622_s0 + $0x118] sm:$0xff] }
  0x12   :  { %v4604_v56 = vld [vmem:[%s8622_s0 + $0x190] sm:$0xff]  ;;  %v4605_v58 = vld [vmem:[%s8622_s0 + $0x198] sm:$0xff]  ;;  %v4573_v59 = vld [vmem:[%s8622_s0 + $0x120] sm:$0xff] }
  0x13   :  { %v4606_v60 = vld [vmem:[%s8622_s0 + $0x1a0] sm:$0xff]  ;;  %v4574_v61 = vld [vmem:[%s8622_s0 + $0x128] sm:$0xff]  ;;  %v4575_v63 = vld [vmem:[%s8622_s0 + $0x130] sm:$0xff] }
  0x14   :  { %5843 = vmatpush3.bf16.msra.mxu0 %v6641_v10  ;;  %5867 = vmatpush3.bf16.msra.mxu1 %v6641_v10  ;;  %v4607_v62 = vld [vmem:[%s8622_s0 + $0x1a8] sm:$0xff]  ;;  %v4608_v0 = vld [vmem:[%s8622_s0 + $0x1b0] sm:$0xff]  ;;  %v4576_v1 = vld [vmem:[%s8622_s0 + $0x138] sm:$0xff] }
  0x15   :  { %5845 = vmatprep.subr.bf16.mxu0 %v6655_v13  ;;  %5869 = vmatprep.subr.bf16.mxu1 %v6655_v13  ;;  %v4609_v2 = vld [vmem:[%s8622_s0 + $0x1b8] sm:$0xff]  ;;  %v4610_v4 = vld [vmem:[%s8622_s0 + $0x1c0] sm:$0xff]  ;;  %v4611_v6 = vld [vmem:[%s8622_s0 + $0x1c8] sm:$0xff] }
  0x16   :  { %v4579_v7 = vld [vmem:[%s8622_s0 + $0x150] sm:$0xff]  ;;  %v4580_v9 = vld [vmem:[%s8622_s0 + $0x158] sm:$0xff]  ;;  %v4581_v11 = vld [vmem:[%s8622_s0 + $0x160] sm:$0xff] }
  0x17   :  { %v4612_v8 = vld [vmem:[%s8622_s0 + $0x1d0] sm:$0xff]  ;;  %v4614_v12 = vld [vmem:[%s8622_s0 + $0x1e0] sm:$0xff]  ;;  %v4615_v14 = vld [vmem:[%s8622_s0 + $0x1e8] sm:$0xff] }
  0x18   :  { %5847 = vmatpush3.bf16.msra.mxu0 %v6655_v13  ;;  %5871 = vmatpush3.bf16.msra.mxu1 %v6655_v13  ;;  %v4583_v15 = vld [vmem:[%s8622_s0 + $0x170] sm:$0xff]  ;;  %v4584_v17 = vld [vmem:[%s8622_s0 + $0x178] sm:$0xff] }
  0x19   :  { %5849 = vmatprep.subr.bf16.mxu0 %v6667_v16  ;;  %5873 = vmatprep.subr.bf16.mxu1 %v6667_v16  ;;  %v4617_v18 = vld [vmem:[%s8622_s0 + $0x1f8] sm:$0xff] }
  0x1c   :  { %5851 = vmatpush3.bf16.msra.mxu0 %v6667_v16  ;;  %5875 = vmatpush3.bf16.msra.mxu1 %v6667_v16 }
  0x1d   :  { %5853 = vmatprep.subr.bf16.mxu0 %v6679_v19  ;;  %5877 = vmatprep.subr.bf16.mxu1 %v6679_v19 }
  0x20   :  { %5855 = vmatpush3.bf16.msra.mxu0 %v6679_v19  ;;  %5879 = vmatpush3.bf16.msra.mxu1 %v6679_v19 }
  0x21   :  { %5256 = vmatprep.subr.msk.mxu0 %vm131_vm1, %v6688_v20  ;;  %5306 = vmatprep.subr.msk.mxu1 %vm131_vm1, %v6688_v20 }
  0x24   :  { %5257 = vmatpush3.msk.msra.mxu0 %vm131_vm1, %v6688_v20  ;;  %5307 = vmatpush3.msk.msra.mxu1 %vm131_vm1, %v6688_v20 }
  0x25   :  { %5259 = vmatmul.mubr.msk.f32.vlgmr.msra.gmra.mrb[0].mxu0 %vm82_vm0, %v67_v21  ;;  %5309 = vmatmul.mubr.msk.f32.vlgmr.msra.gmra.mrb[0].mxu1 %vm82_vm0, %v4537_v22  ;;  %v1039_v22 = vld [vmem:[%s8623_s3 + $0x10] sm:$0xff] }
  0x26   :  { %5881 = vmatprep.subr.bf16.mxu0 %v6616_v3  ;;  %5905 = vmatprep.subr.bf16.mxu1 %v6616_v3 }
  0x27   :  { %5883 = vmatpush3.bf16.msra.mxu0 %v6616_v3  ;;  %5261 = vmatprep.mubr.msk.f32.mxu0 %vm82_vm0, %v68_v23  ;;  %v1040_v23 = vld [vmem:[%s8623_s3 + $0x18] sm:$0xff] }
  0x28   :  { %5311 = vmatprep.mubr.msk.f32.mxu1 %vm82_vm0, %v4538_v24  ;;  %5907 = vmatpush3.bf16.msra.mxu1 %v6616_v3  ;;  %v4577_v3 = vld [vmem:[%s8622_s0 + $0x140] sm:$0xff]  ;;  %v5932_v24 = vpack.c.bf16 %v1040_v23, %v1039_v22 }
  0x29   :  { %5262 = vmatmul.mubr.msk.f32.gmra.mrb[2].mxu0 %vm82_vm0, %v69_v25  ;;  %5312 = vmatmul.mubr.msk.f32.gmra.mrb[2].mxu1 %vm82_vm0, %v4539_v26  ;;  %v4674_v25 = vld [vmem:[%s8623_s3 + $0x40] sm:$0xff]  ;;  %v4675_v26 = vld [vmem:[%s8623_s3 + $0x48] sm:$0xff] }
  0x2a   :  { %5885 = vmatprep.subr.bf16.mxu0 %v6621_v5  ;;  %5264 = vmatprep.mubr.msk.f32.mxu0 %vm82_vm0, %v70_v27  ;;  %v6998_v27 = vpack.c.bf16 %v4675_v26, %v4674_v25 }
  0x2b   :  { %5887 = vmatpush3.bf16.msra.mxu0 %v6621_v5  ;;  %5314 = vmatprep.mubr.msk.f32.mxu1 %vm82_vm0, %v4540_v28  ;;  %v4654_v28 = vld [vmem:[%s8623_s3 + $0x20] sm:$0xff] }
  0x2c   :  { %5909 = vmatprep.subr.bf16.mxu1 %v6621_v5  ;;  %5889 = vmatprep.subr.bf16.mxu0 %v6641_v10 }
  0x2d   :  { %5265 = vmatmul.mubr.msk.f32.gmra.mrb[4].mxu0 %vm82_vm0, %v71_v29  ;;  %5315 = vmatmul.mubr.msk.f32.gmra.mrb[4].mxu1 %vm82_vm0, %v4541_v30  ;;  %v4655_v29 = vld [vmem:[%s8623_s3 + $0x28] sm:$0xff] }
  0x2e   :  { %5911 = vmatpush3.bf16.msra.mxu1 %v6621_v5  ;;  %5267 = vmatprep.mubr.msk.f32.mxu0 %vm82_vm0, %v72_v31  ;;  %v4578_v5 = vld [vmem:[%s8622_s0 + $0x148] sm:$0xff]  ;;  %v7007_v30 = vpack.c.bf16 %v4655_v29, %v4654_v28 }
  0x2f   :  { %5317 = vmatprep.mubr.msk.f32.mxu1 %vm82_vm0, %v4542_v32  ;;  %5891 = vmatpush3.bf16.msra.mxu0 %v6641_v10 }
  0x30   :  { %5913 = vmatprep.subr.bf16.mxu1 %v6641_v10  ;;  %5893 = vmatprep.subr.bf16.mxu0 %v6655_v13 }
  0x31   :  { %5268 = vmatmul.mubr.msk.f32.gmra.mrb[6].mxu0 %vm82_vm0, %v73_v33  ;;  %5318 = vmatmul.mubr.msk.f32.gmra.mrb[6].mxu1 %vm82_vm0, %v4543_v34 }
  0x32   :  { %5915 = vmatpush3.bf16.msra.mxu1 %v6641_v10  ;;  %5270 = vmatprep.mubr.msk.f32.mxu0 %vm82_vm0, %v74_v35  ;;  %v4613_v10 = vld [vmem:[%s8622_s0 + $0x1d8] sm:$0xff] }
  0x33   :  { %5320 = vmatprep.mubr.msk.f32.mxu1 %vm82_vm0, %v4544_v36  ;;  %5895 = vmatpush3.bf16.msra.mxu0 %v6655_v13 }
  0x34   :  { %5917 = vmatprep.subr.bf16.mxu1 %v6655_v13  ;;  %5897 = vmatprep.subr.bf16.mxu0 %v6667_v16 }
  0x35   :  { %5271 = vmatmul.mubr.msk.f32.gmra.mrb[8].mxu0 %vm82_vm0, %v75_v37  ;;  %5321 = vmatmul.mubr.msk.f32.gmra.mrb[8].mxu1 %vm82_vm0, %v4545_v38 }
  0x36   :  { %5919 = vmatpush3.bf16.msra.mxu1 %v6655_v13  ;;  %5273 = vmatprep.mubr.msk.f32.mxu0 %vm82_vm0, %v76_v39  ;;  %v4582_v13 = vld [vmem:[%s8622_s0 + $0x168] sm:$0xff] }
  0x37   :  { %5323 = vmatprep.mubr.msk.f32.mxu1 %vm82_vm0, %v4546_v40  ;;  %5899 = vmatpush3.bf16.msra.mxu0 %v6667_v16 }
  0x38   :  { %5921 = vmatprep.subr.bf16.mxu1 %v6667_v16  ;;  %5901 = vmatprep.subr.bf16.mxu0 %v6679_v19 }
  0x39   :  { %5274 = vmatmul.mubr.msk.f32.gmra.mrb[10].mxu0 %vm82_vm0, %v77_v41  ;;  %5324 = vmatmul.mubr.msk.f32.gmra.mrb[10].mxu1 %vm82_vm0, %v4547_v42 }
  0x3a   :  { %5923 = vmatpush3.bf16.msra.mxu1 %v6667_v16  ;;  %5276 = vmatprep.mubr.msk.f32.mxu0 %vm82_vm0, %v78_v43  ;;  %v4616_v16 = vld [vmem:[%s8622_s0 + $0x1f0] sm:$0xff] }
  0x3b   :  { %5326 = vmatprep.mubr.msk.f32.mxu1 %vm82_vm0, %v4548_v44  ;;  %5903 = vmatpush3.bf16.msra.mxu0 %v6679_v19 }
  0x3c   :  { %5925 = vmatprep.subr.bf16.mxu1 %v6679_v19  ;;  %5356 = vmatprep.subr.msk.mxu0 %vm131_vm1, %v6688_v20 }
  0x3d   :  { %5277 = vmatmul.mubr.msk.f32.gmra.mrb[12].mxu0 %vm82_vm0, %v79_v45  ;;  %5327 = vmatmul.mubr.msk.f32.gmra.mrb[12].mxu1 %vm82_vm0, %v4549_v46 }
  0x3e   :  { %5927 = vmatpush3.bf16.msra.mxu1 %v6679_v19  ;;  %5279 = vmatprep.mubr.msk.f32.mxu0 %vm82_vm0, %v80_v47  ;;  %v1037_v19 = vld [vmem:[%s8623_s3] sm:$0xff] }
  0x3f   :  { %5329 = vmatprep.mubr.msk.f32.mxu1 %vm82_vm0, %v4550_v48  ;;  %5357 = vmatpush3.msk.msra.mxu0 %vm131_vm1, %v6688_v20 }
  0x40   :  { %5406 = vmatprep.subr.msk.mxu1 %vm131_vm1, %v6688_v20 }
  0x41   :  { %5280 = vmatmul.mubr.msk.f32.gmra.mrb[14].mxu0 %vm82_vm0, %v81_v49  ;;  %5330 = vmatmul.mubr.msk.f32.gmra.mrb[14].mxu1 %vm82_vm0, %v4551_v50 }
  0x42   :  { %5358 = vmatprep.mubr.msk.f32.mxu0 %vm82_vm0, %v4569_v51  ;;  %5407 = vmatpush3.msk.msra.mxu1 %vm131_vm1, %v6688_v20  ;;  %v1038_v20 = vld [vmem:[%s8623_s3 + $0x8] sm:$0xff] }
  0x43   :  { %5408 = vmatprep.mubr.msk.f32.mxu1 %vm82_vm0, %v4602_v52  ;;  %v5928_v21 = vpack.c.bf16 %v1038_v20, %v1037_v19 }
  0x45   :  { %5359 = vmatmul.mubr.msk.f32.vlgmr.msra.gmra.mrb[16].mxu0 %vm82_vm0, %v4570_v53  ;;  %5409 = vmatmul.mubr.msk.f32.vlgmr.msra.gmra.mrb[16].mxu1 %vm82_vm0, %v4603_v54 }
  0x46   :  { %5361 = vmatprep.mubr.msk.f32.mxu0 %vm82_vm0, %v4571_v55  ;;  %5411 = vmatprep.mubr.msk.f32.mxu1 %vm82_vm0, %v4604_v56 }
  0x47   :  { %5929 = vmatprep.subr.bf16.mxu0 %v5928_v21  ;;  %6440 = vmatprep.subr.bf16.mxu1 %v5928_v21 }
  0x48   :  { %5931 = vmatpush3.bf16.msra.mxu0 %v5928_v21  ;;  %6442 = vmatpush3.bf16.msra.mxu1 %v5928_v21  ;;  %v7085_v21 = vld [vmem:[%s8624_s11] ss:$0 sm:$0xff] }
  0x49   :  { %5362 = vmatmul.mubr.msk.f32.gmra.mrb[18].mxu0 %vm82_vm0, %v4572_v57  ;;  %5412 = vmatmul.mubr.msk.f32.gmra.mrb[18].mxu1 %vm82_vm0, %v4605_v58 }
  0x4a   :  { %5364 = vmatprep.mubr.msk.f32.mxu0 %vm82_vm0, %v4573_v59  ;;  %5414 = vmatprep.mubr.msk.f32.mxu1 %vm82_vm0, %v4606_v60 }
  0x4b   :  { %5933 = vmatprep.subr.bf16.mxu0 %v5932_v24  ;;  %6441 = vmatprep.subr.bf16.mxu1 %v5932_v24 }
  0x4c   :  { %5935 = vmatpush3.bf16.msra.mxu0 %v5932_v24  ;;  %6443 = vmatpush3.bf16.msra.mxu1 %v5932_v24 }
  0x4d   :  { %5365 = vmatmul.mubr.msk.f32.gmra.mrb[20].mxu0 %vm82_vm0, %v4574_v61  ;;  %5415 = vmatmul.mubr.msk.f32.gmra.mrb[20].mxu1 %vm82_vm0, %v4607_v62 }
  0x4e   :  { %5367 = vmatprep.mubr.msk.f32.mxu0 %vm82_vm0, %v4575_v63  ;;  %5417 = vmatprep.mubr.msk.f32.mxu1 %vm82_vm0, %v4608_v0 }
  0x4f   :  { %5945 = vmatprep.subr.bf16.mxu0 %v6998_v27  ;;  %5937 = vmatprep.subr.bf16.mxu1 %v7007_v30 }
  0x51   :  { %5368 = vmatmul.mubr.msk.f32.gmra.mrb[22].mxu0 %vm82_vm0, %v4576_v1  ;;  %5418 = vmatmul.mubr.msk.f32.gmra.mrb[22].mxu1 %vm82_vm0, %v4609_v2 }
  0x52   :  { %5370 = vmatprep.mubr.msk.f32.mxu0 %vm82_vm0, %v4577_v3  ;;  %5420 = vmatprep.mubr.msk.f32.mxu1 %vm82_vm0, %v4610_v4 }
  0x55   :  { %5371 = vmatmul.mubr.msk.f32.gmra.mrb[24].mxu0 %vm82_vm0, %v4578_v5  ;;  %5421 = vmatmul.mubr.msk.f32.gmra.mrb[24].mxu1 %vm82_vm0, %v4611_v6 }
  0x56   :  { %5373 = vmatprep.mubr.msk.f32.mxu0 %vm82_vm0, %v4579_v7  ;;  %5423 = vmatprep.mubr.msk.f32.mxu1 %vm82_vm0, %v4612_v8 }
  0x59   :  { %5374 = vmatmul.mubr.msk.f32.gmra.mrb[26].mxu0 %vm82_vm0, %v4580_v9  ;;  %5424 = vmatmul.mubr.msk.f32.gmra.mrb[26].mxu1 %vm82_vm0, %v4613_v10 }
  0x5a   :  { %5376 = vmatprep.mubr.msk.f32.mxu0 %vm82_vm0, %v4581_v11  ;;  %5426 = vmatprep.mubr.msk.f32.mxu1 %vm82_vm0, %v4614_v12 }
  0x5d   :  { %5377 = vmatmul.mubr.msk.f32.gmra.mrb[28].mxu0 %vm82_vm0, %v4582_v13  ;;  %5427 = vmatmul.mubr.msk.f32.gmra.mrb[28].mxu1 %vm82_vm0, %v4615_v14 }
  0x5e   :  { %5379 = vmatprep.mubr.msk.f32.mxu0 %vm82_vm0, %v4583_v15  ;;  %5429 = vmatprep.mubr.msk.f32.mxu1 %vm82_vm0, %v4616_v16 }
  0x61   :  { %5380 = vmatmul.mubr.msk.f32.gmra.mrb[30].mxu0 %vm82_vm0, %v4584_v17  ;;  %5430 = vmatmul.mubr.msk.f32.gmra.mrb[30].mxu1 %vm82_vm0, %v4617_v18 }
  0xf8   :  { %v5260_v31 = vpop.f32.mrb[0].mxu0  ;;  %v5310_v32 = vpop.f32.mrb[0].mxu1 }
  0xf9   :  { %v491_v33 = vmax.f32 %v5260_v31, %v5310_v32  ;;  %v201_v34 = vpop.f32.mrb[1].mxu0  ;;  %v411_v35 = vpop.f32.mrb[1].mxu1  ;;  %v7091_v32 = vld [vmem:[%s8624_s11 + $0x1] ss:$0 sm:$0xff] }
  0xfa   :  { %v490_v36 = vmax.f32 %v201_v34, %v411_v35 }
  0xfc   :  { %v5263_v37 = vpop.f32.mrb[2].mxu0  ;;  %v5313_v38 = vpop.f32.mrb[2].mxu1 }
  0xfd   :  { %v493_v39 = vmax.f32 %v5263_v37, %v5313_v38  ;;  %v211_v40 = vpop.f32.mrb[3].mxu0  ;;  %v421_v41 = vpop.f32.mrb[3].mxu1 }
  0xfe   :  { %v492_v42 = vmax.f32 %v211_v40, %v421_v41 }
 0x100   :  { %v7010_v43 = vpop.f32.mrb[4].mxu0  ;;  %v7012_v44 = vpop.f32.mrb[4].mxu1 }
 0x101   :  { %v495_v45 = vmax.f32 %v7010_v43, %v7012_v44  ;;  %v7016_v46 = vpop.f32.mrb[5].mxu0  ;;  %v7018_v47 = vpop.f32.mrb[5].mxu1 }
 0x102   :  { %v494_v48 = vmax.f32 %v7016_v46, %v7018_v47 }
 0x104   :  { %v7022_v49 = vpop.f32.mrb[6].mxu0  ;;  %v7024_v50 = vpop.f32.mrb[6].mxu1 }
 0x105   :  { %v497_v51 = vmax.f32 %v7022_v49, %v7024_v50  ;;  %v7028_v52 = vpop.f32.mrb[7].mxu0  ;;  %v7030_v53 = vpop.f32.mrb[7].mxu1 }
 0x106   :  { %v496_v54 = vmax.f32 %v7028_v52, %v7030_v53 }
 0x108   :  { %v7034_v55 = vpop.f32.mrb[8].mxu0  ;;  %v7036_v56 = vpop.f32.mrb[8].mxu1 }
 0x109   :  { %v499_v57 = vmax.f32 %v7034_v55, %v7036_v56  ;;  %v7040_v58 = vpop.f32.mrb[9].mxu0  ;;  %v7042_v59 = vpop.f32.mrb[9].mxu1 }
 0x10a   :  { %v498_v60 = vmax.f32 %v7040_v58, %v7042_v59 }
 0x10c   :  { %v7046_v61 = vpop.f32.mrb[10].mxu0  ;;  %v7048_v62 = vpop.f32.mrb[10].mxu1 }
 0x10d   :  { %v501_v63 = vmax.f32 %v7046_v61, %v7048_v62  ;;  %v7052_v0 = vpop.f32.mrb[11].mxu0  ;;  %v7054_v1 = vpop.f32.mrb[11].mxu1 }
 0x10e   :  { %v500_v2 = vmax.f32 %v7052_v0, %v7054_v1 }
 0x110   :  { %v7058_v3 = vpop.f32.mrb[12].mxu0  ;;  %v7060_v4 = vpop.f32.mrb[12].mxu1 }
 0x111   :  { %v503_v5 = vmax.f32 %v7058_v3, %v7060_v4  ;;  %v7064_v6 = vpop.f32.mrb[13].mxu0  ;;  %v7066_v7 = vpop.f32.mrb[13].mxu1 }
 0x112   :  { %v502_v8 = vmax.f32 %v7064_v6, %v7066_v7 }
 0x114   :  { %v7070_v9 = vpop.f32.mrb[14].mxu0  ;;  %v7072_v10 = vpop.f32.mrb[14].mxu1 }
 0x115   :  { %v505_v11 = vmax.f32 %v7070_v9, %v7072_v10  ;;  %v7076_v12 = vpop.f32.mrb[15].mxu0  ;;  %v7078_v13 = vpop.f32.mrb[15].mxu1 }
 0x116   :  { %v504_v14 = vmax.f32 %v7076_v12, %v7078_v13 }
 0x118   :  { %v5360_v15 = vpop.f32.mrb[16].mxu0  ;;  %v5410_v16 = vpop.f32.mrb[16].mxu1 }
 0x119   :  { %v717_v17 = vmax.f32 %v491_v33, %v5360_v15  ;;  %v637_v18 = vpop.f32.mrb[17].mxu0  ;;  %v863_v19 = vpop.f32.mrb[17].mxu1 }
 0x11a   :  { %v716_v20 = vmax.f32 %v490_v36, %v637_v18  ;;  %v4677_v18 = vld [vmem:[%s8623_s3 + $0x58] sm:$0xff] }
 0x11b   :  { %v943_v22 = vmax.f32 %v717_v17, %v5410_v16 }
 0x11c   :  { %v942_v23 = vmax.f32 %v716_v20, %v863_v19  ;;  %v5363_v24 = vpop.f32.mrb[18].mxu0  ;;  %v5413_v25 = vpop.f32.mrb[18].mxu1 }
 0x11d   :  { %v964_v26 = vadd.f32 %v7085_v21, %v943_v22  ;;  %v719_v28 = vmax.f32 %v493_v39, %v5363_v24  ;;  %v647_v29 = vpop.f32.mrb[19].mxu0  ;;  %v873_v31 = vpop.f32.mrb[19].mxu1  ;;  %v7098_v39 = vld [vmem:[%s8624_s11 + $0x2] ss:$0 sm:$0xff] }
 0x11e   :  { %v963_v33 = vadd.f32 %v7085_v21, %v942_v23  ;;  %v718_v34 = vmax.f32 %v492_v42, %v647_v29  ;;  %v4676_v42 = vld [vmem:[%s8623_s3 + $0x50] sm:$0xff] }
 0x11f   :  { %v980_v35 = vmax.f32 %v964_v26, 0.0  ;;  %v945_v36 = vmax.f32 %v719_v28, %v5413_v25 }
 0x120   :  { %v979_v37 = vmax.f32 %v963_v33, 0.0  ;;  %v944_v38 = vmax.f32 %v718_v34, %v873_v31  ;;  %v5366_v40 = vpop.f32.mrb[20].mxu0  ;;  %v5416_v41 = vpop.f32.mrb[20].mxu1  ;;  %v5948_v31 = vpack.c.bf16 %v4677_v18, %v4676_v42 }
 0x121   :  { %v1001_v43 = vmul.f32 %v7091_v32, %v980_v35  ;;  %v966_v44 = vadd.f32 %v7085_v21, %v945_v36  ;;  %v721_v15 = vmax.f32 %v495_v45, %v5366_v40  ;;  %v657_v16 = vpop.f32.mrb[21].mxu0  ;;  %v883_v17 = vpop.f32.mrb[21].mxu1 }
 0x122   :  { %v1000_v19 = vmul.f32 %v7091_v32, %v979_v37  ;;  %v965_v20 = vadd.f32 %v7085_v21, %v944_v38  ;;  %v720_v22 = vmax.f32 %v494_v48, %v657_v16 }
 0x123   :  { %v982_v23 = vmax.f32 %v966_v44, 0.0  ;;  %v947_v45 = vmax.f32 %v721_v15, %v5416_v41  ;;  %v7116_v33 = vadd.f32 %v7098_v39, %v1001_v43 }
 0x124   :  { %v7113_v24 = vadd.f32 %v7098_v39, %v1000_v19  ;;  %v981_v25 = vmax.f32 %v965_v20, 0.0  ;;  %v946_v26 = vmax.f32 %v720_v22, %v883_v17  ;;  %v5369_v28 = vpop.f32.mrb[22].mxu0  ;;  %v5419_v29 = vpop.f32.mrb[22].mxu1 }
 0x125   :  { %v1003_v34 = vmul.f32 %v7091_v32, %v982_v23  ;;  %v968_v35 = vadd.f32 %v7085_v21, %v947_v45  ;;  %v723_v46 = vmax.f32 %v497_v51, %v5369_v28  ;;  %v667_v47 = vpop.f32.mrb[23].mxu0  ;;  %v893_v48 = vpop.f32.mrb[23].mxu1 }
 0x126   :  { %v1002_v36 = vmul.f32 %v7091_v32, %v981_v25  ;;  %v967_v37 = vadd.f32 %v7085_v21, %v946_v26  ;;  %v722_v38 = vmax.f32 %v496_v54, %v667_v47  ;;  %5440 = vmatprep.mubr.msk.f32.mxu0 %vm1041_vm2, %v7113_v24 }
 0x127   :  { %v984_v40 = vmax.f32 %v968_v35, 0.0  ;;  %v949_v41 = vmax.f32 %v723_v46, %v5419_v29  ;;  %5441 = vmatmul.mubr.msk.f32.vlgmr.msra.gmra.mrb[32].mxu0 %vm1041_vm2, %v7116_v33  ;;  %v7137_v52 = vadd.f32 %v7098_v39, %v1003_v34 }
 0x128   :  { %v7133_v49 = vadd.f32 %v7098_v39, %v1002_v36  ;;  %v983_v50 = vmax.f32 %v967_v37, 0.0  ;;  %v948_v51 = vmax.f32 %v722_v38, %v893_v48  ;;  %v5372_v43 = vpop.f32.mrb[24].mxu0  ;;  %v5422_v44 = vpop.f32.mrb[24].mxu1  ;;  %5947 = vmatpush3.bf16.msra.mxu0 %v6998_v27 }
 0x129   :  { %v1005_v53 = vmul.f32 %v7091_v32, %v984_v40  ;;  %v970_v54 = vadd.f32 %v7085_v21, %v949_v41  ;;  %v725_v15 = vmax.f32 %v499_v57, %v5372_v43  ;;  %v677_v16 = vpop.f32.mrb[25].mxu0  ;;  %v903_v17 = vpop.f32.mrb[25].mxu1  ;;  %5949 = vmatprep.subr.bf16.mxu0 %v5948_v31 }
 0x12a   :  { %v1004_v42 = vmul.f32 %v7091_v32, %v983_v50  ;;  %v969_v18 = vadd.f32 %v7085_v21, %v948_v51  ;;  %v724_v27 = vmax.f32 %v498_v60, %v677_v16  ;;  %5443 = vmatprep.mubr.msk.f32.mxu0 %vm1041_vm2, %v7133_v49 }
 0x12b   :  { %v986_v19 = vmax.f32 %v970_v54, 0.0  ;;  %v951_v20 = vmax.f32 %v725_v15, %v5422_v44  ;;  %5444 = vmatmul.mubr.msk.f32.gmra.mrb[34].mxu0 %vm1041_vm2, %v7137_v52  ;;  %v7157_v45 = vadd.f32 %v7098_v39, %v1005_v53 }
 0x12c   :  { %v7154_v55 = vadd.f32 %v7098_v39, %v1004_v42  ;;  %v985_v56 = vmax.f32 %v969_v18, 0.0  ;;  %v950_v57 = vmax.f32 %v724_v27, %v903_v17  ;;  %v5375_v22 = vpop.f32.mrb[26].mxu0  ;;  %v5425_v23 = vpop.f32.mrb[26].mxu1  ;;  %5951 = vmatpush3.bf16.msra.mxu0 %v5948_v31 }
 0x12d   :  { %v1007_v58 = vmul.f32 %v7091_v32, %v986_v19  ;;  %v972_v59 = vadd.f32 %v7085_v21, %v951_v20  ;;  %v727_v60 = vmax.f32 %v501_v63, %v5375_v22  ;;  %v687_v25 = vpop.f32.mrb[27].mxu0  ;;  %v913_v26 = vpop.f32.mrb[27].mxu1 }
 0x12e   :  { %v1006_v28 = vmul.f32 %v7091_v32, %v985_v56  ;;  %v971_v29 = vadd.f32 %v7085_v21, %v950_v57  ;;  %v726_v31 = vmax.f32 %v500_v2, %v687_v25  ;;  %5446 = vmatprep.mubr.msk.f32.mxu0 %vm1041_vm2, %v7154_v55  ;;  %v4657_v57 = vld [vmem:[%s8623_s3 + $0x38] sm:$0xff] }
 0x12f   :  { %v988_v34 = vmax.f32 %v972_v59, 0.0  ;;  %v953_v35 = vmax.f32 %v727_v60, %v5425_v23  ;;  %5447 = vmatmul.mubr.msk.f32.gmra.mrb[36].mxu0 %vm1041_vm2, %v7157_v45  ;;  %v7177_v48 = vadd.f32 %v7098_v39, %v1007_v58 }
 0x130   :  { %v7174_v61 = vadd.f32 %v7098_v39, %v1006_v28  ;;  %v987_v62 = vmax.f32 %v971_v29, 0.0  ;;  %v952_v63 = vmax.f32 %v726_v31, %v913_v26  ;;  %v5378_v46 = vpop.f32.mrb[28].mxu0  ;;  %v5428_v47 = vpop.f32.mrb[28].mxu1 }
 0x131   :  { %v1009_v0 = vmul.f32 %v7091_v32, %v988_v34  ;;  %v974_v1 = vadd.f32 %v7085_v21, %v953_v35  ;;  %v729_v2 = vmax.f32 %v503_v5, %v5378_v46  ;;  %v697_v36 = vpop.f32.mrb[29].mxu0  ;;  %v923_v37 = vpop.f32.mrb[29].mxu1 }
 0x132   :  { %v1008_v38 = vmul.f32 %v7091_v32, %v987_v62  ;;  %v973_v40 = vadd.f32 %v7085_v21, %v952_v63  ;;  %v728_v41 = vmax.f32 %v502_v8, %v697_v36  ;;  %5449 = vmatprep.mubr.msk.f32.mxu0 %vm1041_vm2, %v7174_v61 }
 0x133   :  { %v990_v50 = vmax.f32 %v974_v1, 0.0  ;;  %v955_v51 = vmax.f32 %v729_v2, %v5428_v47  ;;  %5450 = vmatmul.mubr.msk.f32.gmra.mrb[38].mxu0 %vm1041_vm2, %v7177_v48  ;;  %v7197_v53 = vadd.f32 %v7098_v39, %v1009_v0 }
 0x134   :  { %v7194_v3 = vadd.f32 %v7098_v39, %v1008_v38  ;;  %v989_v4 = vmax.f32 %v973_v40, 0.0  ;;  %v954_v5 = vmax.f32 %v728_v41, %v923_v37  ;;  %v5381_v43 = vpop.f32.mrb[30].mxu0  ;;  %v5431_v44 = vpop.f32.mrb[30].mxu1 }
 0x135   :  { %v1011_v6 = vmul.f32 %v7091_v32, %v990_v50  ;;  %v976_v7 = vadd.f32 %v7085_v21, %v955_v51  ;;  %v731_v8 = vmax.f32 %v505_v11, %v5381_v43  ;;  %v707_v54 = vpop.f32.mrb[31].mxu0  ;;  %v933_v15 = vpop.f32.mrb[31].mxu1 }
 0x136   :  { %v1010_v16 = vmul.f32 %v7091_v32, %v989_v4  ;;  %v975_v17 = vadd.f32 %v7085_v21, %v954_v5  ;;  %v730_v42 = vmax.f32 %v504_v14, %v707_v54  ;;  %5452 = vmatprep.mubr.msk.f32.mxu0 %vm1041_vm2, %v7194_v3  ;;  %v4656_v14 = vld [vmem:[%s8623_s3 + $0x30] sm:$0xff] }
 0x137   :  { %v992_v18 = vmax.f32 %v976_v7, 0.0  ;;  %v957_v27 = vmax.f32 %v731_v8, %v5431_v44  ;;  %5453 = vmatmul.mubr.msk.f32.gmra.mrb[40].mxu0 %vm1041_vm2, %v7197_v53  ;;  %v1032_v19 = vadd.f32 %v7098_v39, %v1011_v6  ;;  %v5940_v60 = vpack.c.bf16 %v4657_v57, %v4656_v14 }
 0x138   :  { %v1031_v9 = vadd.f32 %v7098_v39, %v1010_v16  ;;  %v991_v10 = vmax.f32 %v975_v17, 0.0  ;;  %v956_v11 = vmax.f32 %v730_v42, %v933_v15 }
 0x139   :  { %v1013_v20 = vmul.f32 %v7091_v32, %v992_v18  ;;  %v978_v56 = vadd.f32 %v7085_v21, %v957_v27 }
 0x13a   :  { %v1012_v12 = vmul.f32 %v7091_v32, %v991_v10  ;;  %v977_v13 = vadd.f32 %v7085_v21, %v956_v11  ;;  %5455 = vmatprep.mubr.msk.f32.mxu0 %vm1041_vm2, %v1031_v9 }
 0x13b   :  { %v994_v22 = vmax.f32 %v978_v56, 0.0  ;;  %5456 = vmatmul.mubr.msk.f32.gmra.mrb[42].mxu0 %vm1041_vm2, %v1032_v19  ;;  %v1034_v21 = vadd.f32 %v7098_v39, %v1013_v20 }
 0x13c   :  { %v1033_v23 = vadd.f32 %v7098_v39, %v1012_v12  ;;  %v993_v58 = vmax.f32 %v977_v13, 0.0  ;;  %5504 = vmatprep.mubr.msk.f32.mxu0 %vm1041_vm2, %v7113_v24 }
 0x13d   :  { %v1015_v59 = vmul.f32 %v7091_v32, %v994_v22 }
 0x13e   :  { %v1014_v25 = vmul.f32 %v7091_v32, %v993_v58  ;;  %5458 = vmatprep.mubr.msk.f32.mxu1 %vm1041_vm2, %v1033_v23  ;;  %v4718_v32 = vld [vmem:[%s8625_s4 + $0x100] sm:$0xff] }
 0x13f   :  { %5459 = vmatmul.mubr.msk.f32.vlgmr.msra.gmra.mrb[32].mxu1 %vm1041_vm2, %v1034_v21  ;;  %5505 = vmatmul.mubr.msk.f32.vlgmr.msra.gmra.mrb[44].mxu0 %vm1041_vm2, %v7116_v33  ;;  %v1036_v28 = vadd.f32 %v7098_v39, %v1015_v59 }
 0x140   :  { %v1035_v26 = vadd.f32 %v7098_v39, %v1014_v25  ;;  %5939 = vmatpush3.bf16.msra.mxu1 %v7007_v30  ;;  %5507 = vmatprep.mubr.msk.f32.mxu0 %vm1041_vm2, %v7133_v49  ;;  %v4694_v30 = vld [vmem:[%s8625_s4 + $0x40] sm:$0xff] }
 0x141   :  { %5941 = vmatprep.subr.bf16.mxu1 %v5940_v60 }
 0x142   :  { %5461 = vmatprep.mubr.msk.f32.mxu1 %vm1041_vm2, %v1035_v26 }
 0x143   :  { %5462 = vmatmul.mubr.msk.f32.gmra.mrb[34].mxu1 %vm1041_vm2, %v1036_v28  ;;  %5508 = vmatmul.mubr.msk.f32.gmra.mrb[46].mxu0 %vm1041_vm2, %v7137_v52 }
 0x144   :  { %5943 = vmatpush3.bf16.msra.mxu1 %v5940_v60  ;;  %5472 = vmatprep.mubr.msk.f32.mxu1 %vm1041_vm2, %v7113_v24 }
 0x145   :  { %5510 = vmatprep.mubr.msk.f32.mxu0 %vm1041_vm2, %v7154_v55 }
 0x147   :  { %5473 = vmatmul.mubr.msk.f32.vlgmr.msra.gmra.mrb[36].mxu1 %vm1041_vm2, %v7116_v33  ;;  %5511 = vmatmul.mubr.msk.f32.gmra.mrb[48].mxu0 %vm1041_vm2, %v7157_v45 }
 0x148   :  { %5475 = vmatprep.mubr.msk.f32.mxu1 %vm1041_vm2, %v7133_v49  ;;  %5513 = vmatprep.mubr.msk.f32.mxu0 %vm1041_vm2, %v7174_v61 }
 0x14b   :  { %5476 = vmatmul.mubr.msk.f32.gmra.mrb[38].mxu1 %vm1041_vm2, %v7137_v52  ;;  %5514 = vmatmul.mubr.msk.f32.gmra.mrb[50].mxu0 %vm1041_vm2, %v7177_v48 }
 0x14c   :  { %5478 = vmatprep.mubr.msk.f32.mxu1 %vm1041_vm2, %v7154_v55  ;;  %5516 = vmatprep.mubr.msk.f32.mxu0 %vm1041_vm2, %v7194_v3 }
 0x14f   :  { %5479 = vmatmul.mubr.msk.f32.gmra.mrb[40].mxu1 %vm1041_vm2, %v7157_v45  ;;  %5517 = vmatmul.mubr.msk.f32.gmra.mrb[52].mxu0 %vm1041_vm2, %v7197_v53 }
 0x150   :  { %5481 = vmatprep.mubr.msk.f32.mxu1 %vm1041_vm2, %v7174_v61  ;;  %5519 = vmatprep.mubr.msk.f32.mxu0 %vm1041_vm2, %v1031_v9 }
 0x153   :  { %5482 = vmatmul.mubr.msk.f32.gmra.mrb[42].mxu1 %vm1041_vm2, %v7177_v48  ;;  %5520 = vmatmul.mubr.msk.f32.gmra.mrb[54].mxu0 %vm1041_vm2, %v1032_v19 }
 0x154   :  { %5484 = vmatprep.mubr.msk.f32.mxu1 %vm1041_vm2, %v7194_v3  ;;  %5522 = vmatprep.mubr.msk.f32.mxu0 %vm1041_vm2, %v1033_v23 }
 0x157   :  { %5485 = vmatmul.mubr.msk.f32.gmra.mrb[44].mxu1 %vm1041_vm2, %v7197_v53  ;;  %5523 = vmatmul.mubr.msk.f32.gmra.mrb[56].mxu0 %vm1041_vm2, %v1034_v21 }
 0x158   :  { %5487 = vmatprep.mubr.msk.f32.mxu1 %vm1041_vm2, %v1031_v9  ;;  %5525 = vmatprep.mubr.msk.f32.mxu0 %vm1041_vm2, %v1035_v26 }
 0x15b   :  { %5488 = vmatmul.mubr.msk.f32.gmra.mrb[46].mxu1 %vm1041_vm2, %v1032_v19  ;;  %5526 = vmatmul.mubr.msk.f32.gmra.mrb[58].mxu0 %vm1041_vm2, %v1036_v28 }
 0x15c   :  { %5490 = vmatprep.mubr.msk.f32.mxu1 %vm1041_vm2, %v1033_v23  ;;  %5692 = vmatprep.mubr.f32.mxu0 %v4718_v32 }
 0x15f   :  { %5491 = vmatmul.mubr.msk.f32.gmra.mrb[48].mxu1 %vm1041_vm2, %v1034_v21 }
 0x160   :  { %5493 = vmatprep.mubr.msk.f32.mxu1 %vm1041_vm2, %v1035_v26 }
 0x163   :  { %5494 = vmatmul.mubr.msk.f32.gmra.mrb[50].mxu1 %vm1041_vm2, %v1036_v28 }
 0x164   :  { %5560 = vmatprep.mubr.f32.mxu1 %v4694_v30 }
 0x1fa   :  { %v5442_v39 = vpop.f32.mrb[32].mxu0 }
 0x1fb   :  { %v1156_v24 = vpop.f32.mrb[33].mxu0 }
 0x1fc   :  { %v7296_v33 = vpack.c.bf16 %v5442_v39, %v1156_v24 }
 0x1fe   :  { %v5445_v49 = vpop.f32.mrb[34].mxu0 }
 0x1ff   :  { %v1166_v52 = vpop.f32.mrb[35].mxu0 }
 0x200   :  { %v7298_v55 = vpack.c.bf16 %v5445_v49, %v1166_v52 }
 0x202   :  { %v5448_v45 = vpop.f32.mrb[36].mxu0 }
 0x203   :  { %v1176_v29 = vpop.f32.mrb[37].mxu0 }
 0x204   :  { %v7300_v31 = vpack.c.bf16 %v5448_v45, %v1176_v29 }
 0x206   :  { %v5451_v34 = vpop.f32.mrb[38].mxu0 }
 0x207   :  { %v1186_v35 = vpop.f32.mrb[39].mxu0 }
 0x208   :  { %v7302_v61 = vpack.c.bf16 %v5451_v34, %v1186_v35 }
 0x20a   :  { %v5454_v62 = vpop.f32.mrb[40].mxu0 }
 0x20b   :  { %v1196_v63 = vpop.f32.mrb[41].mxu0 }
 0x20c   :  { %v7304_v46 = vpack.c.bf16 %v5454_v62, %v1196_v63  ;;  %v4695_v62 = vld [vmem:[%s8625_s4 + $0x48] sm:$0xff] }
 0x20d   :  { %v4719_v63 = vld [vmem:[%s8625_s4 + $0x108] sm:$0xff] }
 0x20e   :  { %v5457_v47 = vpop.f32.mrb[42].mxu0 }
 0x20f   :  { %v1206_v48 = vpop.f32.mrb[43].mxu0 }
 0x210   :  { %v7306_v0 = vpack.c.bf16 %v5457_v47, %v1206_v48  ;;  %v4696_v47 = vld [vmem:[%s8625_s4 + $0x50] sm:$0xff] }
 0x211   :  { %v4720_v48 = vld [vmem:[%s8625_s4 + $0x110] sm:$0xff] }
 0x212   :  { %v5460_v1 = vpop.f32.mrb[32].mxu1  ;;  %v5506_v2 = vpop.f32.mrb[44].mxu0 }
 0x213   :  { %v1216_v36 = vpop.f32.mrb[33].mxu1  ;;  %v1456_v37 = vpop.f32.mrb[45].mxu0 }
 0x214   :  { %v7308_v38 = vpack.c.bf16 %v5460_v1, %v1216_v36  ;;  %v7310_v40 = vpack.c.bf16 %v5506_v2, %v1456_v37  ;;  %v4697_v1 = vld [vmem:[%s8625_s4 + $0x58] sm:$0xff]  ;;  %v4722_v36 = vld [vmem:[%s8625_s4 + $0x120] sm:$0xff]  ;;  %v4699_v37 = vld [vmem:[%s8625_s4 + $0x68] sm:$0xff] }
 0x215   :  { %v4721_v2 = vld [vmem:[%s8625_s4 + $0x118] sm:$0xff] }
 0x216   :  { %v5463_v41 = vpop.f32.mrb[34].mxu1  ;;  %v5509_v50 = vpop.f32.mrb[46].mxu0 }
 0x217   :  { %v1226_v51 = vpop.f32.mrb[35].mxu1  ;;  %v1466_v3 = vpop.f32.mrb[47].mxu0 }
 0x218   :  { %v7312_v4 = vpack.c.bf16 %v5463_v41, %v1226_v51  ;;  %v7314_v5 = vpack.c.bf16 %v5509_v50, %v1466_v3  ;;  %v4723_v41 = vld [vmem:[%s8625_s4 + $0x128] sm:$0xff]  ;;  %v4724_v50 = vld [vmem:[%s8625_s4 + $0x130] sm:$0xff]  ;;  %v4701_v51 = vld [vmem:[%s8625_s4 + $0x78] sm:$0xff] }
 0x219   :  { %v4725_v3 = vld [vmem:[%s8625_s4 + $0x138] sm:$0xff] }
 0x21a   :  { %v5474_v43 = vpop.f32.mrb[36].mxu1  ;;  %v5512_v44 = vpop.f32.mrb[48].mxu0 }
 0x21b   :  { %v1306_v53 = vpop.f32.mrb[37].mxu1  ;;  %v1476_v6 = vpop.f32.mrb[49].mxu0 }
 0x21c   :  { %v5952_v7 = vpack.c.bf16 %v5474_v43, %v1306_v53  ;;  %v7316_v8 = vpack.c.bf16 %v5512_v44, %v1476_v6  ;;  %v4710_v43 = vld [vmem:[%s8625_s4 + $0xc0] sm:$0xff]  ;;  %v4713_v44 = vld [vmem:[%s8625_s4 + $0xd8] sm:$0xff]  ;;  %v1540_v6 = vld [vmem:[%s8625_s4 + $0x28] sm:$0xff] }
 0x21d   :  { %v4714_v53 = vld [vmem:[%s8625_s4 + $0xe0] sm:$0xff] }
 0x21e   :  { %v5477_v54 = vpop.f32.mrb[38].mxu1  ;;  %v5515_v15 = vpop.f32.mrb[50].mxu0  ;;  %5953 = vmatprep.subr.bf16.mxu1 %v5952_v7  ;;  %6049 = vmatprep.subr.bf16.mxu0 %v5952_v7 }
 0x21f   :  { %v1316_v16 = vpop.f32.mrb[39].mxu1  ;;  %v1486_v17 = vpop.f32.mrb[51].mxu0  ;;  %5955 = vmatpush3.bf16.msra.mxu1 %v5952_v7  ;;  %6051 = vmatpush3.bf16.msra.mxu0 %v5952_v7  ;;  %v4715_v7 = vld [vmem:[%s8625_s4 + $0xe8] sm:$0xff] }
 0x220   :  { %v5956_v42 = vpack.c.bf16 %v5477_v54, %v1316_v16  ;;  %v7318_v18 = vpack.c.bf16 %v5515_v15, %v1486_v17  ;;  %v4716_v54 = vld [vmem:[%s8625_s4 + $0xf0] sm:$0xff]  ;;  %v1542_v15 = vld [vmem:[%s8625_s4 + $0x38] sm:$0xff]  ;;  %v4726_v17 = vld [vmem:[%s8625_s4 + $0x140] sm:$0xff] }
 0x221   :  { %v4717_v16 = vld [vmem:[%s8625_s4 + $0xf8] sm:$0xff] }
 0x222   :  { %v5480_v27 = vpop.f32.mrb[40].mxu1  ;;  %v5518_v9 = vpop.f32.mrb[52].mxu0  ;;  %5957 = vmatprep.subr.bf16.mxu1 %v5956_v42  ;;  %6053 = vmatprep.subr.bf16.mxu0 %v5956_v42 }
 0x223   :  { %v1326_v10 = vpop.f32.mrb[41].mxu1  ;;  %v1496_v11 = vpop.f32.mrb[53].mxu0  ;;  %5959 = vmatpush3.bf16.msra.mxu1 %v5956_v42  ;;  %6055 = vmatpush3.bf16.msra.mxu0 %v5956_v42  ;;  %v2308_v42 = vld [vmem:[%s8626_s6 + $0x80] sm:$0xff] }
 0x224   :  { %v5960_v19 = vpack.c.bf16 %v5480_v27, %v1326_v10  ;;  %v7320_v20 = vpack.c.bf16 %v5518_v9, %v1496_v11  ;;  %v2292_v9 = vld [vmem:[%s8626_s6] sm:$0xff]  ;;  %v2293_v10 = vld [vmem:[%s8626_s6 + $0x8] sm:$0xff]  ;;  %v2310_v11 = vld [vmem:[%s8626_s6 + $0x90] sm:$0xff] }
 0x226   :  { %v5483_v56 = vpop.f32.mrb[42].mxu1  ;;  %v5521_v12 = vpop.f32.mrb[54].mxu0  ;;  %5961 = vmatprep.subr.bf16.mxu1 %v5960_v19  ;;  %6057 = vmatprep.subr.bf16.mxu0 %v5960_v19 }
 0x227   :  { %v1336_v13 = vpop.f32.mrb[43].mxu1  ;;  %v1506_v14 = vpop.f32.mrb[55].mxu0  ;;  %5963 = vmatpush3.bf16.msra.mxu1 %v5960_v19  ;;  %6059 = vmatpush3.bf16.msra.mxu0 %v5960_v19  ;;  %v2311_v19 = vld [vmem:[%s8626_s6 + $0x98] sm:$0xff] }
 0x228   :  { %v5964_v57 = vpack.c.bf16 %v5483_v56, %v1336_v13  ;;  %v7322_v22 = vpack.c.bf16 %v5521_v12, %v1506_v14  ;;  %v2325_v56 = vld [vmem:[%s8626_s6 + $0x108] sm:$0xff]  ;;  %v6146_v14 = vpack.c.bf16 %v2293_v10, %v2292_v9  ;;  %v2304_v10 = vld [vmem:[%s8626_s6 + $0x60] sm:$0xff] }
 0x229   :  { %v4703_v12 = vld [vmem:[%s8625_s4 + $0x88] sm:$0xff] }
 0x22a   :  { %v5486_v23 = vpop.f32.mrb[44].mxu1  ;;  %v5524_v58 = vpop.f32.mrb[56].mxu0  ;;  %5965 = vmatprep.subr.bf16.mxu1 %v5964_v57  ;;  %6061 = vmatprep.subr.bf16.mxu0 %v5964_v57  ;;  %v4727_v13 = vld [vmem:[%s8625_s4 + $0x148] sm:$0xff] }
 0x22b   :  { %v1346_v21 = vpop.f32.mrb[45].mxu1  ;;  %v1516_v59 = vpop.f32.mrb[57].mxu0  ;;  %5967 = vmatpush3.bf16.msra.mxu1 %v5964_v57  ;;  %6063 = vmatpush3.bf16.msra.mxu0 %v5964_v57  ;;  %v4704_v57 = vld [vmem:[%s8625_s4 + $0x90] sm:$0xff] }
 0x22c   :  { %v5968_v60 = vpack.c.bf16 %v5486_v23, %v1346_v21  ;;  %v7324_v25 = vpack.c.bf16 %v5524_v58, %v1516_v59  ;;  %v2294_v23 = vld [vmem:[%s8626_s6 + $0x10] sm:$0xff]  ;;  %v2295_v58 = vld [vmem:[%s8626_s6 + $0x18] sm:$0xff]  ;;  %v6519_v21 = vmov 0.0|0.0  }
 0x22d   :  { %v4728_v59 = vld [vmem:[%s8625_s4 + $0x150] sm:$0xff] }
 0x22e   :  { %v5489_v26 = vpop.f32.mrb[46].mxu1  ;;  %v5527_v28 = vpop.f32.mrb[58].mxu0  ;;  %5969 = vmatprep.subr.bf16.mxu1 %v5968_v60  ;;  %6065 = vmatprep.subr.bf16.mxu0 %v5968_v60 }
 0x22f   :  { %v1356_v30 = vpop.f32.mrb[47].mxu1  ;;  %v1526_v32 = vpop.f32.mrb[59].mxu0  ;;  %5971 = vmatpush3.bf16.msra.mxu1 %v5968_v60  ;;  %6067 = vmatpush3.bf16.msra.mxu0 %v5968_v60  ;;  %v2312_v60 = vld [vmem:[%s8626_s6 + $0xa0] sm:$0xff] }
 0x230   :  { %v5972_v39 = vpack.c.bf16 %v5489_v26, %v1356_v30  ;;  %v7326_v24 = vpack.c.bf16 %v5527_v28, %v1526_v32  ;;  %v4705_v28 = vld [vmem:[%s8625_s4 + $0x98] sm:$0xff]  ;;  %v6150_v32 = vpack.c.bf16 %v2295_v58, %v2294_v23  ;;  %v2289_v58 = vld [vmem:[%s8627_s1] sm:$0xff] }
 0x231   :  { %v4729_v30 = vld [vmem:[%s8625_s4 + $0x158] sm:$0xff] }
 0x232   :  { %v5492_v49 = vpop.f32.mrb[48].mxu1  ;;  %5973 = vmatprep.subr.bf16.mxu1 %v5972_v39  ;;  %6069 = vmatprep.subr.bf16.mxu0 %v5972_v39 }
 0x233   :  { %v1366_v52 = vpop.f32.mrb[49].mxu1  ;;  %5975 = vmatpush3.bf16.msra.mxu1 %v5972_v39  ;;  %6071 = vmatpush3.bf16.msra.mxu0 %v5972_v39  ;;  %v4706_v39 = vld [vmem:[%s8625_s4 + $0xa0] sm:$0xff] }
 0x234   :  { %v5976_v45 = vpack.c.bf16 %v5492_v49, %v1366_v52  ;;  %v2296_v49 = vld [vmem:[%s8626_s6 + $0x20] sm:$0xff]  ;;  %v2297_v52 = vld [vmem:[%s8626_s6 + $0x28] sm:$0xff] }
 0x236   :  { %v5495_v29 = vpop.f32.mrb[50].mxu1  ;;  %5977 = vmatprep.subr.bf16.mxu1 %v5976_v45  ;;  %6073 = vmatprep.subr.bf16.mxu0 %v5976_v45 }
 0x237   :  { %v1376_v34 = vpop.f32.mrb[51].mxu1  ;;  %5979 = vmatpush3.bf16.msra.mxu1 %v5976_v45  ;;  %6075 = vmatpush3.bf16.msra.mxu0 %v5976_v45  ;;  %v4730_v45 = vld [vmem:[%s8625_s4 + $0x160] sm:$0xff] }
 0x238   :  { %v5980_v35 = vpack.c.bf16 %v5495_v29, %v1376_v34  ;;  %v2314_v29 = vld [vmem:[%s8626_s6 + $0xb0] sm:$0xff]  ;;  %v2315_v34 = vld [vmem:[%s8626_s6 + $0xb8] sm:$0xff] }
 0x23a   :  { %5981 = vmatprep.subr.bf16.mxu1 %v5980_v35  ;;  %6077 = vmatprep.subr.bf16.mxu0 %v5980_v35 }
 0x23b   :  { %5983 = vmatpush3.bf16.msra.mxu1 %v5980_v35  ;;  %6079 = vmatpush3.bf16.msra.mxu0 %v5980_v35  ;;  %v2326_v35 = vld [vmem:[%s8626_s6 + $0x110] sm:$0xff] }
 0x23c   :  { %5985 = vmatprep.subr.bf16.mxu1 %v7296_v33  ;;  %6081 = vmatprep.subr.bf16.mxu0 %v7296_v33 }
 0x23e   :  { %5561 = vmatmul.mubr.f32.vlgmr.msra.gmra.mrb[52].mxu1 %v4695_v62  ;;  %5693 = vmatmul.mubr.f32.vlgmr.msra.gmra.mrb[60].mxu0 %v4719_v63  ;;  %v2327_v62 = vld [vmem:[%s8626_s6 + $0x118] sm:$0xff]  ;;  %v4707_v63 = vld [vmem:[%s8625_s4 + $0xa8] sm:$0xff] }
 0x23f   :  { %5987 = vmatpush3.bf16.msra.mxu1 %v7296_v33  ;;  %6083 = vmatpush3.bf16.msra.mxu0 %v7296_v33  ;;  %v4698_v33 = vld [vmem:[%s8625_s4 + $0x60] sm:$0xff] }
 0x240   :  { %5989 = vmatprep.subr.bf16.mxu1 %v7298_v55  ;;  %6085 = vmatprep.subr.bf16.mxu0 %v7298_v55 }
 0x241   :  { %5563 = vmatprep.mubr.f32.mxu1 %v4696_v47  ;;  %5695 = vmatprep.mubr.f32.mxu0 %v4720_v48  ;;  %v4731_v47 = vld [vmem:[%s8625_s4 + $0x168] sm:$0xff]  ;;  %v6154_v48 = vpack.c.bf16 %v2297_v52, %v2296_v49  ;;  %v2495_v49 = vld [vmem:[%s8628_s7 + $0x40] sm:$0xff] }
 0x242   :  { %5564 = vmatmul.mubr.f32.gmra.mrb[54].mxu1 %v4697_v1  ;;  %5696 = vmatmul.mubr.f32.gmra.mrb[62].mxu0 %v4721_v2  ;;  %v4708_v1 = vld [vmem:[%s8625_s4 + $0xb0] sm:$0xff]  ;;  %v6156_v2 = vpack.c.bf16 %v2315_v34, %v2314_v29  ;;  %v2499_v52 = vld [vmem:[%s8628_s7 + $0x60] sm:$0xff]  ;;  %v2490_v29 = vld [vmem:[%s8628_s7 + $0x18] sm:$0xff] }
 0x243   :  { %5991 = vmatpush3.bf16.msra.mxu1 %v7298_v55  ;;  %6087 = vmatpush3.bf16.msra.mxu0 %v7298_v55  ;;  %v4700_v55 = vld [vmem:[%s8625_s4 + $0x70] sm:$0xff]  ;;  %v2494_v34 = vld [vmem:[%s8628_s7 + $0x38] sm:$0xff] }
 0x244   :  { %5993 = vmatprep.subr.bf16.mxu1 %v7300_v31  ;;  %6089 = vmatprep.subr.bf16.mxu0 %v7300_v31 }
 0x245   :  { %5566 = vmatprep.mubr.f32.mxu1 %v4698_v33  ;;  %5698 = vmatprep.mubr.f32.mxu0 %v4722_v36  ;;  %v2298_v33 = vld [vmem:[%s8626_s6 + $0x30] sm:$0xff]  ;;  %v2299_v36 = vld [vmem:[%s8626_s6 + $0x38] sm:$0xff] }
 0x246   :  { %5567 = vmatmul.mubr.f32.gmra.mrb[56].mxu1 %v4699_v37  ;;  %5699 = vmatmul.mubr.f32.gmra.mrb[64].mxu0 %v4723_v41  ;;  %v4732_v37 = vld [vmem:[%s8625_s4 + $0x170] sm:$0xff]  ;;  %v2316_v41 = vld [vmem:[%s8626_s6 + $0xc0] sm:$0xff] }
 0x247   :  { %5995 = vmatpush3.bf16.msra.mxu1 %v7300_v31  ;;  %6091 = vmatpush3.bf16.msra.mxu0 %v7300_v31  ;;  %v1535_v31 = vld [vmem:[%s8625_s4] sm:$0xff] }
 0x248   :  { %5997 = vmatprep.subr.bf16.mxu1 %v7302_v61  ;;  %6093 = vmatprep.subr.bf16.mxu0 %v7302_v61 }
 0x249   :  { %5569 = vmatprep.mubr.f32.mxu1 %v4700_v55  ;;  %5701 = vmatprep.mubr.f32.mxu0 %v4724_v50  ;;  %v2317_v55 = vld [vmem:[%s8626_s6 + $0xc8] sm:$0xff]  ;;  %v6180_v50 = vpack.c.bf16 %v2327_v62, %v2326_v35  ;;  %v6196_v35 = vpack.c.bf16 %v2494_v34, %v2490_v29  ;;  %v4023_v29 = vld [vmem:[%s8629_s8 + $0xf8] sm:$0xff] }
 0x24a   :  { %5570 = vmatmul.mubr.f32.gmra.mrb[58].mxu1 %v4701_v51  ;;  %5702 = vmatmul.mubr.f32.gmra.mrb[66].mxu0 %v4725_v3  ;;  %v2328_v51 = vld [vmem:[%s8626_s6 + $0x120] sm:$0xff]  ;;  %v2329_v3 = vld [vmem:[%s8626_s6 + $0x128] sm:$0xff] }
 0x24b   :  { %5999 = vmatpush3.bf16.msra.mxu1 %v7302_v61  ;;  %6095 = vmatpush3.bf16.msra.mxu0 %v7302_v61  ;;  %v1536_v61 = vld [vmem:[%s8625_s4 + $0x8] sm:$0xff] }
 0x24c   :  { %6001 = vmatprep.subr.bf16.mxu1 %v7304_v46  ;;  %6097 = vmatprep.subr.bf16.mxu0 %v7304_v46  ;;  %v3993_v62 = vld [vmem:[%s8629_s8 + $0x8] sm:$0xff] }
 0x24d   :  { %5604 = vmatprep.mubr.f32.mxu1 %v1535_v31  ;;  %5736 = vmatprep.mubr.f32.mxu0 %v4710_v43  ;;  %v4709_v31 = vld [vmem:[%s8625_s4 + $0xb8] sm:$0xff] }
 0x24e   :  { %v4733_v43 = vld [vmem:[%s8625_s4 + $0x178] sm:$0xff] }
 0x24f   :  { %6003 = vmatpush3.bf16.msra.mxu1 %v7304_v46  ;;  %6099 = vmatpush3.bf16.msra.mxu0 %v7304_v46  ;;  %v4711_v46 = vld [vmem:[%s8625_s4 + $0xc8] sm:$0xff] }
 0x250   :  { %6005 = vmatprep.subr.bf16.mxu1 %v7306_v0  ;;  %6101 = vmatprep.subr.bf16.mxu0 %v7306_v0 }
 0x253   :  { %6007 = vmatpush3.bf16.msra.mxu1 %v7306_v0  ;;  %6103 = vmatpush3.bf16.msra.mxu0 %v7306_v0  ;;  %v1537_v0 = vld [vmem:[%s8625_s4 + $0x10] sm:$0xff] }
 0x254   :  { %6009 = vmatprep.subr.bf16.mxu1 %v7308_v38  ;;  %6105 = vmatprep.subr.bf16.mxu0 %v7308_v38 }
 0x257   :  { %6011 = vmatpush3.bf16.msra.mxu1 %v7308_v38  ;;  %6107 = vmatpush3.bf16.msra.mxu0 %v7308_v38  ;;  %v4712_v38 = vld [vmem:[%s8625_s4 + $0xd0] sm:$0xff] }
 0x258   :  { %6013 = vmatprep.subr.bf16.mxu1 %v7312_v4  ;;  %6109 = vmatprep.subr.bf16.mxu0 %v7312_v4 }
 0x25b   :  { %6015 = vmatpush3.bf16.msra.mxu1 %v7312_v4  ;;  %6111 = vmatpush3.bf16.msra.mxu0 %v7312_v4  ;;  %v1538_v4 = vld [vmem:[%s8625_s4 + $0x18] sm:$0xff] }
 0x25c   :  { %6017 = vmatprep.subr.bf16.mxu1 %v7310_v40  ;;  %6113 = vmatprep.subr.bf16.mxu0 %v7310_v40 }
 0x25e   :  { %5605 = vmatmul.mubr.f32.vlgmr.msra.gmra.mrb[52].mxu1 %v1536_v61  ;;  %5737 = vmatmul.mubr.f32.vlgmr.msra.gmra.mrb[60].mxu0 %v4711_v46  ;;  %v6158_v61 = vpack.c.bf16 %v2299_v36, %v2298_v33  ;;  %v6160_v46 = vpack.c.bf16 %v2317_v55, %v2316_v41  ;;  %v3999_v33 = vld [vmem:[%s8629_s8 + $0x38] sm:$0xff]  ;;  %v3996_v41 = vld [vmem:[%s8629_s8 + $0x20] sm:$0xff]  ;;  %v3998_v55 = vld [vmem:[%s8629_s8 + $0x30] sm:$0xff] }
 0x25f   :  { %6019 = vmatpush3.bf16.msra.mxu1 %v7310_v40  ;;  %6115 = vmatpush3.bf16.msra.mxu0 %v7310_v40  ;;  %v1539_v40 = vld [vmem:[%s8625_s4 + $0x20] sm:$0xff] }
 0x260   :  { %6021 = vmatprep.subr.bf16.mxu1 %v7314_v5  ;;  %6117 = vmatprep.subr.bf16.mxu0 %v7314_v5 }
 0x261   :  { %5607 = vmatprep.mubr.f32.mxu1 %v1537_v0  ;;  %5739 = vmatprep.mubr.f32.mxu0 %v4712_v38  ;;  %v2300_v0 = vld [vmem:[%s8626_s6 + $0x40] sm:$0xff]  ;;  %v2301_v38 = vld [vmem:[%s8626_s6 + $0x48] sm:$0xff] }
 0x262   :  { %5608 = vmatmul.mubr.f32.gmra.mrb[54].mxu1 %v1538_v4  ;;  %5740 = vmatmul.mubr.f32.gmra.mrb[62].mxu0 %v4713_v44  ;;  %v2318_v4 = vld [vmem:[%s8626_s6 + $0xd0] sm:$0xff]  ;;  %v2319_v44 = vld [vmem:[%s8626_s6 + $0xd8] sm:$0xff] }
 0x263   :  { %6023 = vmatpush3.bf16.msra.mxu1 %v7314_v5  ;;  %6119 = vmatpush3.bf16.msra.mxu0 %v7314_v5  ;;  %v1541_v5 = vld [vmem:[%s8625_s4 + $0x30] sm:$0xff] }
 0x264   :  { %6025 = vmatprep.subr.bf16.mxu1 %v7316_v8  ;;  %6121 = vmatprep.subr.bf16.mxu0 %v7316_v8 }
 0x265   :  { %5610 = vmatprep.mubr.f32.mxu1 %v1539_v40  ;;  %5742 = vmatprep.mubr.f32.mxu0 %v4714_v53  ;;  %v6183_v40 = vpack.c.bf16 %v2329_v3, %v2328_v51  ;;  %v2290_v53 = vld [vmem:[%s8627_s1 + $0x8] sm:$0xff]  ;;  %v4003_v51 = vld [vmem:[%s8629_s8 + $0x58] sm:$0xff]  ;;  %v6274_v3 = vpack.c.bf16 %v3998_v55, %v3996_v41 }
 0x266   :  { %5611 = vmatmul.mubr.f32.gmra.mrb[56].mxu1 %v1540_v6  ;;  %5743 = vmatmul.mubr.f32.gmra.mrb[64].mxu0 %v4715_v7  ;;  %v2330_v6 = vld [vmem:[%s8626_s6 + $0x130] sm:$0xff]  ;;  %v2331_v7 = vld [vmem:[%s8626_s6 + $0x138] sm:$0xff] }
 0x267   :  { %6027 = vmatpush3.bf16.msra.mxu1 %v7316_v8  ;;  %6123 = vmatpush3.bf16.msra.mxu0 %v7316_v8  ;;  %v4702_v8 = vld [vmem:[%s8625_s4 + $0x80] sm:$0xff]  ;;  %v4027_v41 = vld [vmem:[%s8629_s8 + $0x118] sm:$0xff] }
 0x268   :  { %6029 = vmatprep.subr.bf16.mxu1 %v7318_v18  ;;  %6125 = vmatprep.subr.bf16.mxu0 %v7318_v18 }
 0x269   :  { %5613 = vmatprep.mubr.f32.mxu1 %v1541_v5  ;;  %5745 = vmatprep.mubr.f32.mxu0 %v4716_v54  ;;  %v6162_v5 = vpack.c.bf16 %v2301_v38, %v2300_v0  ;;  %v6164_v54 = vpack.c.bf16 %v2319_v44, %v2318_v4  ;;  %v4007_v0 = vld [vmem:[%s8629_s8 + $0x78] sm:$0xff]  ;;  %v4004_v44 = vld [vmem:[%s8629_s8 + $0x60] sm:$0xff] }
 0x26a   :  { %5614 = vmatmul.mubr.f32.gmra.mrb[58].mxu1 %v1542_v15  ;;  %5746 = vmatmul.mubr.f32.gmra.mrb[66].mxu0 %v4717_v16  ;;  %v2302_v15 = vld [vmem:[%s8626_s6 + $0x50] sm:$0xff]  ;;  %v2303_v16 = vld [vmem:[%s8626_s6 + $0x58] sm:$0xff] }
 0x26b   :  { %6031 = vmatpush3.bf16.msra.mxu1 %v7318_v18  ;;  %6127 = vmatpush3.bf16.msra.mxu0 %v7318_v18  ;;  %v2309_v18 = vld [vmem:[%s8626_s6 + $0x88] sm:$0xff] }
 0x26c   :  { %6033 = vmatprep.subr.bf16.mxu1 %v7320_v20  ;;  %6129 = vmatprep.subr.bf16.mxu0 %v7320_v20  ;;  %v6144_v27 = vpack.c.bf16 %v2309_v18, %v2308_v42  ;;  %v6186_v42 = vpack.c.bf16 %v2331_v7, %v2330_v6  ;;  %v6521_v18 = vmov 0.0   ;;  %v4011_v6 = vld [vmem:[%s8629_s8 + $0x98] sm:$0xff] }
 0x26d   :  { %5648 = vmatprep.mubr.f32.mxu1 %v4702_v8  ;;  %5780 = vmatprep.mubr.f32.mxu0 %v4726_v17  ;;  %v2320_v8 = vld [vmem:[%s8626_s6 + $0xe0] sm:$0xff]  ;;  %v2321_v17 = vld [vmem:[%s8626_s6 + $0xe8] sm:$0xff] }
 0x26e   :  { %v6168_v9 = vpack.c.bf16 %v2321_v17, %v2320_v8  ;;  %v4010_v8 = vld [vmem:[%s8629_s8 + $0x90] sm:$0xff] }
 0x26f   :  { %6035 = vmatpush3.bf16.msra.mxu1 %v7320_v20  ;;  %6131 = vmatpush3.bf16.msra.mxu0 %v7320_v20  ;;  %v2324_v20 = vld [vmem:[%s8626_s6 + $0x100] sm:$0xff] }
 0x270   :  { %6037 = vmatprep.subr.bf16.mxu1 %v7322_v22  ;;  %6133 = vmatprep.subr.bf16.mxu0 %v7322_v22  ;;  %v6177_v26 = vpack.c.bf16 %v2325_v56, %v2324_v20  ;;  %v2323_v20 = vld [vmem:[%s8626_s6 + $0xf8] sm:$0xff]  ;;  %v2332_v56 = vld [vmem:[%s8626_s6 + $0x140] sm:$0x1f] }
 0x273   :  { %6039 = vmatpush3.bf16.msra.mxu1 %v7322_v22  ;;  %6135 = vmatpush3.bf16.msra.mxu0 %v7322_v22  ;;  %v6148_v22 = vpack.c.bf16 %v2311_v19, %v2310_v11  ;;  %v2305_v11 = vld [vmem:[%s8626_s6 + $0x68] sm:$0xff]  ;;  %v2322_v19 = vld [vmem:[%s8626_s6 + $0xf0] sm:$0xff] }
 0x274   :  { %6041 = vmatprep.subr.bf16.mxu1 %v7324_v25  ;;  %6137 = vmatprep.subr.bf16.mxu0 %v7324_v25 }
 0x277   :  { %6043 = vmatpush3.bf16.msra.mxu1 %v7324_v25  ;;  %6139 = vmatpush3.bf16.msra.mxu0 %v7324_v25  ;;  %v2313_v25 = vld [vmem:[%s8626_s6 + $0xa8] sm:$0xff] }
 0x278   :  { %6045 = vmatprep.subr.bf16.mxu1 %v7326_v24  ;;  %6141 = vmatprep.subr.bf16.mxu0 %v7326_v24 }
 0x27b   :  { %6047 = vmatpush3.bf16.msra.mxu1 %v7326_v24  ;;  %6143 = vmatpush3.bf16.msra.mxu0 %v7326_v24  ;;  %v6152_v24 = vpack.c.bf16 %v2313_v25, %v2312_v60  ;;  %v2492_v60 = vld [vmem:[%s8628_s7 + $0x28] sm:$0xff] }
 0x27c   :  { %6145 = vmatprep.subr.bf16.mxu1 %v6144_v27  ;;  %6176 = vmatprep.subr.bf16.mxu0 %v6519_v21  ;;  %v6166_v27 = vpack.c.bf16 %v2303_v16, %v2302_v15  ;;  %v4008_v16 = vld [vmem:[%s8629_s8 + $0x80] sm:$0xff] }
 0x27e   :  { %5649 = vmatmul.mubr.f32.vlgmr.msra.gmra.mrb[52].mxu1 %v4703_v12  ;;  %5781 = vmatmul.mubr.f32.vlgmr.msra.gmra.mrb[60].mxu0 %v4727_v13  ;;  %v6170_v12 = vpack.c.bf16 %v2305_v11, %v2304_v10  ;;  %v2291_v13 = vld [vmem:[%s8627_s1 + $0x10] sm:$0xff]  ;;  %v4015_v10 = vld [vmem:[%s8629_s8 + $0xb8] sm:$0xff] }
 0x27f   :  { %6147 = vmatpush3.bf16.msra.mxu1 %v6146_v14  ;;  %5651 = vmatprep.mubr.f32.mxu1 %v4704_v57  ;;  %v6172_v14 = vpack.c.bf16 %v2323_v20, %v2322_v19  ;;  %v2306_v57 = vld [vmem:[%s8626_s6 + $0x70] sm:$0xff]  ;;  %v6286_v19 = vpack.c.bf16 %v4010_v8, %v4008_v16 }
 0x280   :  { %5783 = vmatprep.mubr.f32.mxu0 %v4728_v59  ;;  %6149 = vmatprep.subr.bf16.mxu1 %v6148_v22  ;;  %v2307_v22 = vld [vmem:[%s8626_s6 + $0x78] sm:$0xff]  ;;  %v2488_v59 = vld [vmem:[%s8628_s7 + $0x8] sm:$0xff]  ;;  %v4034_v16 = vld [vmem:[%s8629_s8 + $0x150] sm:$0xff] }
 0x281   :  { %6178 = vmatpush3.bf16.msra.mxu0 %v6177_v26  ;;  %v6174_v23 = vpack.c.bf16 %v2307_v22, %v2306_v57  ;;  %v6188_v25 = vpack.c.bf16 %v2492_v60, %v2488_v59  ;;  %v2487_v26 = vld [vmem:[%s8628_s7] sm:$0xff]  ;;  %v4019_v59 = vld [vmem:[%s8629_s8 + $0xd8] sm:$0xff] }
 0x282   :  { %5652 = vmatmul.mubr.f32.gmra.mrb[54].mxu1 %v4705_v28  ;;  %5784 = vmatmul.mubr.f32.gmra.mrb[62].mxu0 %v4729_v30  ;;  %v2491_v28 = vld [vmem:[%s8628_s7 + $0x20] sm:$0xff] }
 0x283   :  { %6151 = vmatpush3.bf16.msra.mxu1 %v6150_v32  ;;  %5654 = vmatprep.mubr.f32.mxu1 %v4706_v39  ;;  %v6190_v30 = vpack.c.bf16 %v2491_v28, %v2487_v26  ;;  %v2496_v32 = vld [vmem:[%s8628_s7 + $0x48] sm:$0xff] }
 0x284   :  { %5786 = vmatprep.mubr.f32.mxu0 %v4730_v45  ;;  %6153 = vmatprep.subr.bf16.mxu1 %v6152_v24  ;;  %v2500_v39 = vld [vmem:[%s8628_s7 + $0x68] sm:$0xff]  ;;  %v6194_v45 = vpack.c.bf16 %v2499_v52, %v2495_v49 }
 0x285   :  { %6179 = vmatprep.subr.bf16.mxu0 %v6519_v21  ;;  %v6192_v24 = vpack.c.bf16 %v2500_v39, %v2496_v32  ;;  %v4016_v32 = vld [vmem:[%s8629_s8 + $0xc0] sm:$0xff]  ;;  %v4018_v39 = vld [vmem:[%s8629_s8 + $0xd0] sm:$0xff] }
 0x286   :  { %5655 = vmatmul.mubr.f32.gmra.mrb[56].mxu1 %v4707_v63  ;;  %5787 = vmatmul.mubr.f32.gmra.mrb[64].mxu0 %v4731_v47  ;;  %v3995_v63 = vld [vmem:[%s8629_s8 + $0x18] sm:$0xff]  ;;  %v3992_v47 = vld [vmem:[%s8629_s8] sm:$0xff] }
 0x287   :  { %6155 = vmatpush3.bf16.msra.mxu1 %v6154_v48  ;;  %5657 = vmatprep.mubr.f32.mxu1 %v4708_v1  ;;  %v6268_v48 = vpack.c.bf16 %v3995_v63, %v3993_v62  ;;  %v3994_v1 = vld [vmem:[%s8629_s8 + $0x10] sm:$0xff] }
 0x288   :  { %5789 = vmatprep.mubr.f32.mxu0 %v4732_v37  ;;  %6157 = vmatprep.subr.bf16.mxu1 %v6156_v2  ;;  %v3997_v2 = vld [vmem:[%s8629_s8 + $0x28] sm:$0xff]  ;;  %v6270_v36 = vpack.c.bf16 %v3994_v1, %v3992_v47  ;;  %v4022_v1 = vld [vmem:[%s8629_s8 + $0xf0] sm:$0xff] }
 0x289   :  { %6181 = vmatpush3.bf16.msra.mxu0 %v6180_v50  ;;  %v6272_v37 = vpack.c.bf16 %v3999_v33, %v3997_v2  ;;  %v4001_v50 = vld [vmem:[%s8629_s8 + $0x48] sm:$0xff] }
 0x28a   :  { %5658 = vmatmul.mubr.f32.gmra.mrb[58].mxu1 %v4709_v31  ;;  %5790 = vmatmul.mubr.f32.gmra.mrb[66].mxu0 %v4733_v43  ;;  %v6276_v31 = vpack.c.bf16 %v4003_v51, %v4001_v50  ;;  %v4000_v43 = vld [vmem:[%s8629_s8 + $0x40] sm:$0xff] }
 0x28b   :  { %6159 = vmatpush3.bf16.msra.mxu1 %v6158_v61  ;;  %6182 = vmatprep.subr.bf16.mxu0 %v6519_v21  ;;  %v4002_v61 = vld [vmem:[%s8629_s8 + $0x50] sm:$0xff] }
 0x28c   :  { %6161 = vmatprep.subr.bf16.mxu1 %v6160_v46  ;;  %2410 = vmatprep.mubr.f32.mxu1 %v2290_v53  ;;  %v4005_v46 = vld [vmem:[%s8629_s8 + $0x68] sm:$0xff]  ;;  %v6278_v38 = vpack.c.bf16 %v4002_v61, %v4000_v43  ;;  %v4031_v61 = vld [vmem:[%s8629_s8 + $0x138] sm:$0xff] }
 0x28d   :  { %6184 = vmatpush3.bf16.msra.mxu0 %v6183_v40  ;;  %5810 = vmatprep.mubr.msk.f32.mxu0 %vm6520_vm3, %v6521_v18  ;;  %v6280_v4 = vpack.c.bf16 %v4007_v0, %v4005_v46  ;;  %v4006_v40 = vld [vmem:[%s8629_s8 + $0x70] sm:$0xff]  ;;  %v4009_v53 = vld [vmem:[%s8629_s8 + $0x88] sm:$0xff] }
 0x28e   :  { %6185 = vmatprep.subr.bf16.mxu0 %v6519_v21  ;;  %v6282_v7 = vpack.c.bf16 %v4006_v40, %v4004_v44  ;;  %v6284_v15 = vpack.c.bf16 %v4011_v6, %v4009_v53  ;;  %v4029_v43 = vld [vmem:[%s8629_s8 + $0x128] sm:$0xff]  ;;  %v4035_v40 = vld [vmem:[%s8629_s8 + $0x158] sm:$0xff] }
 0x28f   :  { %6163 = vmatpush3.bf16.msra.mxu1 %v6162_v5  ;;  %v6304_v0 = vpack.c.bf16 %v4031_v61, %v4029_v43  ;;  %v4033_v44 = vld [vmem:[%s8629_s8 + $0x148] sm:$0xff]  ;;  %v2502_v61 = vld [vmem:[%s8628_s7 + $0x78] sm:$0xff] }
 0x290   :  { %6165 = vmatprep.subr.bf16.mxu1 %v6164_v54 }
 0x291   :  { %6187 = vmatpush3.bf16.msra.mxu0 %v6186_v42 }
 0x292   :  { %5808 = vmatprep.subr.mxu0 %v6521_v18 }
 0x293   :  { %6167 = vmatpush3.bf16.msra.mxu1 %v6166_v27 }
 0x294   :  { %6169 = vmatprep.subr.bf16.mxu1 %v6168_v9  ;;  %v4013_v9 = vld [vmem:[%s8629_s8 + $0xa8] sm:$0xff] }
 0x295   :  { %5809 = vmatpush3.msk.msra.mxu0 %vm2342_vm4, %v2332_v56 }
 0x296   :  { %5811 = vmatmul.mubr.msk.f32.vlgmr.msra.gmra.mrb[68].mxu0 %vm2338_vm5, %v2291_v13  ;;  %6269 = vmatprep.subr.bf16.mxu0 %v6268_v48  ;;  %v4012_v13 = vld [vmem:[%s8629_s8 + $0xa0] sm:$0xff] }
 0x297   :  { %6171 = vmatpush3.bf16.msra.mxu1 %v6170_v12  ;;  %6271 = vmatpush1.bf16.msra.mxu0 %v6270_v36  ;;  %v6288_v12 = vpack.c.bf16 %v4015_v10, %v4013_v9  ;;  %v4020_v48 = vld [vmem:[%s8629_s8 + $0xe0] sm:$0xff]  ;;  %v4037_v9 = vld [vmem:[%s8629_s8 + $0x168] sm:$0xff]  ;;  %v4039_v10 = vld [vmem:[%s8629_s8 + $0x178] sm:$0xff] }
 0x298   :  { %6173 = vmatprep.subr.bf16.mxu1 %v6172_v14  ;;  %6273 = vmatprep.subr.bf16.mxu0 %v6272_v37  ;;  %v4014_v14 = vld [vmem:[%s8629_s8 + $0xb0] sm:$0xff]  ;;  %v4025_v37 = vld [vmem:[%s8629_s8 + $0x108] sm:$0xff]  ;;  %v6298_v50 = vpack.c.bf16 %v4022_v1, %v4020_v48  ;;  %v4047_v48 = vld [vmem:[%s8629_s8 + $0x1b8] sm:$0xff] }
 0x299   :  { %v6300_v51 = vpack.c.bf16 %v4027_v41, %v4025_v37  ;;  %v7916_v37 = vld [vmem:[%s8630_s12] ss:$0 sm:$0xff] }
 0x29b   :  { %6175 = vmatpush3.bf16.msra.mxu1 %v6174_v23  ;;  %6275 = vmatpush1.bf16.msra.mxu0 %v6274_v3  ;;  %v4024_v3 = vld [vmem:[%s8629_s8 + $0x100] sm:$0xff] }
 0x29c   :  { %6189 = vmatprep.subr.bf16.mxu1 %v6188_v25  ;;  %6277 = vmatprep.subr.bf16.mxu0 %v6276_v31  ;;  %v6290_v25 = vpack.c.bf16 %v4014_v14, %v4012_v13  ;;  %v4026_v31 = vld [vmem:[%s8629_s8 + $0x110] sm:$0xff]  ;;  %v4036_v13 = vld [vmem:[%s8629_s8 + $0x160] sm:$0xff] }
 0x29d   :  { %v6302_v46 = vpack.c.bf16 %v4026_v31, %v4024_v3  ;;  %v4038_v14 = vld [vmem:[%s8629_s8 + $0x170] sm:$0xff]  ;;  %v2498_v31 = vld [vmem:[%s8628_s7 + $0x58] sm:$0xff] }
 0x29e   :  { %2411 = vmatmul.mubr.f32.vlgmr.msra.gmra.mrb[60].mxu1 %v2289_v58  ;;  %v4017_v58 = vld [vmem:[%s8629_s8 + $0xc8] sm:$0xff]  ;;  %v2493_v3 = vld [vmem:[%s8628_s7 + $0x30] sm:$0xff] }
 0x29f   :  { %2592 = vmatprep.mubr.f32.mxu1 %v6521_v18  ;;  %6191 = vmatpush1.bf16.msra.mxu1 %v6190_v30  ;;  %v6292_v30 = vpack.c.bf16 %v4019_v59, %v4017_v58  ;;  %v4041_v58 = vld [vmem:[%s8629_s8 + $0x188] sm:$0xff]  ;;  %v4043_v59 = vld [vmem:[%s8629_s8 + $0x198] sm:$0xff] }
 0x2a0   :  { %6193 = vmatprep.subr.bf16.mxu1 %v6192_v24  ;;  %6279 = vmatpush1.bf16.msra.mxu0 %v6278_v38  ;;  %v4028_v38 = vld [vmem:[%s8629_s8 + $0x120] sm:$0xff] }
 0x2a1   :  { %6281 = vmatprep.subr.bf16.mxu0 %v6280_v4  ;;  %v4030_v4 = vld [vmem:[%s8629_s8 + $0x130] sm:$0xff] }
 0x2a2   :  { %v6306_v53 = vpack.c.bf16 %v4030_v4, %v4028_v38 }
 0x2a3   :  { %6195 = vmatpush1.bf16.msra.mxu1 %v6194_v45  ;;  %v4021_v45 = vld [vmem:[%s8629_s8 + $0xe8] sm:$0xff] }
 0x2a4   :  { %6197 = vmatprep.subr.bf16.mxu1 %v6196_v35  ;;  %6283 = vmatpush1.bf16.msra.mxu0 %v6282_v7  ;;  %v6294_v35 = vpack.c.bf16 %v4018_v39, %v4016_v32  ;;  %v6296_v47 = vpack.c.bf16 %v4023_v29, %v4021_v45  ;;  %v6308_v7 = vpack.c.bf16 %v4035_v40, %v4033_v44  ;;  %v4040_v39 = vld [vmem:[%s8629_s8 + $0x180] sm:$0xff]  ;;  %v4042_v45 = vld [vmem:[%s8629_s8 + $0x190] sm:$0xff] }
 0x2a5   :  { %6285 = vmatprep.subr.bf16.mxu0 %v6284_v15  ;;  %v4032_v15 = vld [vmem:[%s8629_s8 + $0x140] sm:$0xff]  ;;  %v6316_v32 = vpack.c.bf16 %v4043_v59, %v4041_v58  ;;  %v6318_v41 = vpack.c.bf16 %v4042_v45, %v4040_v39 }
 0x2a6   :  { %v7985_v39 = vld [vmem:[%s8630_s12 + $0x2] ss:$0 sm:$0xff] }
 0x2a8   :  { %6287 = vmatpush1.bf16.msra.mxu0 %v6286_v19  ;;  %v6310_v19 = vpack.c.bf16 %v4034_v16, %v4032_v15  ;;  %v2501_v15 = vld [vmem:[%s8628_s7 + $0x70] sm:$0xff] }
 0x2a9   :  { %6289 = vmatprep.subr.bf16.mxu0 %v6288_v12  ;;  %v6312_v12 = vpack.c.bf16 %v4039_v10, %v4037_v9  ;;  %v2670_v9 = vld [vmem:[%s8631_s5] sm:$0xff] }
 0x2aa   :  { %v2674_v10 = vld [vmem:[%s8631_s5 + $0x20] sm:$0xff] }
 0x2ac   :  { %6291 = vmatpush1.bf16.msra.mxu0 %v6290_v25  ;;  %v6314_v25 = vpack.c.bf16 %v4038_v14, %v4036_v13  ;;  %v2677_v13 = vld [vmem:[%s8631_s5 + $0x38] sm:$0xff]  ;;  %v6206_v14 = vpack.c.bf16 %v2674_v10, %v2670_v9  ;;  %v4764_v10 = vld [vmem:[%s8631_s5 + $0xc0] sm:$0xff] }
 0x2ad   :  { %6293 = vmatprep.subr.bf16.mxu0 %v6292_v30 }
 0x2b0   :  { %6295 = vmatpush1.bf16.msra.mxu0 %v6294_v35  ;;  %v4737_v35 = vld [vmem:[%s8624_s11 + $0x3] ss:$0 sm:$0xff] }
 0x2b1   :  { %6297 = vmatprep.subr.bf16.mxu0 %v6296_v47  ;;  %v4045_v47 = vld [vmem:[%s8629_s8 + $0x1a8] sm:$0xff] }
 0x2b2   :  { %v6320_v43 = vpack.c.bf16 %v4047_v48, %v4045_v47  ;;  %v4744_v47 = vld [vmem:[%s8631_s5 + $0x40] sm:$0xff] }
 0x2b3   :  { %v4748_v48 = vld [vmem:[%s8631_s5 + $0x60] sm:$0xff] }
 0x2b4   :  { %6299 = vmatpush1.bf16.msra.mxu0 %v6298_v50 }
 0x2b5   :  { %6301 = vmatprep.subr.bf16.mxu0 %v6300_v51  ;;  %v2489_v51 = vld [vmem:[%s8628_s7 + $0x10] sm:$0xff] }
 0x2b6   :  { %v6198_v4 = vpack.c.bf16 %v2493_v3, %v2489_v51 }
 0x2b8   :  { %6303 = vmatpush1.bf16.msra.mxu0 %v6302_v46  ;;  %v4044_v46 = vld [vmem:[%s8629_s8 + $0x1a0] sm:$0xff] }
 0x2b9   :  { %6305 = vmatprep.subr.bf16.mxu0 %v6304_v0  ;;  %v4046_v0 = vld [vmem:[%s8629_s8 + $0x1b0] sm:$0xff] }
 0x2ba   :  { %v6322_v16 = vpack.c.bf16 %v4046_v0, %v4044_v46  ;;  %v4755_v46 = vld [vmem:[%s8631_s5 + $0x88] sm:$0xff] }
 0x2bc   :  { %6307 = vmatpush1.bf16.msra.mxu0 %v6306_v53  ;;  %v6200_v53 = vpack.c.bf16 %v2502_v61, %v2498_v31  ;;  %v4750_v61 = vld [vmem:[%s8631_s5 + $0x70] sm:$0xff] }
 0x2bd   :  { %6309 = vmatprep.subr.bf16.mxu0 %v6308_v7  ;;  %v2497_v7 = vld [vmem:[%s8628_s7 + $0x50] sm:$0xff] }
 0x2c0   :  { %6311 = vmatpush1.bf16.msra.mxu0 %v6310_v19  ;;  %v7963_v19 = vld [vmem:[%s8630_s12 + $0x1] ss:$0 sm:$0xff] }
 0x2c1   :  { %6313 = vmatprep.subr.bf16.mxu0 %v6312_v12  ;;  %v2673_v12 = vld [vmem:[%s8631_s5 + $0x18] sm:$0xff] }
 0x2c4   :  { %6315 = vmatpush1.bf16.msra.mxu0 %v6314_v25  ;;  %v6208_v25 = vpack.c.bf16 %v2677_v13, %v2673_v12  ;;  %v4768_v12 = vld [vmem:[%s8631_s5 + $0xe0] sm:$0xff]  ;;  %v4767_v13 = vld [vmem:[%s8631_s5 + $0xd8] sm:$0xff] }
 0x2c5   :  { %6317 = vmatprep.subr.bf16.mxu0 %v6316_v32  ;;  %v2676_v32 = vld [vmem:[%s8631_s5 + $0x30] sm:$0xff] }
 0x2c8   :  { %6319 = vmatpush1.bf16.msra.mxu0 %v6318_v41  ;;  %v4751_v41 = vld [vmem:[%s8631_s5 + $0x78] sm:$0xff] }
 0x2c9   :  { %6321 = vmatprep.subr.bf16.mxu0 %v6320_v43  ;;  %v4746_v43 = vld [vmem:[%s8631_s5 + $0x50] sm:$0xff] }
 0x2cc   :  { %6323 = vmatpush1.bf16.msra.mxu0 %v6322_v16 }
 0x351   :  { %v7754_v5 = vpop.f32.mrb[52].mxu1  ;;  %v7756_v54 = vpop.f32.mrb[60].mxu0 }
 0x352   :  { %v2235_v17 = vmax.f32 %v7754_v5, %v7756_v54  ;;  %v7766_v42 = vpop.f32.mrb[53].mxu1  ;;  %v7768_v27 = vpop.f32.mrb[61].mxu0  ;;  %v4745_v5 = vld [vmem:[%s8631_s5 + $0x48] sm:$0xff] }
 0x353   :  { %v2234_v11 = vmax.f32 %v7766_v42, %v7768_v27  ;;  %v2675_v42 = vld [vmem:[%s8631_s5 + $0x28] sm:$0xff]  ;;  %v6202_v27 = vpack.c.bf16 %v2501_v15, %v2497_v7 }
 0x354   :  { %v2248_v58 = vadd.f32 %v7916_v37, %v2235_v17  ;;  %v4749_v54 = vld [vmem:[%s8631_s5 + $0x68] sm:$0xff] }
 0x355   :  { %v7778_v20 = vpop.f32.mrb[54].mxu1  ;;  %v7780_v56 = vpop.f32.mrb[62].mxu0  ;;  %v2247_v44 = vadd.f32 %v7916_v37, %v2234_v11 }
 0x356   :  { %v2237_v57 = vmax.f32 %v7778_v20, %v7780_v56  ;;  %v7790_v22 = vpop.f32.mrb[55].mxu1  ;;  %v7792_v23 = vpop.f32.mrb[63].mxu0  ;;  %v2256_v45 = vmax.f32 %v2248_v58, 0.0  ;;  %v4769_v20 = vld [vmem:[%s8631_s5 + $0xe8] sm:$0xff]  ;;  %v6230_v58 = vpack.c.bf16 %v4768_v12, %v4764_v10  ;;  %v4796_v10 = vld [vmem:[%s8631_s5 + $0x190] sm:$0xff] }
 0x357   :  { %v2236_v60 = vmax.f32 %v7790_v22, %v7792_v23  ;;  %v2255_v11 = vmax.f32 %v2247_v44, 0.0  ;;  %v4759_v22 = vld [vmem:[%s8631_s5 + $0xa8] sm:$0xff]  ;;  %v6218_v23 = vpack.c.bf16 %v4750_v61, %v4746_v43  ;;  %v4758_v44 = vld [vmem:[%s8631_s5 + $0xa0] sm:$0xff]  ;;  %v4800_v12 = vld [vmem:[%s8631_s5 + $0x1b0] sm:$0xff] }
 0x358   :  { %v2269_v51 = vmul.f32 %v7963_v19, %v2256_v45  ;;  %v2250_v15 = vadd.f32 %v7916_v37, %v2237_v57  ;;  %v4785_v43 = vld [vmem:[%s8631_s5 + $0x148] sm:$0xff] }
 0x359   :  { %v7802_v26 = vpop.f32.mrb[56].mxu1  ;;  %v7804_v28 = vpop.f32.mrb[64].mxu0  ;;  %v2268_v59 = vmul.f32 %v7963_v19, %v2255_v11  ;;  %v2249_v3 = vadd.f32 %v7916_v37, %v2236_v60  ;;  %v4765_v11 = vld [vmem:[%s8631_s5 + $0xc8] sm:$0xff] }
 0x35a   :  { %v2239_v24 = vmax.f32 %v7802_v26, %v7804_v28  ;;  %v7814_v49 = vpop.f32.mrb[57].mxu1  ;;  %v7816_v52 = vpop.f32.mrb[65].mxu0  ;;  %v2282_v60 = vadd.f32 %v7985_v39, %v2269_v51  ;;  %v2258_v57 = vmax.f32 %v2250_v15, 0.0  ;;  %v6228_v9 = vpack.c.bf16 %v4769_v20, %v4765_v11  ;;  %v4789_v26 = vld [vmem:[%s8631_s5 + $0x168] sm:$0xff]  ;;  %v4797_v11 = vld [vmem:[%s8631_s5 + $0x198] sm:$0xff] }
 0x35b   :  { %v2238_v34 = vmax.f32 %v7814_v49, %v7816_v52  ;;  %v2257_v0 = vmax.f32 %v2249_v3, 0.0  ;;  %v4779_v49 = vld [vmem:[%s8631_s5 + $0x128] sm:$0xff]  ;;  %v4776_v3 = vld [vmem:[%s8631_s5 + $0x110] sm:$0xff]  ;;  %v4801_v20 = vld [vmem:[%s8631_s5 + $0x1b8] sm:$0xff] }
 0x35c   :  { %v4795_v15 = vld [vmem:[%s8631_s5 + $0x188] sm:$0xff] }
 0x35d   :  { %v7826_v62 = vpop.f32.mrb[58].mxu1  ;;  %v7828_v63 = vpop.f32.mrb[66].mxu0  ;;  %v2270_v16 = vmul.f32 %v7963_v19, %v2257_v0  ;;  %v4791_v0 = vld [vmem:[%s8631_s5 + $0x178] sm:$0xff] }
 0x35e   :  { %v2241_v2 = vmax.f32 %v7826_v62, %v7828_v63  ;;  %v7838_v33 = vpop.f32.mrb[59].mxu1  ;;  %v7840_v36 = vpop.f32.mrb[67].mxu0  ;;  %v4809_v62 = vld [vmem:[%s8631_s5 + $0x1e8] sm:$0xff]  ;;  %v6258_v63 = vpack.c.bf16 %v4800_v12, %v4796_v10  ;;  %v4332_v12 = vld [vmem:[%s8632_s9 + $0xd0] sm:$0xff] }
 0x35f   :  { %v2240_v55 = vmax.f32 %v7838_v33, %v7840_v36  ;;  %v4799_v33 = vld [vmem:[%s8631_s5 + $0x1a8] sm:$0xff] }
 0x360   :  { %v4315_v10 = vld [vmem:[%s8632_s9 + $0x48] sm:$0xff] }
 0x369   :  { %v2482_v6 = vpop.f32.mrb[68].mxu0 }
 0x36a   :  { %v5812_v8 = vpop.f32.mrb[69].mxu0 }
 0x371   :  { %v5175_v30 = vpop.f32.mrb[60].mxu1 }
 0x372   :  { %v5176_v29 = vpop.f32.mrb[61].mxu1 }
 0x373   :  { %v5177_v1 = vadd.f32 %v5176_v29, %v5175_v30  ;;  %v2672_v30 = vld [vmem:[%s8631_s5 + $0x10] sm:$0xff]  ;;  %v2281_v29 = vadd.f32 %v7985_v39, %v2268_v59  ;;  %v2271_v59 = vmul.f32 %v7963_v19, %v2258_v57  ;;  %v2254_v57 = vadd.f32 %v7916_v37, %v2241_v2 }
 0x374   :  { %v6210_v17 = vpack.c.bf16 %v2676_v32, %v2672_v30  ;;  %v4766_v32 = vld [vmem:[%s8631_s5 + $0xd0] sm:$0xff] }
 0x375   :  { %v2413_v50 = vadd.f32 %v5177_v1, %v4737_v35  ;;  %v6212_v35 = vpack.c.bf16 %v4749_v54, %v4745_v5  ;;  %v4747_v1 = vld [vmem:[%s8631_s5 + $0x58] sm:$0xff]  ;;  %v4770_v5 = vld [vmem:[%s8631_s5 + $0xf0] sm:$0xff]  ;;  %v4775_v54 = vld [vmem:[%s8631_s5 + $0x108] sm:$0xff]  ;;  %v2262_v2 = vmax.f32 %v2254_v57, 0.0 }
 0x376   :  { %v6216_v31 = vpack.c.bf16 %v4751_v41, %v4747_v1  ;;  %v6234_v52 = vpack.c.bf16 %v4770_v5, %v4766_v32  ;;  %v6236_v45 = vpack.c.bf16 %v4779_v49, %v4775_v54  ;;  %v2252_v41 = vadd.f32 %v7916_v37, %v2239_v24  ;;  %v4806_v49 = vld [vmem:[%s8631_s5 + $0x1d0] sm:$0xff] }
 0x377   :  { %v2483_v38 = vadd.f32 %v2482_v6, %v2413_v50  ;;  %v2671_v6 = vld [vmem:[%s8631_s5 + $0x8] sm:$0xff]  ;;  %v6214_v50 = vpack.c.bf16 %v4748_v48, %v4744_v47  ;;  %v4777_v47 = vld [vmem:[%s8631_s5 + $0x118] sm:$0xff]  ;;  %v2275_v5 = vmul.f32 %v7963_v19, %v2262_v2  ;;  %v2505_v2 = vlaneseq }
 0x378   :  { %v6204_v8 = vpack.c.bf16 %v2675_v42, %v2671_v6  ;;  %v4756_v42 = vld [vmem:[%s8631_s5 + $0x90] sm:$0xff]  ;;  %v4781_v48 = vld [vmem:[%s8631_s5 + $0x138] sm:$0xff]  ;;  %v2260_v24 = vmax.f32 %v2252_v41, 0.0 }
 0x379   :  { %v2486_v40 = vmax.f32 %v2483_v38, 0.0  ;;  %v6220_v38 = vpack.c.bf16 %v4759_v22, %v4755_v46  ;;  %v6240_v51 = vpack.c.bf16 %v4781_v48, %v4777_v47  ;;  %v6244_v46 = vpack.c.bf16 %v4789_v26, %v4785_v43  ;;  %v4784_v22 = vld [vmem:[%s8631_s5 + $0x140] sm:$0xff]  ;;  %v4053_v48 = vld [vmem:[%s8629_s8 + $0x1e8] sm:$0xff]  ;;  %v4059_v43 = vld [vmem:[%s8629_s8 + $0x218] sm:$0xff] }
 0x37b   :  { %4740 = vmatmul.mubr.msk.f32.vlgmr.msra.gmra.mrb[62].mxu1 %vm1041_vm2, %v2486_v40 }
 0x37c   :  { %6199 = vmatpush1.bf16.msra.mxu1 %v6198_v4  ;;  %2663 = vmatprep.mubr.f32.mxu1 %v6521_v18  ;;  %v4754_v4 = vld [vmem:[%s8631_s5 + $0x80] sm:$0xff] }
 0x37d   :  { %6201 = vmatprep.subr.bf16.mxu1 %v6200_v53  ;;  %v4761_v53 = vld [vmem:[%s8631_s5 + $0xb8] sm:$0xff]  ;;  %v6222_v7 = vpack.c.bf16 %v4758_v44, %v4754_v4  ;;  %v2273_v4 = vmul.f32 %v7963_v19, %v2260_v24  ;;  %v2253_v44 = vadd.f32 %v7916_v37, %v2240_v55  ;;  %v4323_v24 = vld [vmem:[%s8632_s9 + $0x88] sm:$0xff] }
 0x37f   :  { %v2286_v55 = vadd.f32 %v7985_v39, %v2273_v4  ;;  %v4308_v4 = vld [vmem:[%s8632_s9 + $0x10] sm:$0xff] }
 0x380   :  { %6203 = vmatpush1.bf16.msra.mxu1 %v6202_v27  ;;  %v4760_v27 = vld [vmem:[%s8631_s5 + $0xb0] sm:$0xff] }
 0x381   :  { %6205 = vmatprep.subr.bf16.mxu1 %v6204_v8  ;;  %v6226_v56 = vpack.c.bf16 %v4760_v27, %v4756_v42  ;;  %v2283_v8 = vadd.f32 %v7985_v39, %v2270_v16  ;;  %v2261_v16 = vmax.f32 %v2253_v44, 0.0  ;;  %v4794_v42 = vld [vmem:[%s8631_s5 + $0x180] sm:$0xff]  ;;  %v4309_v44 = vld [vmem:[%s8632_s9 + $0x18] sm:$0xff] }
 0x382   :  { %v4798_v27 = vld [vmem:[%s8631_s5 + $0x1a0] sm:$0xff] }
 0x383   :  { %4741 = vmatmul.mubr.msk.f32.vlgmr.msra.gmra.mrb[64].mxu1 %vm1041_vm2, %v2486_v40  ;;  %v4757_v40 = vld [vmem:[%s8631_s5 + $0x98] sm:$0xff] }
 0x384   :  { %6207 = vmatpush1.bf16.msra.mxu1 %v6206_v14  ;;  %2746 = vmatprep.mubr.f32.mxu1 %v6521_v18  ;;  %v6224_v6 = vpack.c.bf16 %v4761_v53, %v4757_v40  ;;  %v4771_v14 = vld [vmem:[%s8631_s5 + $0xf8] sm:$0xff]  ;;  %v4786_v53 = vld [vmem:[%s8631_s5 + $0x150] sm:$0xff] }
 0x385   :  { %6209 = vmatprep.subr.bf16.mxu1 %v6208_v25  ;;  %v2251_v25 = vadd.f32 %v7916_v37, %v2238_v34  ;;  %v6232_v30 = vpack.c.bf16 %v4771_v14, %v4767_v13  ;;  %v2284_v34 = vadd.f32 %v7985_v39, %v2271_v59  ;;  %v4805_v13 = vld [vmem:[%s8631_s5 + $0x1c8] sm:$0xff]  ;;  %v4808_v59 = vld [vmem:[%s8631_s5 + $0x1e0] sm:$0xff] }
 0x386   :  { %v6260_v14 = vpack.c.bf16 %v4809_v62, %v4805_v13  ;;  %v4333_v13 = vld [vmem:[%s8632_s9 + $0xd8] sm:$0xff] }
 0x387   :  { %4742 = vmatmul.mubr.msk.f32.vlgmr.msra.gmra.mrb[62].mxu1 %vm2678_vm6, %v2281_v29 }
 0x388   :  { %6211 = vmatpush1.bf16.msra.mxu1 %v6210_v17  ;;  %2817 = vmatprep.mubr.f32.mxu1 %v6521_v18  ;;  %v2259_v17 = vmax.f32 %v2251_v25, 0.0  ;;  %v4807_v25 = vld [vmem:[%s8631_s5 + $0x1d8] sm:$0xff] }
 0x389   :  { %6213 = vmatprep.subr.bf16.mxu1 %v6212_v35  ;;  %v4778_v35 = vld [vmem:[%s8631_s5 + $0x120] sm:$0xff] }
 0x38b   :  { %4743 = vmatmul.mubr.msk.f32.vlgmr.msra.gmra.mrb[64].mxu1 %vm2678_vm6, %v2281_v29  ;;  %v4774_v29 = vld [vmem:[%s8631_s5 + $0x100] sm:$0xff] }
 0x38c   :  { %6215 = vmatpush1.bf16.msra.mxu1 %v6214_v50  ;;  %2904 = vmatprep.mubr.f32.mxu1 %v6521_v18  ;;  %v6238_v1 = vpack.c.bf16 %v4778_v35, %v4774_v29  ;;  %v2272_v50 = vmul.f32 %v7963_v19, %v2259_v17  ;;  %v2288_v17 = vadd.f32 %v7985_v39, %v2275_v5  ;;  %v4050_v35 = vld [vmem:[%s8629_s8 + $0x1d0] sm:$0xff] }
 0x38d   :  { %6217 = vmatprep.subr.bf16.mxu1 %v6216_v31  ;;  %v4780_v31 = vld [vmem:[%s8631_s5 + $0x130] sm:$0xff] }
 0x38e   :  { %v6242_v28 = vpack.c.bf16 %v4780_v31, %v4776_v3  ;;  %v2285_v61 = vadd.f32 %v7985_v39, %v2272_v50  ;;  %v4052_v50 = vld [vmem:[%s8629_s8 + $0x1e0] sm:$0xff]  ;;  %v4057_v31 = vld [vmem:[%s8629_s8 + $0x208] sm:$0xff] }
 0x38f   :  { %4752 = vmatmul.mubr.msk.f32.vlgmr.msra.gmra.mrb[62].mxu1 %vm2678_vm6, %v2282_v60  ;;  %v6332_v26 = vpack.c.bf16 %v4059_v43, %v4057_v31 }
 0x390   :  { %6219 = vmatpush1.bf16.msra.mxu1 %v6218_v23  ;;  %2975 = vmatprep.mubr.f32.mxu1 %v6521_v18  ;;  %v4788_v23 = vld [vmem:[%s8631_s5 + $0x160] sm:$0xff] }
 0x391   :  { %6221 = vmatprep.subr.bf16.mxu1 %v6220_v38  ;;  %v6246_v38 = vpack.c.bf16 %v4788_v23, %v4784_v22  ;;  %v4307_v22 = vld [vmem:[%s8632_s9 + $0x8] sm:$0xff]  ;;  %v4324_v23 = vld [vmem:[%s8632_s9 + $0x90] sm:$0xff] }
 0x393   :  { %4753 = vmatmul.mubr.msk.f32.vlgmr.msra.gmra.mrb[64].mxu1 %vm2678_vm6, %v2282_v60  ;;  %v4787_v60 = vld [vmem:[%s8631_s5 + $0x158] sm:$0xff] }
 0x394   :  { %6223 = vmatpush1.bf16.msra.mxu1 %v6222_v7  ;;  %3062 = vmatprep.mubr.f32.mxu1 %v6521_v18  ;;  %v6248_v40 = vpack.c.bf16 %v4791_v0, %v4787_v60  ;;  %v4790_v7 = vld [vmem:[%s8631_s5 + $0x170] sm:$0xff]  ;;  %v4325_v60 = vld [vmem:[%s8632_s9 + $0x98] sm:$0xff] }
 0x395   :  { %6225 = vmatprep.subr.bf16.mxu1 %v6224_v6  ;;  %v6250_v36 = vpack.c.bf16 %v4790_v7, %v4786_v53  ;;  %v6252_v6 = vpack.c.bf16 %v4799_v33, %v4795_v15  ;;  %v4327_v53 = vld [vmem:[%s8632_s9 + $0xa8] sm:$0xff]  ;;  %v6402_v7 = vpack.c.bf16 %v4309_v44, %v4308_v4  ;;  %v4310_v33 = vld [vmem:[%s8632_s9 + $0x20] sm:$0xff] }
 0x397   :  { %4762 = vmatmul.mubr.msk.f32.vlgmr.msra.gmra.mrb[62].mxu1 %vm2678_vm6, %v2283_v8 }
 0x398   :  { %6227 = vmatpush1.bf16.msra.mxu1 %v6226_v56  ;;  %3133 = vmatprep.mubr.f32.mxu1 %v6521_v18  ;;  %v6254_v56 = vpack.c.bf16 %v4798_v27, %v4794_v42  ;;  %v4312_v27 = vld [vmem:[%s8632_s9 + $0x30] sm:$0xff] }
 0x399   :  { %6229 = vmatprep.subr.bf16.mxu1 %v6228_v9  ;;  %v6256_v9 = vpack.c.bf16 %v4801_v20, %v4797_v11  ;;  %v4313_v11 = vld [vmem:[%s8632_s9 + $0x38] sm:$0xff]  ;;  %v4330_v20 = vld [vmem:[%s8632_s9 + $0xc0] sm:$0xff] }
 0x39a   :  { %v6410_v57 = vpack.c.bf16 %v4313_v11, %v4312_v27 }
 0x39b   :  { %4763 = vmatmul.mubr.msk.f32.vlgmr.msra.gmra.mrb[64].mxu1 %vm2678_vm6, %v2283_v8  ;;  %v2274_v8 = vmul.f32 %v7963_v19, %v2261_v16  ;;  %v4049_v19 = vld [vmem:[%s8629_s8 + $0x1c8] sm:$0xff]  ;;  %v4329_v16 = vld [vmem:[%s8632_s9 + $0xb8] sm:$0xff] }
 0x39c   :  { %6231 = vmatpush1.bf16.msra.mxu1 %v6230_v58  ;;  %3220 = vmatprep.mubr.f32.mxu1 %v6521_v18  ;;  %v4804_v58 = vld [vmem:[%s8631_s5 + $0x1c0] sm:$0xff] }
 0x39d   :  { %6233 = vmatprep.subr.bf16.mxu1 %v6232_v30  ;;  %v2287_v37 = vadd.f32 %v7985_v39, %v2274_v8  ;;  %v4811_v30 = vld [vmem:[%s8631_s5 + $0x1f8] sm:$0xff]  ;;  %v6262_v32 = vpack.c.bf16 %v4808_v59, %v4804_v58  ;;  %v4048_v39 = vld [vmem:[%s8629_s8 + $0x1c0] sm:$0xff] }
 0x39e   :  { %v6264_v54 = vpack.c.bf16 %v4811_v30, %v4807_v25  ;;  %v6326_v47 = vpack.c.bf16 %v4050_v35, %v4048_v39  ;;  %v2503_v58 = vld [vmem:[%s8633_s13] ss:$4 sm:$0xf] }
 0x39f   :  { %4772 = vmatmul.mubr.msk.f32.vlgmr.msra.gmra.mrb[62].mxu1 %vm2678_vm6, %v2284_v34 }
 0x3a0   :  { %6235 = vmatpush1.bf16.msra.mxu1 %v6234_v52  ;;  %3291 = vmatprep.mubr.f32.mxu1 %v6521_v18  ;;  %v4810_v52 = vld [vmem:[%s8631_s5 + $0x1f0] sm:$0xff] }
 0x3a1   :  { %6237 = vmatprep.subr.bf16.mxu1 %v6236_v45  ;;  %v4051_v45 = vld [vmem:[%s8629_s8 + $0x1d8] sm:$0xff] }
 0x3a2   :  { %v6324_v29 = vpack.c.bf16 %v4051_v45, %v4049_v19 }
 0x3a3   :  { %4773 = vmatmul.mubr.msk.f32.vlgmr.msra.gmra.mrb[64].mxu1 %vm2678_vm6, %v2284_v34  ;;  %v6266_v34 = vpack.c.bf16 %v4810_v52, %v4806_v49 }
 0x3a4   :  { %6239 = vmatpush1.bf16.msra.mxu1 %v6238_v1  ;;  %3378 = vmatprep.mubr.f32.mxu1 %v6521_v18  ;;  %v4055_v1 = vld [vmem:[%s8629_s8 + $0x1f8] sm:$0xff] }
 0x3a5   :  { %6241 = vmatprep.subr.bf16.mxu1 %v6240_v51  ;;  %6325 = vmatprep.subr.bf16.mxu0 %v6324_v29  ;;  %v6328_v41 = vpack.c.bf16 %v4055_v1, %v4053_v48  ;;  %v4054_v51 = vld [vmem:[%s8629_s8 + $0x1f0] sm:$0xff] }
 0x3a6   :  { %6327 = vmatpush1.bf16.msra.mxu0 %v6326_v47  ;;  %v6330_v3 = vpack.c.bf16 %v4054_v51, %v4052_v50 }
 0x3a7   :  { %4782 = vmatmul.mubr.msk.f32.vlgmr.msra.gmra.mrb[62].mxu1 %vm2678_vm6, %v2285_v61  ;;  %6329 = vmatprep.subr.bf16.mxu0 %v6328_v41 }
 0x3a8   :  { %6243 = vmatpush1.bf16.msra.mxu1 %v6242_v28  ;;  %3449 = vmatprep.mubr.f32.mxu1 %v6521_v18  ;;  %v4322_v28 = vld [vmem:[%s8632_s9 + $0x80] sm:$0xff] }
 0x3a9   :  { %6245 = vmatprep.subr.bf16.mxu1 %v6244_v46  ;;  %v6396_v46 = vpack.c.bf16 %v4323_v24, %v4322_v28  ;;  %v4058_v28 = vld [vmem:[%s8629_s8 + $0x210] sm:$0xff] }
 0x3aa   :  { %6331 = vmatpush1.bf16.msra.mxu0 %v6330_v3 }
 0x3ab   :  { %4783 = vmatmul.mubr.msk.f32.vlgmr.msra.gmra.mrb[64].mxu1 %vm2678_vm6, %v2285_v61  ;;  %6333 = vmatprep.subr.bf16.mxu0 %v6332_v26  ;;  %v4306_v61 = vld [vmem:[%s8632_s9] sm:$0xff] }
 0x3ac   :  { %6247 = vmatpush1.bf16.msra.mxu1 %v6246_v38  ;;  %3536 = vmatprep.mubr.f32.mxu1 %v6521_v18  ;;  %v6398_v0 = vpack.c.bf16 %v4307_v22, %v4306_v61  ;;  %v6400_v38 = vpack.c.bf16 %v4325_v60, %v4324_v23  ;;  %v4056_v26 = vld [vmem:[%s8629_s8 + $0x200] sm:$0xff]  ;;  %v4061_v22 = vld [vmem:[%s8629_s8 + $0x228] sm:$0xff]  ;;  %v4063_v23 = vld [vmem:[%s8629_s8 + $0x238] sm:$0xff] }
 0x3ad   :  { %6249 = vmatprep.subr.bf16.mxu1 %v6248_v40  ;;  %v4326_v40 = vld [vmem:[%s8632_s9 + $0xa0] sm:$0xff]  ;;  %v6334_v44 = vpack.c.bf16 %v4058_v28, %v4056_v26 }
 0x3ae   :  { %v6404_v15 = vpack.c.bf16 %v4327_v53, %v4326_v40  ;;  %v4088_v28 = vld [vmem:[%s8629_s8 + $0x300] sm:$0xff] }
 0x3af   :  { %4792 = vmatmul.mubr.msk.f32.vlgmr.msra.gmra.mrb[62].mxu1 %vm2678_vm6, %v2286_v55 }
 0x3b0   :  { %6251 = vmatpush1.bf16.msra.mxu1 %v6250_v36  ;;  %3607 = vmatprep.mubr.f32.mxu1 %v6521_v18  ;;  %v4311_v36 = vld [vmem:[%s8632_s9 + $0x28] sm:$0xff] }
 0x3b1   :  { %6253 = vmatprep.subr.bf16.mxu1 %v6252_v6  ;;  %v6406_v6 = vpack.c.bf16 %v4311_v36, %v4310_v33  ;;  %v4060_v33 = vld [vmem:[%s8629_s8 + $0x220] sm:$0xff]  ;;  %v4062_v36 = vld [vmem:[%s8629_s8 + $0x230] sm:$0xff] }
 0x3b2   :  { %v6338_v11 = vpack.c.bf16 %v4062_v36, %v4060_v33  ;;  %v4103_v33 = vld [vmem:[%s8629_s8 + $0x378] sm:$0xff] }
 0x3b3   :  { %4793 = vmatmul.mubr.msk.f32.vlgmr.msra.gmra.mrb[64].mxu1 %vm2678_vm6, %v2286_v55  ;;  %v4328_v55 = vld [vmem:[%s8632_s9 + $0xb0] sm:$0xff] }
 0x3b4   :  { %6255 = vmatpush1.bf16.msra.mxu1 %v6254_v56  ;;  %3694 = vmatprep.mubr.f32.mxu1 %v6521_v18  ;;  %v6408_v42 = vpack.c.bf16 %v4329_v16, %v4328_v55  ;;  %v4331_v56 = vld [vmem:[%s8632_s9 + $0xc8] sm:$0xff] }
 0x3b5   :  { %6257 = vmatprep.subr.bf16.mxu1 %v6256_v9  ;;  %v6412_v8 = vpack.c.bf16 %v4331_v56, %v4330_v20  ;;  %v4314_v9 = vld [vmem:[%s8632_s9 + $0x40] sm:$0xff]  ;;  %v4065_v16 = vld [vmem:[%s8629_s8 + $0x248] sm:$0xff] }
 0x3b6   :  { %v6414_v62 = vpack.c.bf16 %v4315_v10, %v4314_v9  ;;  %v4064_v56 = vld [vmem:[%s8629_s8 + $0x240] sm:$0xff]  ;;  %v4071_v9 = vld [vmem:[%s8629_s8 + $0x278] sm:$0xff] }
 0x3b7   :  { %4802 = vmatmul.mubr.msk.f32.vlgmr.msra.gmra.mrb[62].mxu1 %vm2678_vm6, %v2287_v37 }
 0x3b8   :  { %6259 = vmatpush1.bf16.msra.mxu1 %v6258_v63  ;;  %3765 = vmatprep.mubr.f32.mxu1 %v6521_v18  ;;  %v6416_v63 = vpack.c.bf16 %v4333_v13, %v4332_v12  ;;  %v4068_v13 = vld [vmem:[%s8629_s8 + $0x260] sm:$0xff] }
 0x3b9   :  { %6261 = vmatprep.subr.bf16.mxu1 %v6260_v14 }
 0x3bb   :  { %4803 = vmatmul.mubr.msk.f32.vlgmr.msra.gmra.mrb[64].mxu1 %vm2678_vm6, %v2287_v37  ;;  %v2506_v37 = vshrl.u32 %v2505_v2, 7  ;;  %v4075_v2 = vld [vmem:[%s8629_s8 + $0x298] sm:$0xff] }
 0x3bc   :  { %6263 = vmatpush1.bf16.msra.mxu1 %v6262_v32  ;;  %3852 = vmatprep.mubr.f32.mxu1 %v6521_v18  ;;  %v4814_v32 = vld [vmem:[%s8633_s13 + $0x1] ss:$4 sm:$0xf] }
 0x3bd   :  { %6265 = vmatprep.subr.bf16.mxu1 %v6264_v54  ;;  %v8323_v14 = vsub.s32 0, %v2506_v37  ;;  %v8328_v59 = vsub.s32 1, %v2506_v37  ;;  %v2515_v30 = vsub.s32 2, %v2506_v37  ;;  %v2519_v54 = vsub.s32 3, %v2506_v37 }
 0x3bf   :  { %4812 = vmatmul.mubr.msk.f32.vlgmr.msra.gmra.mrb[62].mxu1 %vm2678_vm6, %v2288_v17  ;;  %v2508_v25 = vrot.slane %v2503_v58, %v8323_v14  ;;  %v2512_v5 = vrot.slane %v2503_v58, %v8328_v59  ;;  %v2516_v45 = vrot.slane %v2503_v58, %v2515_v30  ;;  %v3948_v39 = vrot.slane %v4814_v32, %v8328_v59 }
 0x3c0   :  { %6267 = vmatpush1.bf16.msra.mxu1 %v6266_v34  ;;  %3923 = vmatprep.mubr.f32.mxu1 %v6521_v18  ;;  %v3944_v34 = vrot.slane %v4814_v32, %v8323_v14  ;;  %v2520_v35 = vrot.slane %v2503_v58, %v2519_v54  ;;  %v3952_v31 = vrot.slane %v4814_v32, %v2515_v30 }
 0x3c1   :  { %6397 = vmatprep.subr.bf16.mxu1 %v6396_v46  ;;  %v3956_v46 = vrot.slane %v4814_v32, %v2519_v54  ;;  %v4077_v32 = vld [vmem:[%s8629_s8 + $0x2a8] sm:$0xff] }
 0x3c3   :  { %4813 = vmatmul.mubr.msk.f32.vlgmr.msra.gmra.mrb[64].mxu1 %vm2678_vm6, %v2288_v17  ;;  %v4815_v17 = vld [vmem:[%s8633_s13 + $0x2] ss:$4 sm:$0xf] }
 0x3c4   :  { %6399 = vmatpush3.bf16.msra.mxu1 %v6398_v0  ;;  %v3975_v41 = vrot.slane %v4815_v17, %v8328_v59  ;;  %v3971_v51 = vrot.slane %v4815_v17, %v8323_v14  ;;  %v3979_v0 = vrot.slane %v4815_v17, %v2515_v30  ;;  %v3983_v40 = vrot.slane %v4815_v17, %v2519_v54  ;;  %v4074_v30 = vld [vmem:[%s8629_s8 + $0x290] sm:$0xff]  ;;  %v4081_v17 = vld [vmem:[%s8629_s8 + $0x2c8] sm:$0xff] }
 0x3c5   :  { %6401 = vmatprep.subr.bf16.mxu1 %v6400_v38 }
 0x3c8   :  { %6403 = vmatpush3.bf16.msra.mxu1 %v6402_v7 }
 0x3c9   :  { %6405 = vmatprep.subr.bf16.mxu1 %v6404_v15  ;;  %v6336_v15 = vpack.c.bf16 %v4063_v23, %v4061_v22 }
 0x3cc   :  { %6407 = vmatpush3.bf16.msra.mxu1 %v6406_v6  ;;  %v4067_v6 = vld [vmem:[%s8629_s8 + $0x258] sm:$0xff] }
 0x3cd   :  { %6409 = vmatprep.subr.bf16.mxu1 %v6408_v42  ;;  %v6340_v20 = vpack.c.bf16 %v4067_v6, %v4065_v16  ;;  %v4100_v16 = vld [vmem:[%s8629_s8 + $0x360] sm:$0xff]  ;;  %v4102_v6 = vld [vmem:[%s8629_s8 + $0x370] sm:$0xff] }
 0x3d0   :  { %6411 = vmatpush3.bf16.msra.mxu1 %v6410_v57  ;;  %v4066_v57 = vld [vmem:[%s8629_s8 + $0x250] sm:$0xff] }
 0x3d1   :  { %6413 = vmatprep.subr.bf16.mxu1 %v6412_v8  ;;  %v4069_v8 = vld [vmem:[%s8629_s8 + $0x268] sm:$0xff]  ;;  %v6342_v10 = vpack.c.bf16 %v4066_v57, %v4064_v56  ;;  %v4104_v57 = vld [vmem:[%s8629_s8 + $0x380] sm:$0xff] }
 0x3d2   :  { %v6344_v12 = vpack.c.bf16 %v4071_v9, %v4069_v8  ;;  %v4106_v8 = vld [vmem:[%s8629_s8 + $0x390] sm:$0xff]  ;;  %v4109_v9 = vld [vmem:[%s8629_s8 + $0x3a8] sm:$0xff] }
 0x3d4   :  { %6415 = vmatpush3.bf16.msra.mxu1 %v6414_v62  ;;  %v4070_v62 = vld [vmem:[%s8629_s8 + $0x270] sm:$0xff] }
 0x3d5   :  { %6417 = vmatprep.subr.bf16.mxu1 %v6416_v63  ;;  %v4073_v63 = vld [vmem:[%s8629_s8 + $0x288] sm:$0xff]  ;;  %v6346_v37 = vpack.c.bf16 %v4070_v62, %v4068_v13  ;;  %v4108_v62 = vld [vmem:[%s8629_s8 + $0x3a0] sm:$0xff] }
 0x3d6   :  { %v6348_v58 = vpack.c.bf16 %v4075_v2, %v4073_v63  ;;  %v4110_v63 = vld [vmem:[%s8629_s8 + $0x3b0] sm:$0xff]  ;;  %v4113_v2 = vld [vmem:[%s8629_s8 + $0x3c8] sm:$0xff] }
 0x492   :  { %v3854_v49 = vpop.f32.mrb[62].mxu1 }
 0x493   :  { %v6444_v52 = vadd.f32 %v3854_v49, %v2508_v25  ;;  %v3856_v19 = vpop.f32.mrb[63].mxu1  ;;  %v4072_v25 = vld [vmem:[%s8629_s8 + $0x280] sm:$0xff] }
 0x494   :  { %v6445_v29 = vadd.f32 %v3856_v19, %v2512_v5  ;;  %v4079_v5 = vld [vmem:[%s8629_s8 + $0x2b8] sm:$0xff]  ;;  %v6350_v54 = vpack.c.bf16 %v4074_v30, %v4072_v25  ;;  %v4112_v30 = vld [vmem:[%s8629_s8 + $0x3c0] sm:$0xff] }
 0x495   :  { %v3934_v47 = vmax.f32 %v6444_v52, 0.0  ;;  %v6352_v49 = vpack.c.bf16 %v4079_v5, %v4077_v32  ;;  %v4076_v52 = vld [vmem:[%s8629_s8 + $0x2a0] sm:$0xff]  ;;  %v4083_v19 = vld [vmem:[%s8629_s8 + $0x2d8] sm:$0xff]  ;;  %v4114_v32 = vld [vmem:[%s8629_s8 + $0x3d0] sm:$0xff] }
 0x496   :  { %v3935_v48 = vmax.f32 %v6445_v29, 0.0  ;;  %v3925_v1 = vpop.f32.mrb[64].mxu1  ;;  %v6356_v29 = vpack.c.bf16 %v4083_v19, %v4081_v17  ;;  %v4117_v5 = vld [vmem:[%s8629_s8 + $0x3e8] sm:$0xff]  ;;  %v4118_v17 = vld [vmem:[%s8629_s8 + $0x3f0] sm:$0xff] }
 0x497   :  { %v3961_v50 = vmul.f32 %v3944_v34, %v3934_v47  ;;  %v6446_v3 = vadd.f32 %v3925_v1, %v2516_v45  ;;  %v3927_v43 = vpop.f32.mrb[65].mxu1  ;;  %v4078_v34 = vld [vmem:[%s8629_s8 + $0x2b0] sm:$0xff]  ;;  %v4085_v47 = vld [vmem:[%s8629_s8 + $0x2e8] sm:$0xff] }
 0x498   :  { %v3962_v24 = vmul.f32 %v3948_v39, %v3935_v48  ;;  %v6447_v61 = vadd.f32 %v3927_v43, %v2520_v35  ;;  %v6354_v45 = vpack.c.bf16 %v4078_v34, %v4076_v52  ;;  %v4080_v39 = vld [vmem:[%s8629_s8 + $0x2c0] sm:$0xff]  ;;  %v4082_v35 = vld [vmem:[%s8629_s8 + $0x2d0] sm:$0xff]  ;;  %v4087_v48 = vld [vmem:[%s8629_s8 + $0x2f8] sm:$0xff] }
 0x499   :  { %v3936_v60 = vmax.f32 %v6446_v3, 0.0  ;;  %v3988_v53 = vadd.f32 %v3971_v51, %v3961_v50  ;;  %v6358_v1 = vpack.c.bf16 %v4082_v35, %v4080_v39  ;;  %v4084_v50 = vld [vmem:[%s8629_s8 + $0x2e0] sm:$0xff]  ;;  %v4086_v51 = vld [vmem:[%s8629_s8 + $0x2f0] sm:$0xff]  ;;  %v4089_v3 = vld [vmem:[%s8629_s8 + $0x308] sm:$0xff] }
 0x49a   :  { %v3937_v38 = vmax.f32 %v6447_v61, 0.0  ;;  %v3989_v4 = vadd.f32 %v3975_v41, %v3962_v24  ;;  %v6360_v41 = vpack.c.bf16 %v4087_v48, %v4085_v47  ;;  %v6362_v43 = vpack.c.bf16 %v4086_v51, %v4084_v50  ;;  %v4090_v24 = vld [vmem:[%s8629_s8 + $0x310] sm:$0xff]  ;;  %v4093_v61 = vld [vmem:[%s8629_s8 + $0x328] sm:$0xff]  ;;  %v4116_v34 = vld [vmem:[%s8629_s8 + $0x3e0] sm:$0xff] }
 0x49b   :  { %v3963_v7 = vmul.f32 %v3952_v31, %v3936_v60  ;;  %v4091_v31 = vld [vmem:[%s8629_s8 + $0x318] sm:$0xff]  ;;  %v6366_v22 = vpack.c.bf16 %v4090_v24, %v4088_v28  ;;  %v4092_v60 = vld [vmem:[%s8629_s8 + $0x320] sm:$0xff]  ;;  %v6394_v19 = vpack.c.bf16 %v4118_v17, %v4116_v34  ;;  %v4335_v47 = vld [vmem:[%s8632_s9 + $0xe8] sm:$0xff] }
 0x49c   :  { %v3964_v55 = vmul.f32 %v3956_v46, %v3937_v38  ;;  %4196 = vmatprep.mubr.f32.mxu0 %v3989_v4  ;;  %v6364_v26 = vpack.c.bf16 %v4091_v31, %v4089_v3  ;;  %v4095_v46 = vld [vmem:[%s8629_s8 + $0x338] sm:$0xff]  ;;  %v4097_v38 = vld [vmem:[%s8629_s8 + $0x348] sm:$0xff]  ;;  %v4334_v35 = vld [vmem:[%s8632_s9 + $0xe0] sm:$0xff] }
 0x49d   :  { %v8366_v42 = vadd.f32 %v3979_v0, %v3963_v7  ;;  %4197 = vmatmul.mubr.f32.vlgmr.msra.gmra.mrb[70].mxu0 %v3988_v53  ;;  %v6368_v23 = vpack.c.bf16 %v4095_v46, %v4093_v61  ;;  %v4094_v0 = vld [vmem:[%s8629_s8 + $0x330] sm:$0xff]  ;;  %v4099_v4 = vld [vmem:[%s8629_s8 + $0x358] sm:$0xff]  ;;  %v4096_v53 = vld [vmem:[%s8629_s8 + $0x340] sm:$0xff]  ;;  %v6420_v48 = vpack.c.bf16 %v4335_v47, %v4334_v35 }
 0x49e   :  { %6335 = vmatpush1.bf16.msra.mxu0 %v6334_v44  ;;  %v3991_v27 = vadd.f32 %v3983_v40, %v3964_v55  ;;  %v6370_v44 = vpack.c.bf16 %v4094_v0, %v4092_v60  ;;  %v6372_v40 = vpack.c.bf16 %v4099_v4, %v4097_v38  ;;  %v4098_v7 = vld [vmem:[%s8629_s8 + $0x350] sm:$0xff]  ;;  %v4337_v51 = vld [vmem:[%s8632_s9 + $0xf8] sm:$0xff]  ;;  %v4120_v28 = vld [vmem:[%s8634_s14] ss:$4 sm:$0x3] }
 0x49f   :  { %6337 = vmatprep.subr.bf16.mxu0 %v6336_v15  ;;  %v4101_v15 = vld [vmem:[%s8629_s8 + $0x368] sm:$0xff]  ;;  %v6374_v36 = vpack.c.bf16 %v4098_v7, %v4096_v53  ;;  %v4336_v50 = vld [vmem:[%s8632_s9 + $0xf0] sm:$0xff]  ;;  %v4125_v24 = vrot.slane %v4120_v28, %v8323_v14  ;;  %v4816_v61 = vld [vmem:[%s8634_s14 + $0x1] ss:$4 sm:$0x3]  ;;  %v4129_v46 = vrot.slane %v4120_v28, %v8328_v59 }
 0x4a0   :  { %4267 = vmatprep.mubr.f32.mxu0 %v3991_v27  ;;  %v6376_v55 = vpack.c.bf16 %v4103_v33, %v4101_v15  ;;  %v4105_v27 = vld [vmem:[%s8629_s8 + $0x388] sm:$0xff]  ;;  %v6424_v3 = vpack.c.bf16 %v4337_v51, %v4336_v50  ;;  %v4320_v31 = vld [vmem:[%s8632_s9 + $0x70] sm:$0xff]  ;;  %v4282_v60 = vrot.slane %v4816_v61, %v8323_v14  ;;  %v4817_v0 = vld [vmem:[%s8634_s14 + $0x2] ss:$4 sm:$0x3] }
 0x4a1   :  { %v4301_v7 = vrot.slane %v4817_v0, %v8328_v59  ;;  %v4297_v33 = vrot.slane %v4817_v0, %v8323_v14  ;;  %v4428_v14 = vld [vmem:[%s8635_s10 + $0x10] sm:$0xff] }
 0x4a2   :  { %6339 = vmatpush1.bf16.msra.mxu0 %v6338_v11  ;;  %v4107_v11 = vld [vmem:[%s8629_s8 + $0x398] sm:$0xff] }
 0x4a3   :  { %6341 = vmatprep.subr.bf16.mxu0 %v6340_v20  ;;  %v6378_v20 = vpack.c.bf16 %v4102_v6, %v4100_v16  ;;  %v6380_v56 = vpack.c.bf16 %v4107_v11, %v4105_v27 }
 0x4a6   :  { %6343 = vmatpush1.bf16.msra.mxu0 %v6342_v10  ;;  %v4111_v10 = vld [vmem:[%s8629_s8 + $0x3b8] sm:$0xff] }
 0x4a7   :  { %6345 = vmatprep.subr.bf16.mxu0 %v6344_v12  ;;  %v6382_v12 = vpack.c.bf16 %v4106_v8, %v4104_v57  ;;  %v6384_v13 = vpack.c.bf16 %v4111_v10, %v4109_v9  ;;  %v4432_v8 = vld [vmem:[%s8635_s10 + $0x30] sm:$0xff]  ;;  %v4433_v9 = vld [vmem:[%s8635_s10 + $0x38] sm:$0xff] }
 0x4a8   :  { %v6438_v10 = vpack.c.bf16 %v4433_v9, %v4432_v8 }
 0x4aa   :  { %6347 = vmatpush1.bf16.msra.mxu0 %v6346_v37  ;;  %v4115_v37 = vld [vmem:[%s8629_s8 + $0x3d8] sm:$0xff] }
 0x4ab   :  { %6349 = vmatprep.subr.bf16.mxu0 %v6348_v58  ;;  %v6386_v58 = vpack.c.bf16 %v4110_v63, %v4108_v62  ;;  %v6388_v25 = vpack.c.bf16 %v4115_v37, %v4113_v2 }
 0x4ae   :  { %6351 = vmatpush1.bf16.msra.mxu0 %v6350_v54  ;;  %v4119_v54 = vld [vmem:[%s8629_s8 + $0x3f8] sm:$0xff] }
 0x4af   :  { %6353 = vmatprep.subr.bf16.mxu0 %v6352_v49  ;;  %v6390_v49 = vpack.c.bf16 %v4114_v32, %v4112_v30  ;;  %v6392_v52 = vpack.c.bf16 %v4119_v54, %v4117_v5  ;;  %v4821_v32 = vld [vmem:[%s8636_s15 + $0x3] ss:$0 sm:$0xff] }
 0x4b2   :  { %6355 = vmatpush1.bf16.msra.mxu0 %v6354_v45  ;;  %v4316_v45 = vld [vmem:[%s8632_s9 + $0x50] sm:$0xff] }
 0x4b3   :  { %6357 = vmatprep.subr.bf16.mxu0 %v6356_v29  ;;  %v4317_v29 = vld [vmem:[%s8632_s9 + $0x58] sm:$0xff] }
 0x4b4   :  { %v6418_v39 = vpack.c.bf16 %v4317_v29, %v4316_v45 }
 0x4b6   :  { %6359 = vmatpush1.bf16.msra.mxu0 %v6358_v1  ;;  %6419 = vmatpush3.bf16.msra.mxu1 %v6418_v39  ;;  %v4319_v1 = vld [vmem:[%s8632_s9 + $0x68] sm:$0xff] }
 0x4b7   :  { %6361 = vmatprep.subr.bf16.mxu0 %v6360_v41  ;;  %6421 = vmatprep.subr.bf16.mxu1 %v6420_v48 }
 0x4ba   :  { %6363 = vmatpush1.bf16.msra.mxu0 %v6362_v43  ;;  %v4321_v43 = vld [vmem:[%s8632_s9 + $0x78] sm:$0xff] }
 0x4bb   :  { %6365 = vmatprep.subr.bf16.mxu0 %v6364_v26  ;;  %v6426_v26 = vpack.c.bf16 %v4321_v43, %v4320_v31 }
 0x4be   :  { %6367 = vmatpush1.bf16.msra.mxu0 %v6366_v22 }
 0x4bf   :  { %6369 = vmatprep.subr.bf16.mxu0 %v6368_v23 }
 0x4c2   :  { %6371 = vmatpush1.bf16.msra.mxu0 %v6370_v44  ;;  %v4286_v44 = vrot.slane %v4816_v61, %v8328_v59  ;;  %v4429_v59 = vld [vmem:[%s8635_s10 + $0x18] sm:$0xff] }
 0x4c3   :  { %6373 = vmatprep.subr.bf16.mxu0 %v6372_v40 }
 0x4c6   :  { %6375 = vmatpush1.bf16.msra.mxu0 %v6374_v36  ;;  %v4426_v36 = vld [vmem:[%s8635_s10] sm:$0xff] }
 0x4c7   :  { %6377 = vmatprep.subr.bf16.mxu0 %v6376_v55  ;;  %v4427_v55 = vld [vmem:[%s8635_s10 + $0x8] sm:$0xff] }
 0x4c8   :  { %v6429_v27 = vpack.c.bf16 %v4427_v55, %v4426_v36 }
 0x4ca   :  { %6379 = vmatpush1.bf16.msra.mxu0 %v6378_v20  ;;  %v6432_v20 = vpack.c.bf16 %v4429_v59, %v4428_v14 }
 0x4cb   :  { %6381 = vmatprep.subr.bf16.mxu0 %v6380_v56  ;;  %v4430_v56 = vld [vmem:[%s8635_s10 + $0x20] sm:$0xff] }
 0x4ce   :  { %6383 = vmatpush1.bf16.msra.mxu0 %v6382_v12 }
 0x4cf   :  { %6385 = vmatprep.subr.bf16.mxu0 %v6384_v13  ;;  %v4818_v13 = vld [vmem:[%s8636_s15] ss:$0 sm:$0xff] }
 0x4d2   :  { %6387 = vmatpush1.bf16.msra.mxu0 %v6386_v58  ;;  %v4820_v58 = vld [vmem:[%s8636_s15 + $0x2] ss:$0 sm:$0xff] }
 0x4d3   :  { %6389 = vmatprep.subr.bf16.mxu0 %v6388_v25 }
 0x4d6   :  { %6391 = vmatpush1.bf16.msra.mxu0 %v6390_v49 }
 0x4d7   :  { %6393 = vmatprep.subr.bf16.mxu0 %v6392_v52 }
 0x4da   :  { %6395 = vmatpush1.bf16.msra.mxu0 %v6394_v19 }
 0x4dd   :  { %4268 = vmatmul.mubr.f32.vlgmr.msra.gmra.mrb[70].mxu0 %v8366_v42  ;;  %v4318_v42 = vld [vmem:[%s8632_s9 + $0x60] sm:$0xff] }
 0x4de   :  { %v6422_v41 = vpack.c.bf16 %v4319_v1, %v4318_v42 }
 0x4e0   :  { %6423 = vmatpush3.bf16.msra.mxu1 %v6422_v41 }
 0x4e1   :  { %6425 = vmatprep.subr.bf16.mxu1 %v6424_v3 }
 0x4e4   :  { %6427 = vmatpush3.bf16.msra.mxu1 %v6426_v26 }
 0x4e5   :  { %6428 = vmatprep.subr.bf16.mxu1 %v6519_v21 }
 0x5b0   :  { %v4269_v22 = vpop.f32.mrb[70].mxu0 }
 0x5b1   :  { %v6448_v23 = vadd.f32 %v4269_v22, %v4125_v24  ;;  %v4271_v38 = vpop.f32.mrb[71].mxu0 }
 0x5b2   :  { %v6449_v4 = vadd.f32 %v4271_v38, %v4129_v46 }
 0x5b3   :  { %v4274_v40 = vmax.f32 %v6448_v23, 0.0 }
 0x5b4   :  { %v4275_v53 = vmax.f32 %v6449_v4, 0.0 }
 0x5b5   :  { %v4289_v15 = vmul.f32 %v4282_v60, %v4274_v40 }
 0x5b6   :  { %v4290_v16 = vmul.f32 %v4286_v44, %v4275_v53 }
 0x5b7   :  { %v4304_v11 = vadd.f32 %v4297_v33, %v4289_v15 }
 0x5b8   :  { %v4305_v6 = vadd.f32 %v4301_v7, %v4290_v16 }
 0x5ba   :  { %4407 = vmatprep.mubr.f32.mxu1 %v4305_v6 }
 0x5bb   :  { %4408 = vmatmul.mubr.f32.vlgmr.msra.gmra.mrb[66].mxu1 %v4304_v11 }
 0x5bc   :  { %6430 = vmatpush3.bf16.msra.mxu1 %v6429_v27  ;;  %5829 = vmatprep.mubr.msk.f32.mxu1 %vm6520_vm3, %v6521_v18  ;;  %v4431_v18 = vld [vmem:[%s8635_s10 + $0x28] sm:$0xff] }
 0x5bd   :  { %6431 = vmatprep.subr.bf16.mxu1 %v6519_v21  ;;  %v6435_v57 = vpack.c.bf16 %v4431_v18, %v4430_v56 }
 0x5c0   :  { %6433 = vmatpush3.bf16.msra.mxu1 %v6432_v20 }
 0x5c1   :  { %6434 = vmatprep.subr.bf16.mxu1 %v6519_v21 }
 0x5c4   :  { %6436 = vmatpush3.bf16.msra.mxu1 %v6435_v57 }
 0x5c5   :  { %6437 = vmatprep.subr.bf16.mxu1 %v6519_v21  ;;  %v4819_v21 = vld [vmem:[%s8636_s15 + $0x1] ss:$0 sm:$0xff] }
 0x5c8   :  { %6439 = vmatpush3.bf16.msra.mxu1 %v6438_v10 }
 0x68e   :  { %v5220_v12 = vpop.f32.mrb[66].mxu1 }
 0x68f   :  { %v5221_v62 = vpop.f32.mrb[67].mxu1 }
 0x690   :  { %v5222_v63 = vadd.f32 %v5221_v62, %v5220_v12 }
 0x692   :  { %v4410_v2 = vadd.f32 %v5222_v63, %v4818_v13 }
 0x694   :  { %v4413_v37 = vmax.f32 %v4410_v2, 0.0 }
 0x696   :  { %v4419_v25 = vmul.f32 %v4819_v21, %v4413_v37 }
 0x698   :  { %v4425_v30 = vadd.f32 %v4820_v58, %v4419_v25 }
 0x69a   :  { %5830 = vmatmul.mubr.msk.f32.vlgmr.msra.gmra.mrb[68].mxu1 %vm4439_vm7, %v4425_v30 }
 0x76d   :  { %v4509_v5 = vpop.f32.mrb[68].mxu1 }
 0x76e   :  { %v4510_v54 = vadd.f32 %v4821_v32, %v4509_v5  ;;  %v5831_v49 = vpop.f32.mrb[69].mxu1 }
 0x770   :  { %4514 = vst.msk [vmem:[%s8637_s16] sm:$0xff] %vm4513_vm8, %v4510_v54 }

</bundles_post_ra>
